<compile_context>
chip_gen: v7x
topology: tpu7x:2x2x1
jax: 0.10.0
libtpu: 0.0.40
codegen_flags: <defaults>
</compile_context>

<pallas_src>
import math
import functools

import numpy as np
import jax
import jax.numpy as jnp
from jax import lax
from jax.experimental import pallas as pl
from jax.experimental.pallas import tpu as pltpu


OUT_LANES = 128            # lane-dense padded width of the decoder Linear output
MAX_SETS_PER_BLOCK = 16    # -> 16 * set_size(8) = 128 matmul rows per grid step


# ----------------------------------------------------------------------------
# small in-kernel helpers
# ----------------------------------------------------------------------------
def _sigmoid(x):
    # exact (torch parity); arrays are tiny, the divide cost is negligible.
    return 1.0 / (1.0 + jnp.exp(-x))


def _layernorm(x, eps=1e-5):
    mu = jnp.mean(x, axis=-1, keepdims=True)
    var = jnp.mean((x - mu) * (x - mu), axis=-1, keepdims=True)
    return (x - mu) * lax.rsqrt(var + eps)


def _mab(q, k, qmask, bias, w, *, num_heads, scale):
    """Multihead attention block (torch MAB) on 2-D (rows, feature) activations.

    q: (rq, d_q) f32, k: (rk, d_k) f32.
    qmask: (H*rq, dV) f32 head lane mask (row block h keeps only head-h lanes).
    bias:  (H*rq, rk) f32 additive per-set mask (0 same-set / -1e30 cross-set).
    """
    wq, bq, wk, bk, wv, bv, wo, bo = w
    f32, bf16 = jnp.float32, jnp.bfloat16
    H = num_heads
    rq = q.shape[0]

    Qp = jnp.dot(q.astype(bf16), wq[...], preferred_element_type=f32) + bq[...]
    Kp = jnp.dot(k.astype(bf16), wk[...], preferred_element_type=f32) + bk[...]
    Vp = jnp.dot(k.astype(bf16), wv[...], preferred_element_type=f32) + bv[...]

    # Head-fused attention: stack the H lane-masked queries along rows, one QK^T
    # matmul, one softmax pass, one A@V matmul, then lane-mask + head-sum.
    Qs = jnp.concatenate([Qp] * H, axis=0) * qmask                 # (H*rq, dV)
    s = lax.dot_general(Qs.astype(bf16), Kp.astype(bf16),
                        (((1,), (1,)), ((), ())),
                        preferred_element_type=f32) * scale + bias  # (H*rq, rk)
    s = s - jnp.max(s, axis=-1, keepdims=True)
    p = jnp.exp(s)
    a = p * (1.0 / jnp.sum(p, axis=-1, keepdims=True))              # exact softmax
    av = jnp.dot(a.astype(bf16), Vp.astype(bf16),
                 preferred_element_type=f32) * qmask                 # (H*rq, dV)
    # heads occupy disjoint lanes -> summing row blocks == concatenating heads
    o_heads = av[0:rq]
    for h in range(1, H):
        o_heads = o_heads + av[h * rq:(h + 1) * rq]

    O = Qp + o_heads                       # torch: cat_h(Q_h + A_h @ V_h, dim=-1)
    O = _layernorm(O)                      # ln0 (no affine)
    U = jnp.dot(O.astype(bf16), wo[...], preferred_element_type=f32) + bo[...]
    O = O + _sigmoid(U)
    O = _layernorm(O)                      # ln1
    return O


# ----------------------------------------------------------------------------
# kernel 1: batch-wide BatchNorm2d statistics -> folded per-lane scale/shift
# ----------------------------------------------------------------------------
def _bn_stats_kernel(x_ref, wconv_ref, wconv_mean_ref, mmat_ref, gamma_ref, beta_ref,
                     scale_ref, shift_ref, *, eps):
    f32, bf16 = jnp.float32, jnp.bfloat16
    xb = x_ref[...].astype(bf16)                                    # (B*S, Nr*Nc)
    conv = jnp.dot(xb, wconv_ref[...], preferred_element_type=f32)  # (B*S, Ch*P)
    # channel-mean pass folded into the conv weight host-side (wconv @ mmat)
    rowmean = jnp.dot(xb, wconv_mean_ref[...], preferred_element_type=f32)
    chmean = jnp.mean(rowmean, axis=0, keepdims=True)               # (1, Ch*P)
    c = conv - chmean                                               # two-pass center
    lane_msq = jnp.mean(c * c, axis=0, keepdims=True)               # (1, Ch*P) f32
    var = jnp.dot(lane_msq, mmat_ref[...],
                  preferred_element_type=f32)                       # avg lanes/chan
    sc = gamma_ref[...] * lax.rsqrt(var + eps)
    scale_ref[...] = sc
    shift_ref[...] = beta_ref[...] - chmean * sc


# ----------------------------------------------------------------------------
# kernel 2: conv + BN-affine + SAB + SAB + sigmoid + PMA + Linear + sigmoid,
#           one batch block (bb sets) per grid step
# ----------------------------------------------------------------------------
def _quan4_main_kernel(*refs, num_heads, dim_hidden):
    x_ref, wconv_ref, bnsc_ref, bnsh_ref = refs[0:4]
    s1 = refs[4:12]
    s2 = refs[12:20]
    pm = refs[20:28]
    (seeds_ref, qme_ref, qmd_ref, be_ref, bd_ref,
     decw_ref, decb_ref, out_ref) = refs[28:36]

    f32, bf16 = jnp.float32, jnp.bfloat16
    scale = 1.0 / math.sqrt(dim_hidden)    # torch divides by sqrt(dim_V)

    # Conv2d + NCHW flatten as one bf16 matmul; BatchNorm folded into scale/shift.
    conv = jnp.dot(x_ref[...].astype(bf16), wconv_ref[...],
                   preferred_element_type=f32)                      # (bb*S, Ch*P)
    feat = conv * bnsc_ref[...] + bnsh_ref[...]

    qme, be = qme_ref[...], be_ref[...]    # encoder head-lane mask / per-set bias
    qmd, bd = qmd_ref[...], bd_ref[...]    # decoder (PMA) versions

    # encoder: SAB(dim_in->dH), SAB(dH->dH); X = sigmoid(enc(X))
    h = _mab(feat, feat, qme, be, s1, num_heads=num_heads, scale=scale)
    h = _mab(h, h, qme, be, s2, num_heads=num_heads, scale=scale)
    h = _sigmoid(h)

    # decoder: PMA(seeds, X) -> Linear(dH -> 128-padded) -> Sigmoid
    o = _mab(seeds_ref[...], h, qmd, bd, pm, num_heads=num_heads, scale=scale)
    y = jnp.dot(o.astype(bf16), decw_ref[...], preferred_element_type=f32) + decb_ref[...]
    out_ref[...] = _sigmoid(y).astype(out_ref.dtype)


# ----------------------------------------------------------------------------
# host-side (one-time) parameter preprocessing
# ----------------------------------------------------------------------------
def _fold_conv_weight(conv_w, Nr, Nc, ks, st):
    """(Ch,1,ks,ks) conv weight -> (Nr*Nc, Ch*rNr*rNc) matrix folding im2col,
    the conv contraction and the NCHW channel-major feature flattening."""
    Ch = conv_w.shape[0]
    rNr = (Nr - ks) // st + 1
    rNc = (Nc - ks) // st + 1
    P = rNr * rNc
    w = np.asarray(conv_w, dtype=np.float32).reshape(Ch, ks, ks)
    W = np.zeros((Nr * Nc, Ch * P), np.float32)
    for c in range(Ch):
        for i in range(rNr):
            for j in range(rNc):
                p = i * rNc + j
                for di in range(ks):
                    for dj in range(ks):
                        pix = (i * st + di) * Nc + (j * st + dj)
                        W[pix, c * P + p] += w[c, di, dj]
    return W


def _channel_mean_matrix(Ch, P):
    """(Ch*P, Ch*P) matrix averaging the P lanes of each channel (BN stats)."""
    m = np.zeros((Ch * P, Ch * P), np.float32)
    for c in range(Ch):
        m[c * P:(c + 1) * P, c * P:(c + 1) * P] = 1.0 / P
    return m


def _head_lane_mask(H, rq, dV, ds):
    """(H*rq, dV) f32: 1 where the lane belongs to head (row // rq)."""
    row_head = np.arange(H * rq)[:, None] // rq
    lane_head = np.arange(dV)[None, :] // ds
    return (row_head == lane_head).astype(np.float32)


def _set_bias(H, nq_per_set, nk_per_set, bb):
    """(H*bb*nq_per_set, bb*nk_per_set) additive mask: 0 same set, -1e30 otherwise."""
    rq = bb * nq_per_set
    rk = bb * nk_per_set
    q_set = (np.arange(H * rq) % rq) // nq_per_set
    k_set = np.arange(rk) // nk_per_set
    same = q_set[:, None] == k_set[None, :]
    return np.where(same, np.float32(0.0), np.float32(-1e30)).astype(np.float32)


def _mab_operands(p):
    dV = p["wq"].shape[1]
    w = lambda a: a.astype(jnp.bfloat16)
    b = lambda a: a.reshape(1, dV).astype(jnp.float32)
    return [w(p["wq"]), b(p["bq"]), w(p["wk"]), b(p["bk"]),
            w(p["wv"]), b(p["bv"]), w(p["wo"]), b(p["bo"])]


def prepare_params(params, cfg):
    Nr = Nc = 4
    ks, st, Ch = cfg["kersize"], cfg["stride"], cfg["channel"]
    rNr = (Nr - ks) // st + 1
    rNc = (Nc - ks) // st + 1
    P = rNr * rNc
    dim_in = Ch * P
    dH, d_out = cfg["dim_hidden"], cfg["dim_output"]

    wconv = _fold_conv_weight(params["conv_w"], Nr, Nc, ks, st)     # (16, dim_in)
    mmat = _channel_mean_matrix(Ch, P)
    wconv_mean = wconv @ mmat                                       # fold BN mean pass

    decw = np.zeros((dH, OUT_LANES), np.float32)                    # lane-dense pad
    decw[:, :d_out] = np.asarray(params["dec_w"], np.float32)
    decb = np.zeros((1, OUT_LANES), np.float32)
    decb[0, :d_out] = np.asarray(params["dec_b"], np.float32)

    return {
        "wconv": jnp.asarray(wconv, jnp.bfloat16),
        "wconv_mean": jnp.asarray(wconv_mean, jnp.bfloat16),
        "mmat": jnp.asarray(mmat, jnp.float32),
        "gamma": jnp.repeat(params["bn_gamma"].astype(jnp.float32), P).reshape(1, dim_in),
        "beta": jnp.repeat(params["bn_beta"].astype(jnp.float32), P).reshape(1, dim_in),
        "sab1": _mab_operands(params["sab1"]),
        "sab2": _mab_operands(params["sab2"]),
        "pma": _mab_operands(params["pma"]),
        "S": params["S"].reshape(cfg["p_outputs"], dH).astype(jnp.float32),
        "dec_w": jnp.asarray(decw, jnp.bfloat16),
        "dec_b": jnp.asarray(decb, jnp.float32),
    }


# ----------------------------------------------------------------------------
# forward pass: stats kernel + batch-gridded main kernel
# ----------------------------------------------------------------------------
def quan4_forward(x, prep, cfg):
    B = x.shape[0]
    S, H = cfg["set_size"], cfg["num_heads"]
    dH, p_out, d_out = cfg["dim_hidden"], cfg["p_outputs"], cfg["dim_output"]
    Nr = Nc = 4
    dim_in = prep["wconv"].shape[1]
    ds = dH // H

    x2d = x.reshape(B * S, Nr * Nc).astype(jnp.float32)

    # ---- kernel 1: batch-wide BN statistics -> folded (scale, shift) -----------
    bn_scale, bn_shift = pl.pallas_call(
        functools.partial(_bn_stats_kernel, eps=1e-5),
        out_shape=(jax.ShapeDtypeStruct((1, dim_in), jnp.float32),
                   jax.ShapeDtypeStruct((1, dim_in), jnp.float32)),
        in_specs=[pl.BlockSpec(memory_space=pltpu.MemorySpace.VMEM)] * 6,
        out_specs=(pl.BlockSpec(memory_space=pltpu.MemorySpace.VMEM),
                   pl.BlockSpec(memory_space=pltpu.MemorySpace.VMEM)),
    )(x2d, prep["wconv"], prep["wconv_mean"], prep["mmat"], prep["gamma"], prep["beta"])

    # ---- batch blocking: bb sets per grid step (bb*S rows of matmul work) ------
    bb = B if B <= MAX_SETS_PER_BLOCK else MAX_SETS_PER_BLOCK
    nblk = -(-B // bb)
    B_pad = nblk * bb
    if B_pad != B:                                       # pad with independent dummy sets
        x2d = jnp.concatenate(
            [x2d, jnp.zeros(((B_pad - B) * S, Nr * Nc), jnp.float32)], axis=0)
    seeds = jnp.broadcast_to(prep["S"][None], (B_pad, p_out, dH)).reshape(B_pad * p_out, dH)

    # host-precomputed constant masks (shape-static under jit)
    qmask_enc = jnp.asarray(_head_lane_mask(H, bb * S, dH, ds))
    qmask_dec = jnp.asarray(_head_lane_mask(H, bb * p_out, dH, ds))
    bias_enc = jnp.asarray(_set_bias(H, S, S, bb))
    bias_dec = jnp.asarray(_set_bias(H, p_out, S, bb))

    # ---- specs ------------------------------------------------------------------
    def const_spec(a):                                   # weights / masks: VMEM-resident
        nd = a.ndim
        return pl.BlockSpec(tuple(a.shape), lambda i, _nd=nd: (0,) * _nd)

    x_spec = pl.BlockSpec((bb * S, Nr * Nc), lambda i: (i, 0))
    seeds_spec = pl.BlockSpec((bb * p_out, dH), lambda i: (i, 0))
    out_spec = pl.BlockSpec((bb * p_out, OUT_LANES), lambda i: (i, 0))

    weights = (list(prep["sab1"]) + list(prep["sab2"]) + list(prep["pma"]))
    operands = ([x2d, prep["wconv"], bn_scale, bn_shift] + weights
                + [seeds, qmask_enc, qmask_dec, bias_enc, bias_dec,
                   prep["dec_w"], prep["dec_b"]])
    in_specs = ([x_spec, const_spec(prep["wconv"]), const_spec(bn_scale),
                 const_spec(bn_shift)]
                + [const_spec(a) for a in weights]
                + [seeds_spec, const_spec(qmask_enc), const_spec(qmask_dec),
                   const_spec(bias_enc), const_spec(bias_dec),
                   const_spec(prep["dec_w"]), const_spec(prep["dec_b"])])

    kernel = functools.partial(_quan4_main_kernel, num_heads=H, dim_hidden=dH)

    out = pl.pallas_call(
        kernel,
        out_shape=jax.ShapeDtypeStruct((B_pad * p_out, OUT_LANES), jnp.float32),
        grid_spec=pltpu.PrefetchScalarGridSpec(
            num_scalar_prefetch=0, grid=(nblk,),
            in_specs=in_specs, out_specs=out_spec),
        compiler_params=pltpu.CompilerParams(
            dimension_semantics=("parallel",),
            vmem_limit_bytes=32 * 1024 * 1024),
    )(*operands)

    # torch: self.dec(X)[:, 0]  -> (B, dim_output); drop batch padding + lane padding
    return out.reshape(B_pad, p_out, OUT_LANES)[:B, 0, :d_out]


# ----------------------------------------------------------------------------
# deterministic synthetic parameters
# ----------------------------------------------------------------------------
def _init_linear(key, d_in, d_out, scale=0.1):
    k1, k2 = jax.random.split(key)
    w = jax.random.normal(k1, (d_in, d_out), jnp.float32) * scale    # = torch W.T
    b = jax.random.normal(k2, (d_out,), jnp.float32) * scale
    return w, b


def init_mab_params(key, dim_Q, dim_K, dim_V):
    kq, kk, kv, ko = jax.random.split(key, 4)
    wq, bq = _init_linear(kq, dim_Q, dim_V)
    wk, bk = _init_linear(kk, dim_K, dim_V)
    wv, bv = _init_linear(kv, dim_K, dim_V)
    wo, bo = _init_linear(ko, dim_V, dim_V)
    return dict(wq=wq, bq=bq, wk=wk, bk=bk, wv=wv, bv=bv, wo=wo, bo=bo)


if __name__ == "__main__":
    cfg = dict(set_size=8, channel=4, dim_output=2, kersize=2, stride=2,
               dim_hidden=32, num_heads=4, Nt=8, p_outputs=1)
    Nr = Nc = 4
    rNr = (Nr - cfg["kersize"]) // cfg["stride"] + 1
    rNc = (Nc - cfg["kersize"]) // cfg["stride"] + 1
    dim_in = cfg["channel"] * rNr * rNc                              # 4*2*2 = 16

    key = jax.random.PRNGKey(0)
    kx, kp = jax.random.split(key)
    keys = jax.random.split(kp, 8)
    kd1, kd2 = jax.random.split(keys[7])

    params = dict(
        conv_w=jax.random.normal(keys[0], (cfg["channel"], 1, cfg["kersize"],
                                           cfg["kersize"]), jnp.float32) * 0.3,
        bn_gamma=1.0 + 0.1 * jax.random.normal(keys[1], (cfg["channel"],), jnp.float32),
        bn_beta=0.1 * jax.random.normal(keys[2], (cfg["channel"],), jnp.float32),
        sab1=init_mab_params(keys[3], dim_in, dim_in, cfg["dim_hidden"]),
        sab2=init_mab_params(keys[4], cfg["dim_hidden"], cfg["dim_hidden"], cfg["dim_hidden"]),
        pma=init_mab_params(keys[5], cfg["dim_hidden"], cfg["dim_hidden"], cfg["dim_hidden"]),
        S=jax.random.normal(keys[6], (1, cfg["p_outputs"], cfg["dim_hidden"]), jnp.float32) * 0.1,
        dec_w=jax.random.normal(kd1, (cfg["dim_hidden"], cfg["dim_output"]), jnp.float32) * 0.1,
        dec_b=jax.random.normal(kd2, (cfg["dim_output"],), jnp.float32) * 0.1,
    )

    prep = prepare_params(params, cfg)                # host-side, numpy, runs once

    # Input: (B, set_size, Nr, Nc) = (2, 8, 4, 4)
    x = jax.random.normal(kx, (2, cfg["set_size"], Nr, Nc), jnp.float32)

    fwd = jax.jit(functools.partial(quan4_forward, cfg=cfg))
    out = jax.block_until_ready(fwd(x, prep))

    assert out.shape == (2, cfg["dim_output"])
    assert bool(jnp.all(jnp.isfinite(out)))
    print("KERNEL_OK")
</pallas_src>

<mosaic_0001>
module attributes {stable_mosaic.version = 11 : i64} {
  func.func @_bn_stats_kernel(%arg0: memref<16x16xf32, #tpu.memory_space<vmem>>, %arg1: memref<16x16xbf16, #tpu.memory_space<vmem>>, %arg2: memref<16x16xbf16, #tpu.memory_space<vmem>>, %arg3: memref<16x16xf32, #tpu.memory_space<vmem>>, %arg4: memref<1x16xf32, #tpu.memory_space<vmem>>, %arg5: memref<1x16xf32, #tpu.memory_space<vmem>>, %arg6: memref<1x16xf32, #tpu.memory_space<vmem>>, %arg7: memref<1x16xf32, #tpu.memory_space<vmem>>) attributes {dimension_semantics = [], scalar_prefetch = 0 : i64, scratch_operands = 0 : i64, tpu.core_type = #tpu.core_type<tc>} {
    %c0 = arith.constant 0 : index
    %c0_0 = arith.constant 0 : index
    %0 = vector.load %arg0[%c0, %c0_0] : memref<16x16xf32, #tpu.memory_space<vmem>>, vector<16x16xf32>
    %1 = arith.truncf %0 : vector<16x16xf32> to vector<16x16xbf16>
    %c0_1 = arith.constant 0 : index
    %c0_2 = arith.constant 0 : index
    %2 = vector.load %arg1[%c0_1, %c0_2] : memref<16x16xbf16, #tpu.memory_space<vmem>>, vector<16x16xbf16>
    %cst = arith.constant dense<0.000000e+00> : vector<16x16xf32>
    %3 = tpu.matmul %1, %2, %cst {dimension_numbers = #tpu.dot_dimension_numbers<[1], [0], [0], [1], [0, 0, 1, 1], [], []>} : vector<16x16xbf16>, vector<16x16xbf16>, vector<16x16xf32> -> vector<16x16xf32>
    %c0_3 = arith.constant 0 : index
    %c0_4 = arith.constant 0 : index
    %4 = vector.load %arg2[%c0_3, %c0_4] : memref<16x16xbf16, #tpu.memory_space<vmem>>, vector<16x16xbf16>
    %cst_5 = arith.constant dense<0.000000e+00> : vector<16x16xf32>
    %5 = tpu.matmul %1, %4, %cst_5 {dimension_numbers = #tpu.dot_dimension_numbers<[1], [0], [0], [1], [0, 0, 1, 1], [], []>} : vector<16x16xbf16>, vector<16x16xbf16>, vector<16x16xf32> -> vector<16x16xf32>
    %cst_6 = arith.constant dense<0.000000e+00> : vector<16xf32>
    %6 = vector.multi_reduction <add>, %5, %cst_6 [0] : vector<16x16xf32> to vector<16xf32>
    %7 = vector.shape_cast %6 : vector<16xf32> to vector<1x16xf32>
    %cst_7 = arith.constant 1.600000e+01 : f32
    %8 = vector.broadcast %cst_7 : f32 to vector<1x16xf32>
    %9 = arith.divf %7, %8 : vector<1x16xf32>
    %10 = vector.broadcast %9 : vector<1x16xf32> to vector<16x16xf32>
    %11 = arith.subf %3, %10 : vector<16x16xf32>
    %12 = arith.mulf %11, %11 : vector<16x16xf32>
    %cst_8 = arith.constant dense<0.000000e+00> : vector<16xf32>
    %13 = vector.multi_reduction <add>, %12, %cst_8 [0] : vector<16x16xf32> to vector<16xf32>
    %14 = vector.shape_cast %13 : vector<16xf32> to vector<1x16xf32>
    %cst_9 = arith.constant 1.600000e+01 : f32
    %15 = vector.broadcast %cst_9 : f32 to vector<1x16xf32>
    %16 = arith.divf %14, %15 : vector<1x16xf32>
    %c0_10 = arith.constant 0 : index
    %c0_11 = arith.constant 0 : index
    %17 = vector.load %arg3[%c0_10, %c0_11] : memref<16x16xf32, #tpu.memory_space<vmem>>, vector<16x16xf32>
    %cst_12 = arith.constant dense<0.000000e+00> : vector<1x16xf32>
    %18 = tpu.matmul %16, %17, %cst_12 {dimension_numbers = #tpu.dot_dimension_numbers<[1], [0], [0], [1], [0, 0, 1, 1], [], []>} : vector<1x16xf32>, vector<16x16xf32>, vector<1x16xf32> -> vector<1x16xf32>
    %c0_13 = arith.constant 0 : index
    %c0_14 = arith.constant 0 : index
    %19 = vector.load %arg4[%c0_13, %c0_14] : memref<1x16xf32, #tpu.memory_space<vmem>>, vector<1x16xf32>
    %cst_15 = arith.constant 9.99999974E-6 : f32
    %20 = vector.broadcast %cst_15 : f32 to vector<1x16xf32>
    %21 = arith.addf %18, %20 : vector<1x16xf32>
    %22 = math.rsqrt %21 : vector<1x16xf32>
    %23 = arith.mulf %19, %22 : vector<1x16xf32>
    %c0_16 = arith.constant 0 : index
    %c0_17 = arith.constant 0 : index
    %24 = vector.load %arg6[%c0_16, %c0_17] : memref<1x16xf32, #tpu.memory_space<vmem>>, vector<1x16xf32>
    tpu.vector_store %arg6[%c0_16, %c0_17], %23 {strides = array<i32>} : memref<1x16xf32, #tpu.memory_space<vmem>>, vector<1x16xf32>,
    %c0_18 = arith.constant 0 : index
    %c0_19 = arith.constant 0 : index
    %25 = vector.load %arg5[%c0_18, %c0_19] : memref<1x16xf32, #tpu.memory_space<vmem>>, vector<1x16xf32>
    %26 = arith.mulf %9, %23 : vector<1x16xf32>
    %27 = arith.subf %25, %26 : vector<1x16xf32>
    %c0_20 = arith.constant 0 : index
    %c0_21 = arith.constant 0 : index
    %28 = vector.load %arg7[%c0_20, %c0_21] : memref<1x16xf32, #tpu.memory_space<vmem>>, vector<1x16xf32>
    tpu.vector_store %arg7[%c0_20, %c0_21], %27 {strides = array<i32>} : memref<1x16xf32, #tpu.memory_space<vmem>>, vector<1x16xf32>,
    return
  }
}

module attributes {stable_mosaic.version = 11 : i64} {
  func.func @_quan4_main_kernel(%arg0: i32, %arg1: memref<16x16xf32, #tpu.memory_space<vmem>>, %arg2: memref<16x16xbf16, #tpu.memory_space<vmem>>, %arg3: memref<1x16xf32, #tpu.memory_space<vmem>>, %arg4: memref<1x16xf32, #tpu.memory_space<vmem>>, %arg5: memref<16x32xbf16, #tpu.memory_space<vmem>>, %arg6: memref<1x32xf32, #tpu.memory_space<vmem>>, %arg7: memref<16x32xbf16, #tpu.memory_space<vmem>>, %arg8: memref<1x32xf32, #tpu.memory_space<vmem>>, %arg9: memref<16x32xbf16, #tpu.memory_space<vmem>>, %arg10: memref<1x32xf32, #tpu.memory_space<vmem>>, %arg11: memref<32x32xbf16, #tpu.memory_space<vmem>>, %arg12: memref<1x32xf32, #tpu.memory_space<vmem>>, %arg13: memref<32x32xbf16, #tpu.memory_space<vmem>>, %arg14: memref<1x32xf32, #tpu.memory_space<vmem>>, %arg15: memref<32x32xbf16, #tpu.memory_space<vmem>>, %arg16: memref<1x32xf32, #tpu.memory_space<vmem>>, %arg17: memref<32x32xbf16, #tpu.memory_space<vmem>>, %arg18: memref<1x32xf32, #tpu.memory_space<vmem>>, %arg19: memref<32x32xbf16, #tpu.memory_space<vmem>>, %arg20: memref<1x32xf32, #tpu.memory_space<vmem>>, %arg21: memref<32x32xbf16, #tpu.memory_space<vmem>>, %arg22: memref<1x32xf32, #tpu.memory_space<vmem>>, %arg23: memref<32x32xbf16, #tpu.memory_space<vmem>>, %arg24: memref<1x32xf32, #tpu.memory_space<vmem>>, %arg25: memref<32x32xbf16, #tpu.memory_space<vmem>>, %arg26: memref<1x32xf32, #tpu.memory_space<vmem>>, %arg27: memref<32x32xbf16, #tpu.memory_space<vmem>>, %arg28: memref<1x32xf32, #tpu.memory_space<vmem>>, %arg29: memref<2x32xf32, #tpu.memory_space<vmem>>, %arg30: memref<64x32xf32, #tpu.memory_space<vmem>>, %arg31: memref<8x32xf32, #tpu.memory_space<vmem>>, %arg32: memref<64x16xf32, #tpu.memory_space<vmem>>, %arg33: memref<8x16xf32, #tpu.memory_space<vmem>>, %arg34: memref<32x128xbf16, #tpu.memory_space<vmem>>, %arg35: memref<1x128xf32, #tpu.memory_space<vmem>>, %arg36: memref<2x128xf32, #tpu.memory_space<vmem>>) attributes {dimension_semantics = [#tpu.dimension_semantics<parallel>], iteration_bounds = array<i64: 1>, scalar_prefetch = 0 : i64, scratch_operands = 0 : i64, tpu.core_type = #tpu.core_type<tc>, window_params = [{transform_indices = @transform_0, window_bounds = array<i64: 16, 16>}, {pipeline_mode = #tpu.pipeline_mode<synchronous>, transform_indices = @transform_1, window_bounds = array<i64: 16, 16>}, {pipeline_mode = #tpu.pipeline_mode<synchronous>, transform_indices = @transform_2, window_bounds = array<i64: 1, 16>}, {pipeline_mode = #tpu.pipeline_mode<synchronous>, transform_indices = @transform_3, window_bounds = array<i64: 1, 16>}, {pipeline_mode = #tpu.pipeline_mode<synchronous>, transform_indices = @transform_4, window_bounds = array<i64: 16, 32>}, {pipeline_mode = #tpu.pipeline_mode<synchronous>, transform_indices = @transform_5, window_bounds = array<i64: 1, 32>}, {pipeline_mode = #tpu.pipeline_mode<synchronous>, transform_indices = @transform_6, window_bounds = array<i64: 16, 32>}, {pipeline_mode = #tpu.pipeline_mode<synchronous>, transform_indices = @transform_7, window_bounds = array<i64: 1, 32>}, {pipeline_mode = #tpu.pipeline_mode<synchronous>, transform_indices = @transform_8, window_bounds = array<i64: 16, 32>}, {pipeline_mode = #tpu.pipeline_mode<synchronous>, transform_indices = @transform_9, window_bounds = array<i64: 1, 32>}, {pipeline_mode = #tpu.pipeline_mode<synchronous>, transform_indices = @transform_10, window_bounds = array<i64: 32, 32>}, {pipeline_mode = #tpu.pipeline_mode<synchronous>, transform_indices = @transform_11, window_bounds = array<i64: 1, 32>}, {pipeline_mode = #tpu.pipeline_mode<synchronous>, transform_indices = @transform_12, window_bounds = array<i64: 32, 32>}, {pipeline_mode = #tpu.pipeline_mode<synchronous>, transform_indices = @transform_13, window_bounds = array<i64: 1, 32>}, {pipeline_mode = #tpu.pipeline_mode<synchronous>, transform_indices = @transform_14, window_bounds = array<i64: 32, 32>}, {pipeline_mode = #tpu.pipeline_mode<synchronous>, transform_indices = @transform_15, window_bounds = array<i64: 1, 32>}, {pipeline_mode = #tpu.pipeline_mode<synchronous>, transform_indices = @transform_16, window_bounds = array<i64: 32, 32>}, {pipeline_mode = #tpu.pipeline_mode<synchronous>, transform_indices = @transform_17, window_bounds = array<i64: 1, 32>}, {pipeline_mode = #tpu.pipeline_mode<synchronous>, transform_indices = @transform_18, window_bounds = array<i64: 32, 32>}, {pipeline_mode = #tpu.pipeline_mode<synchronous>, transform_indices = @transform_19, window_bounds = array<i64: 1, 32>}, {pipeline_mode = #tpu.pipeline_mode<synchronous>, transform_indices = @transform_20, window_bounds = array<i64: 32, 32>}, {pipeline_mode = #tpu.pipeline_mode<synchronous>, transform_indices = @transform_21, window_bounds = array<i64: 1, 32>}, {pipeline_mode = #tpu.pipeline_mode<synchronous>, transform_indices = @transform_22, window_bounds = array<i64: 32, 32>}, {pipeline_mode = #tpu.pipeline_mode<synchronous>, transform_indices = @transform_23, window_bounds = array<i64: 1, 32>}, {pipeline_mode = #tpu.pipeline_mode<synchronous>, transform_indices = @transform_24, window_bounds = array<i64: 32, 32>}, {pipeline_mode = #tpu.pipeline_mode<synchronous>, transform_indices = @transform_25, window_bounds = array<i64: 1, 32>}, {pipeline_mode = #tpu.pipeline_mode<synchronous>, transform_indices = @transform_26, window_bounds = array<i64: 32, 32>}, {pipeline_mode = #tpu.pipeline_mode<synchronous>, transform_indices = @transform_27, window_bounds = array<i64: 1, 32>}, {transform_indices = @transform_28, window_bounds = array<i64: 2, 32>}, {pipeline_mode = #tpu.pipeline_mode<synchronous>, transform_indices = @transform_29, window_bounds = array<i64: 64, 32>}, {pipeline_mode = #tpu.pipeline_mode<synchronous>, transform_indices = @transform_30, window_bounds = array<i64: 8, 32>}, {pipeline_mode = #tpu.pipeline_mode<synchronous>, transform_indices = @transform_31, window_bounds = array<i64: 64, 16>}, {pipeline_mode = #tpu.pipeline_mode<synchronous>, transform_indices = @transform_32, window_bounds = array<i64: 8, 16>}, {pipeline_mode = #tpu.pipeline_mode<synchronous>, transform_indices = @transform_33, window_bounds = array<i64: 32, 128>}, {pipeline_mode = #tpu.pipeline_mode<synchronous>, transform_indices = @transform_34, window_bounds = array<i64: 1, 128>}, {transform_indices = @transform_35, window_bounds = array<i64: 2, 128>}]} {
    %c0 = arith.constant 0 : index
    %c0_0 = arith.constant 0 : index
    %0 = vector.load %arg1[%c0, %c0_0] : memref<16x16xf32, #tpu.memory_space<vmem>>, vector<16x16xf32>
    %1 = arith.truncf %0 : vector<16x16xf32> to vector<16x16xbf16>
    %c0_1 = arith.constant 0 : index
    %c0_2 = arith.constant 0 : index
    %2 = vector.load %arg2[%c0_1, %c0_2] : memref<16x16xbf16, #tpu.memory_space<vmem>>, vector<16x16xbf16>
    %cst = arith.constant dense<0.000000e+00> : vector<16x16xf32>
    %3 = tpu.matmul %1, %2, %cst {dimension_numbers = #tpu.dot_dimension_numbers<[1], [0], [0], [1], [0, 0, 1, 1], [], []>} : vector<16x16xbf16>, vector<16x16xbf16>, vector<16x16xf32> -> vector<16x16xf32>
    %c0_3 = arith.constant 0 : index
    %c0_4 = arith.constant 0 : index
    %4 = vector.load %arg3[%c0_3, %c0_4] : memref<1x16xf32, #tpu.memory_space<vmem>>, vector<1x16xf32>
    %5 = vector.broadcast %4 : vector<1x16xf32> to vector<16x16xf32>
    %6 = arith.mulf %3, %5 : vector<16x16xf32>
    %c0_5 = arith.constant 0 : index
    %c0_6 = arith.constant 0 : index
    %7 = vector.load %arg4[%c0_5, %c0_6] : memref<1x16xf32, #tpu.memory_space<vmem>>, vector<1x16xf32>
    %8 = vector.broadcast %7 : vector<1x16xf32> to vector<16x16xf32>
    %9 = arith.addf %6, %8 : vector<16x16xf32>
    %c0_7 = arith.constant 0 : index
    %c0_8 = arith.constant 0 : index
    %10 = vector.load %arg30[%c0_7, %c0_8] : memref<64x32xf32, #tpu.memory_space<vmem>>, vector<64x32xf32>
    %c0_9 = arith.constant 0 : index
    %c0_10 = arith.constant 0 : index
    %11 = vector.load %arg32[%c0_9, %c0_10] : memref<64x16xf32, #tpu.memory_space<vmem>>, vector<64x16xf32>
    %c0_11 = arith.constant 0 : index
    %c0_12 = arith.constant 0 : index
    %12 = vector.load %arg31[%c0_11, %c0_12] : memref<8x32xf32, #tpu.memory_space<vmem>>, vector<8x32xf32>
    %c0_13 = arith.constant 0 : index
    %c0_14 = arith.constant 0 : index
    %13 = vector.load %arg33[%c0_13, %c0_14] : memref<8x16xf32, #tpu.memory_space<vmem>>, vector<8x16xf32>
    %14 = arith.truncf %9 : vector<16x16xf32> to vector<16x16xbf16>
    %c0_15 = arith.constant 0 : index
    %c0_16 = arith.constant 0 : index
    %15 = vector.load %arg5[%c0_15, %c0_16] : memref<16x32xbf16, #tpu.memory_space<vmem>>, vector<16x32xbf16>
    %cst_17 = arith.constant dense<0.000000e+00> : vector<16x32xf32>
    %16 = tpu.matmul %14, %15, %cst_17 {dimension_numbers = #tpu.dot_dimension_numbers<[1], [0], [0], [1], [0, 0, 1, 1], [], []>} : vector<16x16xbf16>, vector<16x32xbf16>, vector<16x32xf32> -> vector<16x32xf32>
    %c0_18 = arith.constant 0 : index
    %c0_19 = arith.constant 0 : index
    %17 = vector.load %arg6[%c0_18, %c0_19] : memref<1x32xf32, #tpu.memory_space<vmem>>, vector<1x32xf32>
    %18 = vector.broadcast %17 : vector<1x32xf32> to vector<16x32xf32>
    %19 = arith.addf %16, %18 : vector<16x32xf32>
    %20 = arith.truncf %9 : vector<16x16xf32> to vector<16x16xbf16>
    %c0_20 = arith.constant 0 : index
    %c0_21 = arith.constant 0 : index
    %21 = vector.load %arg7[%c0_20, %c0_21] : memref<16x32xbf16, #tpu.memory_space<vmem>>, vector<16x32xbf16>
    %cst_22 = arith.constant dense<0.000000e+00> : vector<16x32xf32>
    %22 = tpu.matmul %20, %21, %cst_22 {dimension_numbers = #tpu.dot_dimension_numbers<[1], [0], [0], [1], [0, 0, 1, 1], [], []>} : vector<16x16xbf16>, vector<16x32xbf16>, vector<16x32xf32> -> vector<16x32xf32>
    %c0_23 = arith.constant 0 : index
    %c0_24 = arith.constant 0 : index
    %23 = vector.load %arg8[%c0_23, %c0_24] : memref<1x32xf32, #tpu.memory_space<vmem>>, vector<1x32xf32>
    %24 = vector.broadcast %23 : vector<1x32xf32> to vector<16x32xf32>
    %25 = arith.addf %22, %24 : vector<16x32xf32>
    %26 = arith.truncf %9 : vector<16x16xf32> to vector<16x16xbf16>
    %c0_25 = arith.constant 0 : index
    %c0_26 = arith.constant 0 : index
    %27 = vector.load %arg9[%c0_25, %c0_26] : memref<16x32xbf16, #tpu.memory_space<vmem>>, vector<16x32xbf16>
    %cst_27 = arith.constant dense<0.000000e+00> : vector<16x32xf32>
    %28 = tpu.matmul %26, %27, %cst_27 {dimension_numbers = #tpu.dot_dimension_numbers<[1], [0], [0], [1], [0, 0, 1, 1], [], []>} : vector<16x16xbf16>, vector<16x32xbf16>, vector<16x32xf32> -> vector<16x32xf32>
    %c0_28 = arith.constant 0 : index
    %c0_29 = arith.constant 0 : index
    %29 = vector.load %arg10[%c0_28, %c0_29] : memref<1x32xf32, #tpu.memory_space<vmem>>, vector<1x32xf32>
    %30 = vector.broadcast %29 : vector<1x32xf32> to vector<16x32xf32>
    %31 = arith.addf %28, %30 : vector<16x32xf32>
    %32 = tpu.concatenate %19, %19, %19, %19 in 0 : vector<16x32xf32>, vector<16x32xf32>, vector<16x32xf32>, vector<16x32xf32> -> vector<64x32xf32>
    %33 = arith.mulf %32, %10 : vector<64x32xf32>
    %34 = arith.truncf %33 : vector<64x32xf32> to vector<64x32xbf16>
    %35 = arith.truncf %25 : vector<16x32xf32> to vector<16x32xbf16>
    %cst_30 = arith.constant dense<0.000000e+00> : vector<64x16xf32>
    %36 = tpu.matmul %34, %35, %cst_30 {dimension_numbers = #tpu.dot_dimension_numbers<[1], [1], [0], [0], [0, 0, 1, 0], [], []>} : vector<64x32xbf16>, vector<16x32xbf16>, vector<64x16xf32> -> vector<64x16xf32>
    %cst_31 = arith.constant 0.176776692 : f32
    %37 = vector.broadcast %cst_31 : f32 to vector<64x16xf32>
    %38 = arith.mulf %36, %37 : vector<64x16xf32>
    %39 = arith.addf %38, %11 : vector<64x16xf32>
    %cst_32 = arith.constant dense<0xFF800000> : vector<64xf32>
    %40 = vector.multi_reduction <maximumf>, %39, %cst_32 [1] : vector<64x16xf32> to vector<64xf32>
    %41 = vector.shape_cast %40 : vector<64xf32> to vector<64x1xf32>
    %42 = vector.broadcast %41 : vector<64x1xf32> to vector<64x16xf32>
    %43 = arith.subf %39, %42 : vector<64x16xf32>
    %44 = math.exp %43 : vector<64x16xf32>
    %cst_33 = arith.constant dense<0.000000e+00> : vector<64xf32>
    %45 = vector.multi_reduction <add>, %44, %cst_33 [1] : vector<64x16xf32> to vector<64xf32>
    %46 = vector.shape_cast %45 : vector<64xf32> to vector<64x1xf32>
    %cst_34 = arith.constant 1.000000e+00 : f32
    %47 = vector.broadcast %cst_34 : f32 to vector<64x1xf32>
    %48 = arith.divf %47, %46 : vector<64x1xf32>
    %49 = vector.broadcast %48 : vector<64x1xf32> to vector<64x16xf32>
    %50 = arith.mulf %44, %49 : vector<64x16xf32>
    %51 = arith.truncf %50 : vector<64x16xf32> to vector<64x16xbf16>
    %52 = arith.truncf %31 : vector<16x32xf32> to vector<16x32xbf16>
    %cst_35 = arith.constant dense<0.000000e+00> : vector<64x32xf32>
    %53 = tpu.matmul %51, %52, %cst_35 {dimension_numbers = #tpu.dot_dimension_numbers<[1], [0], [0], [1], [0, 0, 1, 1], [], []>} : vector<64x16xbf16>, vector<16x32xbf16>, vector<64x32xf32> -> vector<64x32xf32>
    %54 = arith.mulf %53, %10 : vector<64x32xf32>
    %55 = vector.extract_strided_slice %54 {offsets = [0, 0], sizes = [16, 32], strides = [1, 1]} : vector<64x32xf32> to vector<16x32xf32>
    %56 = vector.extract_strided_slice %54 {offsets = [16, 0], sizes = [16, 32], strides = [1, 1]} : vector<64x32xf32> to vector<16x32xf32>
    %57 = arith.addf %55, %56 : vector<16x32xf32>
    %58 = vector.extract_strided_slice %54 {offsets = [32, 0], sizes = [16, 32], strides = [1, 1]} : vector<64x32xf32> to vector<16x32xf32>
    %59 = arith.addf %57, %58 : vector<16x32xf32>
    %60 = vector.extract_strided_slice %54 {offsets = [48, 0], sizes = [16, 32], strides = [1, 1]} : vector<64x32xf32> to vector<16x32xf32>
    %61 = arith.addf %59, %60 : vector<16x32xf32>
    %62 = arith.addf %19, %61 : vector<16x32xf32>
    %cst_36 = arith.constant dense<0.000000e+00> : vector<16xf32>
    %63 = vector.multi_reduction <add>, %62, %cst_36 [1] : vector<16x32xf32> to vector<16xf32>
    %64 = vector.shape_cast %63 : vector<16xf32> to vector<16x1xf32>
    %cst_37 = arith.constant 3.200000e+01 : f32
    %65 = vector.broadcast %cst_37 : f32 to vector<16x1xf32>
    %66 = arith.divf %64, %65 : vector<16x1xf32>
    %67 = vector.broadcast %66 : vector<16x1xf32> to vector<16x32xf32>
    %68 = arith.subf %62, %67 : vector<16x32xf32>
    %69 = vector.broadcast %66 : vector<16x1xf32> to vector<16x32xf32>
    %70 = arith.subf %62, %69 : vector<16x32xf32>
    %71 = arith.mulf %68, %70 : vector<16x32xf32>
    %cst_38 = arith.constant dense<0.000000e+00> : vector<16xf32>
    %72 = vector.multi_reduction <add>, %71, %cst_38 [1] : vector<16x32xf32> to vector<16xf32>
    %73 = vector.shape_cast %72 : vector<16xf32> to vector<16x1xf32>
    %cst_39 = arith.constant 3.200000e+01 : f32
    %74 = vector.broadcast %cst_39 : f32 to vector<16x1xf32>
    %75 = arith.divf %73, %74 : vector<16x1xf32>
    %76 = vector.broadcast %66 : vector<16x1xf32> to vector<16x32xf32>
    %77 = arith.subf %62, %76 : vector<16x32xf32>
    %cst_40 = arith.constant 9.99999974E-6 : f32
    %78 = vector.broadcast %cst_40 : f32 to vector<16x1xf32>
    %79 = arith.addf %75, %78 : vector<16x1xf32>
    %80 = math.rsqrt %79 : vector<16x1xf32>
    %81 = vector.broadcast %80 : vector<16x1xf32> to vector<16x32xf32>
    %82 = arith.mulf %77, %81 : vector<16x32xf32>
    %83 = arith.truncf %82 : vector<16x32xf32> to vector<16x32xbf16>
    %c0_41 = arith.constant 0 : index
    %c0_42 = arith.constant 0 : index
    %84 = vector.load %arg11[%c0_41, %c0_42] : memref<32x32xbf16, #tpu.memory_space<vmem>>, vector<32x32xbf16>
    %cst_43 = arith.constant dense<0.000000e+00> : vector<16x32xf32>
    %85 = tpu.matmul %83, %84, %cst_43 {dimension_numbers = #tpu.dot_dimension_numbers<[1], [0], [0], [1], [0, 0, 1, 1], [], []>} : vector<16x32xbf16>, vector<32x32xbf16>, vector<16x32xf32> -> vector<16x32xf32>
    %c0_44 = arith.constant 0 : index
    %c0_45 = arith.constant 0 : index
    %86 = vector.load %arg12[%c0_44, %c0_45] : memref<1x32xf32, #tpu.memory_space<vmem>>, vector<1x32xf32>
    %87 = vector.broadcast %86 : vector<1x32xf32> to vector<16x32xf32>
    %88 = arith.addf %85, %87 : vector<16x32xf32>
    %cst_46 = arith.constant 0.000000e+00 : f32
    %89 = vector.broadcast %cst_46 : f32 to vector<16x32xf32>
    %90 = arith.subf %89, %88 : vector<16x32xf32>
    %91 = math.exp %90 : vector<16x32xf32>
    %cst_47 = arith.constant 1.000000e+00 : f32
    %92 = vector.broadcast %cst_47 : f32 to vector<16x32xf32>
    %93 = arith.addf %92, %91 : vector<16x32xf32>
    %cst_48 = arith.constant 1.000000e+00 : f32
    %94 = vector.broadcast %cst_48 : f32 to vector<16x32xf32>
    %95 = arith.divf %94, %93 : vector<16x32xf32>
    %96 = arith.addf %82, %95 : vector<16x32xf32>
    %cst_49 = arith.constant dense<0.000000e+00> : vector<16xf32>
    %97 = vector.multi_reduction <add>, %96, %cst_49 [1] : vector<16x32xf32> to vector<16xf32>
    %98 = vector.shape_cast %97 : vector<16xf32> to vector<16x1xf32>
    %cst_50 = arith.constant 3.200000e+01 : f32
    %99 = vector.broadcast %cst_50 : f32 to vector<16x1xf32>
    %100 = arith.divf %98, %99 : vector<16x1xf32>
    %101 = vector.broadcast %100 : vector<16x1xf32> to vector<16x32xf32>
    %102 = arith.subf %96, %101 : vector<16x32xf32>
    %103 = vector.broadcast %100 : vector<16x1xf32> to vector<16x32xf32>
    %104 = arith.subf %96, %103 : vector<16x32xf32>
    %105 = arith.mulf %102, %104 : vector<16x32xf32>
    %cst_51 = arith.constant dense<0.000000e+00> : vector<16xf32>
    %106 = vector.multi_reduction <add>, %105, %cst_51 [1] : vector<16x32xf32> to vector<16xf32>
    %107 = vector.shape_cast %106 : vector<16xf32> to vector<16x1xf32>
    %cst_52 = arith.constant 3.200000e+01 : f32
    %108 = vector.broadcast %cst_52 : f32 to vector<16x1xf32>
    %109 = arith.divf %107, %108 : vector<16x1xf32>
    %110 = vector.broadcast %100 : vector<16x1xf32> to vector<16x32xf32>
    %111 = arith.subf %96, %110 : vector<16x32xf32>
    %cst_53 = arith.constant 9.99999974E-6 : f32
    %112 = vector.broadcast %cst_53 : f32 to vector<16x1xf32>
    %113 = arith.addf %109, %112 : vector<16x1xf32>
    %114 = math.rsqrt %113 : vector<16x1xf32>
    %115 = vector.broadcast %114 : vector<16x1xf32> to vector<16x32xf32>
    %116 = arith.mulf %111, %115 : vector<16x32xf32>
    %117 = arith.truncf %116 : vector<16x32xf32> to vector<16x32xbf16>
    %c0_54 = arith.constant 0 : index
    %c0_55 = arith.constant 0 : index
    %118 = vector.load %arg13[%c0_54, %c0_55] : memref<32x32xbf16, #tpu.memory_space<vmem>>, vector<32x32xbf16>
    %cst_56 = arith.constant dense<0.000000e+00> : vector<16x32xf32>
    %119 = tpu.matmul %117, %118, %cst_56 {dimension_numbers = #tpu.dot_dimension_numbers<[1], [0], [0], [1], [0, 0, 1, 1], [], []>} : vector<16x32xbf16>, vector<32x32xbf16>, vector<16x32xf32> -> vector<16x32xf32>
    %c0_57 = arith.constant 0 : index
    %c0_58 = arith.constant 0 : index
    %120 = vector.load %arg14[%c0_57, %c0_58] : memref<1x32xf32, #tpu.memory_space<vmem>>, vector<1x32xf32>
    %121 = vector.broadcast %120 : vector<1x32xf32> to vector<16x32xf32>
    %122 = arith.addf %119, %121 : vector<16x32xf32>
    %123 = arith.truncf %116 : vector<16x32xf32> to vector<16x32xbf16>
    %c0_59 = arith.constant 0 : index
    %c0_60 = arith.constant 0 : index
    %124 = vector.load %arg15[%c0_59, %c0_60] : memref<32x32xbf16, #tpu.memory_space<vmem>>, vector<32x32xbf16>
    %cst_61 = arith.constant dense<0.000000e+00> : vector<16x32xf32>
    %125 = tpu.matmul %123, %124, %cst_61 {dimension_numbers = #tpu.dot_dimension_numbers<[1], [0], [0], [1], [0, 0, 1, 1], [], []>} : vector<16x32xbf16>, vector<32x32xbf16>, vector<16x32xf32> -> vector<16x32xf32>
    %c0_62 = arith.constant 0 : index
    %c0_63 = arith.constant 0 : index
    %126 = vector.load %arg16[%c0_62, %c0_63] : memref<1x32xf32, #tpu.memory_space<vmem>>, vector<1x32xf32>
    %127 = vector.broadcast %126 : vector<1x32xf32> to vector<16x32xf32>
    %128 = arith.addf %125, %127 : vector<16x32xf32>
    %129 = arith.truncf %116 : vector<16x32xf32> to vector<16x32xbf16>
    %c0_64 = arith.constant 0 : index
    %c0_65 = arith.constant 0 : index
    %130 = vector.load %arg17[%c0_64, %c0_65] : memref<32x32xbf16, #tpu.memory_space<vmem>>, vector<32x32xbf16>
    %cst_66 = arith.constant dense<0.000000e+00> : vector<16x32xf32>
    %131 = tpu.matmul %129, %130, %cst_66 {dimension_numbers = #tpu.dot_dimension_numbers<[1], [0], [0], [1], [0, 0, 1, 1], [], []>} : vector<16x32xbf16>, vector<32x32xbf16>, vector<16x32xf32> -> vector<16x32xf32>
    %c0_67 = arith.constant 0 : index
    %c0_68 = arith.constant 0 : index
    %132 = vector.load %arg18[%c0_67, %c0_68] : memref<1x32xf32, #tpu.memory_space<vmem>>, vector<1x32xf32>
    %133 = vector.broadcast %132 : vector<1x32xf32> to vector<16x32xf32>
    %134 = arith.addf %131, %133 : vector<16x32xf32>
    %135 = tpu.concatenate %122, %122, %122, %122 in 0 : vector<16x32xf32>, vector<16x32xf32>, vector<16x32xf32>, vector<16x32xf32> -> vector<64x32xf32>
    %136 = arith.mulf %135, %10 : vector<64x32xf32>
    %137 = arith.truncf %136 : vector<64x32xf32> to vector<64x32xbf16>
    %138 = arith.truncf %128 : vector<16x32xf32> to vector<16x32xbf16>
    %cst_69 = arith.constant dense<0.000000e+00> : vector<64x16xf32>
    %139 = tpu.matmul %137, %138, %cst_69 {dimension_numbers = #tpu.dot_dimension_numbers<[1], [1], [0], [0], [0, 0, 1, 0], [], []>} : vector<64x32xbf16>, vector<16x32xbf16>, vector<64x16xf32> -> vector<64x16xf32>
    %cst_70 = arith.constant 0.176776692 : f32
    %140 = vector.broadcast %cst_70 : f32 to vector<64x16xf32>
    %141 = arith.mulf %139, %140 : vector<64x16xf32>
    %142 = arith.addf %141, %11 : vector<64x16xf32>
    %cst_71 = arith.constant dense<0xFF800000> : vector<64xf32>
    %143 = vector.multi_reduction <maximumf>, %142, %cst_71 [1] : vector<64x16xf32> to vector<64xf32>
    %144 = vector.shape_cast %143 : vector<64xf32> to vector<64x1xf32>
    %145 = vector.broadcast %144 : vector<64x1xf32> to vector<64x16xf32>
    %146 = arith.subf %142, %145 : vector<64x16xf32>
    %147 = math.exp %146 : vector<64x16xf32>
    %cst_72 = arith.constant dense<0.000000e+00> : vector<64xf32>
    %148 = vector.multi_reduction <add>, %147, %cst_72 [1] : vector<64x16xf32> to vector<64xf32>
    %149 = vector.shape_cast %148 : vector<64xf32> to vector<64x1xf32>
    %cst_73 = arith.constant 1.000000e+00 : f32
    %150 = vector.broadcast %cst_73 : f32 to vector<64x1xf32>
    %151 = arith.divf %150, %149 : vector<64x1xf32>
    %152 = vector.broadcast %151 : vector<64x1xf32> to vector<64x16xf32>
    %153 = arith.mulf %147, %152 : vector<64x16xf32>
    %154 = arith.truncf %153 : vector<64x16xf32> to vector<64x16xbf16>
    %155 = arith.truncf %134 : vector<16x32xf32> to vector<16x32xbf16>
    %cst_74 = arith.constant dense<0.000000e+00> : vector<64x32xf32>
    %156 = tpu.matmul %154, %155, %cst_74 {dimension_numbers = #tpu.dot_dimension_numbers<[1], [0], [0], [1], [0, 0, 1, 1], [], []>} : vector<64x16xbf16>, vector<16x32xbf16>, vector<64x32xf32> -> vector<64x32xf32>
    %157 = arith.mulf %156, %10 : vector<64x32xf32>
    %158 = vector.extract_strided_slice %157 {offsets = [0, 0], sizes = [16, 32], strides = [1, 1]} : vector<64x32xf32> to vector<16x32xf32>
    %159 = vector.extract_strided_slice %157 {offsets = [16, 0], sizes = [16, 32], strides = [1, 1]} : vector<64x32xf32> to vector<16x32xf32>
    %160 = arith.addf %158, %159 : vector<16x32xf32>
    %161 = vector.extract_strided_slice %157 {offsets = [32, 0], sizes = [16, 32], strides = [1, 1]} : vector<64x32xf32> to vector<16x32xf32>
    %162 = arith.addf %160, %161 : vector<16x32xf32>
    %163 = vector.extract_strided_slice %157 {offsets = [48, 0], sizes = [16, 32], strides = [1, 1]} : vector<64x32xf32> to vector<16x32xf32>
    %164 = arith.addf %162, %163 : vector<16x32xf32>
    %165 = arith.addf %122, %164 : vector<16x32xf32>
    %cst_75 = arith.constant dense<0.000000e+00> : vector<16xf32>
    %166 = vector.multi_reduction <add>, %165, %cst_75 [1] : vector<16x32xf32> to vector<16xf32>
    %167 = vector.shape_cast %166 : vector<16xf32> to vector<16x1xf32>
    %cst_76 = arith.constant 3.200000e+01 : f32
    %168 = vector.broadcast %cst_76 : f32 to vector<16x1xf32>
    %169 = arith.divf %167, %168 : vector<16x1xf32>
    %170 = vector.broadcast %169 : vector<16x1xf32> to vector<16x32xf32>
    %171 = arith.subf %165, %170 : vector<16x32xf32>
    %172 = vector.broadcast %169 : vector<16x1xf32> to vector<16x32xf32>
    %173 = arith.subf %165, %172 : vector<16x32xf32>
    %174 = arith.mulf %171, %173 : vector<16x32xf32>
    %cst_77 = arith.constant dense<0.000000e+00> : vector<16xf32>
    %175 = vector.multi_reduction <add>, %174, %cst_77 [1] : vector<16x32xf32> to vector<16xf32>
    %176 = vector.shape_cast %175 : vector<16xf32> to vector<16x1xf32>
    %cst_78 = arith.constant 3.200000e+01 : f32
    %177 = vector.broadcast %cst_78 : f32 to vector<16x1xf32>
    %178 = arith.divf %176, %177 : vector<16x1xf32>
    %179 = vector.broadcast %169 : vector<16x1xf32> to vector<16x32xf32>
    %180 = arith.subf %165, %179 : vector<16x32xf32>
    %cst_79 = arith.constant 9.99999974E-6 : f32
    %181 = vector.broadcast %cst_79 : f32 to vector<16x1xf32>
    %182 = arith.addf %178, %181 : vector<16x1xf32>
    %183 = math.rsqrt %182 : vector<16x1xf32>
    %184 = vector.broadcast %183 : vector<16x1xf32> to vector<16x32xf32>
    %185 = arith.mulf %180, %184 : vector<16x32xf32>
    %186 = arith.truncf %185 : vector<16x32xf32> to vector<16x32xbf16>
    %c0_80 = arith.constant 0 : index
    %c0_81 = arith.constant 0 : index
    %187 = vector.load %arg19[%c0_80, %c0_81] : memref<32x32xbf16, #tpu.memory_space<vmem>>, vector<32x32xbf16>
    %cst_82 = arith.constant dense<0.000000e+00> : vector<16x32xf32>
    %188 = tpu.matmul %186, %187, %cst_82 {dimension_numbers = #tpu.dot_dimension_numbers<[1], [0], [0], [1], [0, 0, 1, 1], [], []>} : vector<16x32xbf16>, vector<32x32xbf16>, vector<16x32xf32> -> vector<16x32xf32>
    %c0_83 = arith.constant 0 : index
    %c0_84 = arith.constant 0 : index
    %189 = vector.load %arg20[%c0_83, %c0_84] : memref<1x32xf32, #tpu.memory_space<vmem>>, vector<1x32xf32>
    %190 = vector.broadcast %189 : vector<1x32xf32> to vector<16x32xf32>
    %191 = arith.addf %188, %190 : vector<16x32xf32>
    %cst_85 = arith.constant 0.000000e+00 : f32
    %192 = vector.broadcast %cst_85 : f32 to vector<16x32xf32>
    %193 = arith.subf %192, %191 : vector<16x32xf32>
    %194 = math.exp %193 : vector<16x32xf32>
    %cst_86 = arith.constant 1.000000e+00 : f32
    %195 = vector.broadcast %cst_86 : f32 to vector<16x32xf32>
    %196 = arith.addf %195, %194 : vector<16x32xf32>
    %cst_87 = arith.constant 1.000000e+00 : f32
    %197 = vector.broadcast %cst_87 : f32 to vector<16x32xf32>
    %198 = arith.divf %197, %196 : vector<16x32xf32>
    %199 = arith.addf %185, %198 : vector<16x32xf32>
    %cst_88 = arith.constant dense<0.000000e+00> : vector<16xf32>
    %200 = vector.multi_reduction <add>, %199, %cst_88 [1] : vector<16x32xf32> to vector<16xf32>
    %201 = vector.shape_cast %200 : vector<16xf32> to vector<16x1xf32>
    %cst_89 = arith.constant 3.200000e+01 : f32
    %202 = vector.broadcast %cst_89 : f32 to vector<16x1xf32>
    %203 = arith.divf %201, %202 : vector<16x1xf32>
    %204 = vector.broadcast %203 : vector<16x1xf32> to vector<16x32xf32>
    %205 = arith.subf %199, %204 : vector<16x32xf32>
    %206 = vector.broadcast %203 : vector<16x1xf32> to vector<16x32xf32>
    %207 = arith.subf %199, %206 : vector<16x32xf32>
    %208 = arith.mulf %205, %207 : vector<16x32xf32>
    %cst_90 = arith.constant dense<0.000000e+00> : vector<16xf32>
    %209 = vector.multi_reduction <add>, %208, %cst_90 [1] : vector<16x32xf32> to vector<16xf32>
    %210 = vector.shape_cast %209 : vector<16xf32> to vector<16x1xf32>
    %cst_91 = arith.constant 3.200000e+01 : f32
    %211 = vector.broadcast %cst_91 : f32 to vector<16x1xf32>
    %212 = arith.divf %210, %211 : vector<16x1xf32>
    %213 = vector.broadcast %203 : vector<16x1xf32> to vector<16x32xf32>
    %214 = arith.subf %199, %213 : vector<16x32xf32>
    %cst_92 = arith.constant 9.99999974E-6 : f32
    %215 = vector.broadcast %cst_92 : f32 to vector<16x1xf32>
    %216 = arith.addf %212, %215 : vector<16x1xf32>
    %217 = math.rsqrt %216 : vector<16x1xf32>
    %218 = vector.broadcast %217 : vector<16x1xf32> to vector<16x32xf32>
    %219 = arith.mulf %214, %218 : vector<16x32xf32>
    %cst_93 = arith.constant 0.000000e+00 : f32
    %220 = vector.broadcast %cst_93 : f32 to vector<16x32xf32>
    %221 = arith.subf %220, %219 : vector<16x32xf32>
    %222 = math.exp %221 : vector<16x32xf32>
    %cst_94 = arith.constant 1.000000e+00 : f32
    %223 = vector.broadcast %cst_94 : f32 to vector<16x32xf32>
    %224 = arith.addf %223, %222 : vector<16x32xf32>
    %cst_95 = arith.constant 1.000000e+00 : f32
    %225 = vector.broadcast %cst_95 : f32 to vector<16x32xf32>
    %226 = arith.divf %225, %224 : vector<16x32xf32>
    %c0_96 = arith.constant 0 : index
    %c0_97 = arith.constant 0 : index
    %227 = vector.load %arg29[%c0_96, %c0_97] : memref<2x32xf32, #tpu.memory_space<vmem>>, vector<2x32xf32>
    %228 = arith.truncf %227 : vector<2x32xf32> to vector<2x32xbf16>
    %c0_98 = arith.constant 0 : index
    %c0_99 = arith.constant 0 : index
    %229 = vector.load %arg21[%c0_98, %c0_99] : memref<32x32xbf16, #tpu.memory_space<vmem>>, vector<32x32xbf16>
    %cst_100 = arith.constant dense<0.000000e+00> : vector<2x32xf32>
    %230 = tpu.matmul %228, %229, %cst_100 {dimension_numbers = #tpu.dot_dimension_numbers<[1], [0], [0], [1], [0, 0, 1, 1], [], []>} : vector<2x32xbf16>, vector<32x32xbf16>, vector<2x32xf32> -> vector<2x32xf32>
    %c0_101 = arith.constant 0 : index
    %c0_102 = arith.constant 0 : index
    %231 = vector.load %arg22[%c0_101, %c0_102] : memref<1x32xf32, #tpu.memory_space<vmem>>, vector<1x32xf32>
    %232 = vector.broadcast %231 : vector<1x32xf32> to vector<2x32xf32>
    %233 = arith.addf %230, %232 : vector<2x32xf32>
    %234 = arith.truncf %226 : vector<16x32xf32> to vector<16x32xbf16>
    %c0_103 = arith.constant 0 : index
    %c0_104 = arith.constant 0 : index
    %235 = vector.load %arg23[%c0_103, %c0_104] : memref<32x32xbf16, #tpu.memory_space<vmem>>, vector<32x32xbf16>
    %cst_105 = arith.constant dense<0.000000e+00> : vector<16x32xf32>
    %236 = tpu.matmul %234, %235, %cst_105 {dimension_numbers = #tpu.dot_dimension_numbers<[1], [0], [0], [1], [0, 0, 1, 1], [], []>} : vector<16x32xbf16>, vector<32x32xbf16>, vector<16x32xf32> -> vector<16x32xf32>
    %c0_106 = arith.constant 0 : index
    %c0_107 = arith.constant 0 : index
    %237 = vector.load %arg24[%c0_106, %c0_107] : memref<1x32xf32, #tpu.memory_space<vmem>>, vector<1x32xf32>
    %238 = vector.broadcast %237 : vector<1x32xf32> to vector<16x32xf32>
    %239 = arith.addf %236, %238 : vector<16x32xf32>
    %240 = arith.truncf %226 : vector<16x32xf32> to vector<16x32xbf16>
    %c0_108 = arith.constant 0 : index
    %c0_109 = arith.constant 0 : index
    %241 = vector.load %arg25[%c0_108, %c0_109] : memref<32x32xbf16, #tpu.memory_space<vmem>>, vector<32x32xbf16>
    %cst_110 = arith.constant dense<0.000000e+00> : vector<16x32xf32>
    %242 = tpu.matmul %240, %241, %cst_110 {dimension_numbers = #tpu.dot_dimension_numbers<[1], [0], [0], [1], [0, 0, 1, 1], [], []>} : vector<16x32xbf16>, vector<32x32xbf16>, vector<16x32xf32> -> vector<16x32xf32>
    %c0_111 = arith.constant 0 : index
    %c0_112 = arith.constant 0 : index
    %243 = vector.load %arg26[%c0_111, %c0_112] : memref<1x32xf32, #tpu.memory_space<vmem>>, vector<1x32xf32>
    %244 = vector.broadcast %243 : vector<1x32xf32> to vector<16x32xf32>
    %245 = arith.addf %242, %244 : vector<16x32xf32>
    %246 = tpu.concatenate %233, %233, %233, %233 in 0 : vector<2x32xf32>, vector<2x32xf32>, vector<2x32xf32>, vector<2x32xf32> -> vector<8x32xf32>
    %247 = arith.mulf %246, %12 : vector<8x32xf32>
    %248 = arith.truncf %247 : vector<8x32xf32> to vector<8x32xbf16>
    %249 = arith.truncf %239 : vector<16x32xf32> to vector<16x32xbf16>
    %cst_113 = arith.constant dense<0.000000e+00> : vector<8x16xf32>
    %250 = tpu.matmul %248, %249, %cst_113 {dimension_numbers = #tpu.dot_dimension_numbers<[1], [1], [0], [0], [0, 0, 1, 0], [], []>} : vector<8x32xbf16>, vector<16x32xbf16>, vector<8x16xf32> -> vector<8x16xf32>
    %cst_114 = arith.constant 0.176776692 : f32
    %251 = vector.broadcast %cst_114 : f32 to vector<8x16xf32>
    %252 = arith.mulf %250, %251 : vector<8x16xf32>
    %253 = arith.addf %252, %13 : vector<8x16xf32>
    %cst_115 = arith.constant dense<0xFF800000> : vector<8xf32>
    %254 = vector.multi_reduction <maximumf>, %253, %cst_115 [1] : vector<8x16xf32> to vector<8xf32>
    %255 = vector.shape_cast %254 : vector<8xf32> to vector<8x1xf32>
    %256 = vector.broadcast %255 : vector<8x1xf32> to vector<8x16xf32>
    %257 = arith.subf %253, %256 : vector<8x16xf32>
    %258 = math.exp %257 : vector<8x16xf32>
    %cst_116 = arith.constant dense<0.000000e+00> : vector<8xf32>
    %259 = vector.multi_reduction <add>, %258, %cst_116 [1] : vector<8x16xf32> to vector<8xf32>
    %260 = vector.shape_cast %259 : vector<8xf32> to vector<8x1xf32>
    %cst_117 = arith.constant 1.000000e+00 : f32
    %261 = vector.broadcast %cst_117 : f32 to vector<8x1xf32>
    %262 = arith.divf %261, %260 : vector<8x1xf32>
    %263 = vector.broadcast %262 : vector<8x1xf32> to vector<8x16xf32>
    %264 = arith.mulf %258, %263 : vector<8x16xf32>
    %265 = arith.truncf %264 : vector<8x16xf32> to vector<8x16xbf16>
    %266 = arith.truncf %245 : vector<16x32xf32> to vector<16x32xbf16>
    %cst_118 = arith.constant dense<0.000000e+00> : vector<8x32xf32>
    %267 = tpu.matmul %265, %266, %cst_118 {dimension_numbers = #tpu.dot_dimension_numbers<[1], [0], [0], [1], [0, 0, 1, 1], [], []>} : vector<8x16xbf16>, vector<16x32xbf16>, vector<8x32xf32> -> vector<8x32xf32>
    %268 = arith.mulf %267, %12 : vector<8x32xf32>
    %269 = vector.extract_strided_slice %268 {offsets = [0, 0], sizes = [2, 32], strides = [1, 1]} : vector<8x32xf32> to vector<2x32xf32>
    %270 = vector.extract_strided_slice %268 {offsets = [2, 0], sizes = [2, 32], strides = [1, 1]} : vector<8x32xf32> to vector<2x32xf32>
    %271 = arith.addf %269, %270 : vector<2x32xf32>
    %272 = vector.extract_strided_slice %268 {offsets = [4, 0], sizes = [2, 32], strides = [1, 1]} : vector<8x32xf32> to vector<2x32xf32>
    %273 = arith.addf %271, %272 : vector<2x32xf32>
    %274 = vector.extract_strided_slice %268 {offsets = [6, 0], sizes = [2, 32], strides = [1, 1]} : vector<8x32xf32> to vector<2x32xf32>
    %275 = arith.addf %273, %274 : vector<2x32xf32>
    %276 = arith.addf %233, %275 : vector<2x32xf32>
    %cst_119 = arith.constant dense<0.000000e+00> : vector<2xf32>
    %277 = vector.multi_reduction <add>, %276, %cst_119 [1] : vector<2x32xf32> to vector<2xf32>
    %278 = vector.shape_cast %277 : vector<2xf32> to vector<2x1xf32>
    %cst_120 = arith.constant 3.200000e+01 : f32
    %279 = vector.broadcast %cst_120 : f32 to vector<2x1xf32>
    %280 = arith.divf %278, %279 : vector<2x1xf32>
    %281 = vector.broadcast %280 : vector<2x1xf32> to vector<2x32xf32>
    %282 = arith.subf %276, %281 : vector<2x32xf32>
    %283 = vector.broadcast %280 : vector<2x1xf32> to vector<2x32xf32>
    %284 = arith.subf %276, %283 : vector<2x32xf32>
    %285 = arith.mulf %282, %284 : vector<2x32xf32>
    %cst_121 = arith.constant dense<0.000000e+00> : vector<2xf32>
    %286 = vector.multi_reduction <add>, %285, %cst_121 [1] : vector<2x32xf32> to vector<2xf32>
    %287 = vector.shape_cast %286 : vector<2xf32> to vector<2x1xf32>
    %cst_122 = arith.constant 3.200000e+01 : f32
    %288 = vector.broadcast %cst_122 : f32 to vector<2x1xf32>
    %289 = arith.divf %287, %288 : vector<2x1xf32>
    %290 = vector.broadcast %280 : vector<2x1xf32> to vector<2x32xf32>
    %291 = arith.subf %276, %290 : vector<2x32xf32>
    %cst_123 = arith.constant 9.99999974E-6 : f32
    %292 = vector.broadcast %cst_123 : f32 to vector<2x1xf32>
    %293 = arith.addf %289, %292 : vector<2x1xf32>
    %294 = math.rsqrt %293 : vector<2x1xf32>
    %295 = vector.broadcast %294 : vector<2x1xf32> to vector<2x32xf32>
    %296 = arith.mulf %291, %295 : vector<2x32xf32>
    %297 = arith.truncf %296 : vector<2x32xf32> to vector<2x32xbf16>
    %c0_124 = arith.constant 0 : index
    %c0_125 = arith.constant 0 : index
    %298 = vector.load %arg27[%c0_124, %c0_125] : memref<32x32xbf16, #tpu.memory_space<vmem>>, vector<32x32xbf16>
    %cst_126 = arith.constant dense<0.000000e+00> : vector<2x32xf32>
    %299 = tpu.matmul %297, %298, %cst_126 {dimension_numbers = #tpu.dot_dimension_numbers<[1], [0], [0], [1], [0, 0, 1, 1], [], []>} : vector<2x32xbf16>, vector<32x32xbf16>, vector<2x32xf32> -> vector<2x32xf32>
    %c0_127 = arith.constant 0 : index
    %c0_128 = arith.constant 0 : index
    %300 = vector.load %arg28[%c0_127, %c0_128] : memref<1x32xf32, #tpu.memory_space<vmem>>, vector<1x32xf32>
    %301 = vector.broadcast %300 : vector<1x32xf32> to vector<2x32xf32>
    %302 = arith.addf %299, %301 : vector<2x32xf32>
    %cst_129 = arith.constant 0.000000e+00 : f32
    %303 = vector.broadcast %cst_129 : f32 to vector<2x32xf32>
    %304 = arith.subf %303, %302 : vector<2x32xf32>
    %305 = math.exp %304 : vector<2x32xf32>
    %cst_130 = arith.constant 1.000000e+00 : f32
    %306 = vector.broadcast %cst_130 : f32 to vector<2x32xf32>
    %307 = arith.addf %306, %305 : vector<2x32xf32>
    %cst_131 = arith.constant 1.000000e+00 : f32
    %308 = vector.broadcast %cst_131 : f32 to vector<2x32xf32>
    %309 = arith.divf %308, %307 : vector<2x32xf32>
    %310 = arith.addf %296, %309 : vector<2x32xf32>
    %cst_132 = arith.constant dense<0.000000e+00> : vector<2xf32>
    %311 = vector.multi_reduction <add>, %310, %cst_132 [1] : vector<2x32xf32> to vector<2xf32>
    %312 = vector.shape_cast %311 : vector<2xf32> to vector<2x1xf32>
    %cst_133 = arith.constant 3.200000e+01 : f32
    %313 = vector.broadcast %cst_133 : f32 to vector<2x1xf32>
    %314 = arith.divf %312, %313 : vector<2x1xf32>
    %315 = vector.broadcast %314 : vector<2x1xf32> to vector<2x32xf32>
    %316 = arith.subf %310, %315 : vector<2x32xf32>
    %317 = vector.broadcast %314 : vector<2x1xf32> to vector<2x32xf32>
    %318 = arith.subf %310, %317 : vector<2x32xf32>
    %319 = arith.mulf %316, %318 : vector<2x32xf32>
    %cst_134 = arith.constant dense<0.000000e+00> : vector<2xf32>
    %320 = vector.multi_reduction <add>, %319, %cst_134 [1] : vector<2x32xf32> to vector<2xf32>
    %321 = vector.shape_cast %320 : vector<2xf32> to vector<2x1xf32>
    %cst_135 = arith.constant 3.200000e+01 : f32
    %322 = vector.broadcast %cst_135 : f32 to vector<2x1xf32>
    %323 = arith.divf %321, %322 : vector<2x1xf32>
    %324 = vector.broadcast %314 : vector<2x1xf32> to vector<2x32xf32>
    %325 = arith.subf %310, %324 : vector<2x32xf32>
    %cst_136 = arith.constant 9.99999974E-6 : f32
    %326 = vector.broadcast %cst_136 : f32 to vector<2x1xf32>
    %327 = arith.addf %323, %326 : vector<2x1xf32>
    %328 = math.rsqrt %327 : vector<2x1xf32>
    %329 = vector.broadcast %328 : vector<2x1xf32> to vector<2x32xf32>
    %330 = arith.mulf %325, %329 : vector<2x32xf32>
    %331 = arith.truncf %330 : vector<2x32xf32> to vector<2x32xbf16>
    %c0_137 = arith.constant 0 : index
    %c0_138 = arith.constant 0 : index
    %332 = vector.load %arg34[%c0_137, %c0_138] : memref<32x128xbf16, #tpu.memory_space<vmem>>, vector<32x128xbf16>
    %cst_139 = arith.constant dense<0.000000e+00> : vector<2x128xf32>
    %333 = tpu.matmul %331, %332, %cst_139 {dimension_numbers = #tpu.dot_dimension_numbers<[1], [0], [0], [1], [0, 0, 1, 1], [], []>} : vector<2x32xbf16>, vector<32x128xbf16>, vector<2x128xf32> -> vector<2x128xf32>
    %c0_140 = arith.constant 0 : index
    %c0_141 = arith.constant 0 : index
    %334 = vector.load %arg35[%c0_140, %c0_141] : memref<1x128xf32, #tpu.memory_space<vmem>>, vector<1x128xf32>
    %335 = vector.broadcast %334 : vector<1x128xf32> to vector<2x128xf32>
    %336 = arith.addf %333, %335 : vector<2x128xf32>
    %cst_142 = arith.constant 0.000000e+00 : f32
    %337 = vector.broadcast %cst_142 : f32 to vector<2x128xf32>
    %338 = arith.subf %337, %336 : vector<2x128xf32>
    %339 = math.exp %338 : vector<2x128xf32>
    %cst_143 = arith.constant 1.000000e+00 : f32
    %340 = vector.broadcast %cst_143 : f32 to vector<2x128xf32>
    %341 = arith.addf %340, %339 : vector<2x128xf32>
    %cst_144 = arith.constant 1.000000e+00 : f32
    %342 = vector.broadcast %cst_144 : f32 to vector<2x128xf32>
    %343 = arith.divf %342, %341 : vector<2x128xf32>
    %c0_145 = arith.constant 0 : index
    %c0_146 = arith.constant 0 : index
    %344 = vector.load %arg36[%c0_145, %c0_146] : memref<2x128xf32, #tpu.memory_space<vmem>>, vector<2x128xf32>
    tpu.vector_store %arg36[%c0_145, %c0_146], %343 {strides = array<i32>} : memref<2x128xf32, #tpu.memory_space<vmem>>, vector<2x128xf32>,
    return
  }
  func.func @transform_0(%arg0: i32) -> (i32, i32) {
    %c0_i32 = arith.constant 0 : i32
    %c0_i32_0 = arith.constant 0 : i32
    return %arg0, %c0_i32 : i32, i32
  }
  func.func @transform_1(%arg0: i32) -> (i32, i32) {
    %c0_i32 = arith.constant 0 : i32
    %c0_i32_0 = arith.constant 0 : i32
    %c0_i32_1 = arith.constant 0 : i32
    return %c0_i32, %c0_i32_0 : i32, i32
  }
  func.func @transform_2(%arg0: i32) -> (i32, i32) {
    %c0_i32 = arith.constant 0 : i32
    %c0_i32_0 = arith.constant 0 : i32
    %c0_i32_1 = arith.constant 0 : i32
    return %c0_i32, %c0_i32_0 : i32, i32
  }
  func.func @transform_3(%arg0: i32) -> (i32, i32) {
    %c0_i32 = arith.constant 0 : i32
    %c0_i32_0 = arith.constant 0 : i32
    %c0_i32_1 = arith.constant 0 : i32
    return %c0_i32, %c0_i32_0 : i32, i32
  }
  func.func @transform_4(%arg0: i32) -> (i32, i32) {
    %c0_i32 = arith.constant 0 : i32
    %c0_i32_0 = arith.constant 0 : i32
    %c0_i32_1 = arith.constant 0 : i32
    return %c0_i32, %c0_i32_0 : i32, i32
  }
  func.func @transform_5(%arg0: i32) -> (i32, i32) {
    %c0_i32 = arith.constant 0 : i32
    %c0_i32_0 = arith.constant 0 : i32
    %c0_i32_1 = arith.constant 0 : i32
    return %c0_i32, %c0_i32_0 : i32, i32
  }
  func.func @transform_6(%arg0: i32) -> (i32, i32) {
    %c0_i32 = arith.constant 0 : i32
    %c0_i32_0 = arith.constant 0 : i32
    %c0_i32_1 = arith.constant 0 : i32
    return %c0_i32, %c0_i32_0 : i32, i32
  }
  func.func @transform_7(%arg0: i32) -> (i32, i32) {
    %c0_i32 = arith.constant 0 : i32
    %c0_i32_0 = arith.constant 0 : i32
    %c0_i32_1 = arith.constant 0 : i32
    return %c0_i32, %c0_i32_0 : i32, i32
  }
  func.func @transform_8(%arg0: i32) -> (i32, i32) {
    %c0_i32 = arith.constant 0 : i32
    %c0_i32_0 = arith.constant 0 : i32
    %c0_i32_1 = arith.constant 0 : i32
    return %c0_i32, %c0_i32_0 : i32, i32
  }
  func.func @transform_9(%arg0: i32) -> (i32, i32) {
    %c0_i32 = arith.constant 0 : i32
    %c0_i32_0 = arith.constant 0 : i32
    %c0_i32_1 = arith.constant 0 : i32
    return %c0_i32, %c0_i32_0 : i32, i32
  }
  func.func @transform_10(%arg0: i32) -> (i32, i32) {
    %c0_i32 = arith.constant 0 : i32
    %c0_i32_0 = arith.constant 0 : i32
    %c0_i32_1 = arith.constant 0 : i32
    return %c0_i32, %c0_i32_0 : i32, i32
  }
  func.func @transform_11(%arg0: i32) -> (i32, i32) {
    %c0_i32 = arith.constant 0 : i32
    %c0_i32_0 = arith.constant 0 : i32
    %c0_i32_1 = arith.constant 0 : i32
    return %c0_i32, %c0_i32_0 : i32, i32
  }
  func.func @transform_12(%arg0: i32) -> (i32, i32) {
    %c0_i32 = arith.constant 0 : i32
    %c0_i32_0 = arith.constant 0 : i32
    %c0_i32_1 = arith.constant 0 : i32
    return %c0_i32, %c0_i32_0 : i32, i32
  }
  func.func @transform_13(%arg0: i32) -> (i32, i32) {
    %c0_i32 = arith.constant 0 : i32
    %c0_i32_0 = arith.constant 0 : i32
    %c0_i32_1 = arith.constant 0 : i32
    return %c0_i32, %c0_i32_0 : i32, i32
  }
  func.func @transform_14(%arg0: i32) -> (i32, i32) {
    %c0_i32 = arith.constant 0 : i32
    %c0_i32_0 = arith.constant 0 : i32
    %c0_i32_1 = arith.constant 0 : i32
    return %c0_i32, %c0_i32_0 : i32, i32
  }
  func.func @transform_15(%arg0: i32) -> (i32, i32) {
    %c0_i32 = arith.constant 0 : i32
    %c0_i32_0 = arith.constant 0 : i32
    %c0_i32_1 = arith.constant 0 : i32
    return %c0_i32, %c0_i32_0 : i32, i32
  }
  func.func @transform_16(%arg0: i32) -> (i32, i32) {
    %c0_i32 = arith.constant 0 : i32
    %c0_i32_0 = arith.constant 0 : i32
    %c0_i32_1 = arith.constant 0 : i32
    return %c0_i32, %c0_i32_0 : i32, i32
  }
  func.func @transform_17(%arg0: i32) -> (i32, i32) {
    %c0_i32 = arith.constant 0 : i32
    %c0_i32_0 = arith.constant 0 : i32
    %c0_i32_1 = arith.constant 0 : i32
    return %c0_i32, %c0_i32_0 : i32, i32
  }
  func.func @transform_18(%arg0: i32) -> (i32, i32) {
    %c0_i32 = arith.constant 0 : i32
    %c0_i32_0 = arith.constant 0 : i32
    %c0_i32_1 = arith.constant 0 : i32
    return %c0_i32, %c0_i32_0 : i32, i32
  }
  func.func @transform_19(%arg0: i32) -> (i32, i32) {
    %c0_i32 = arith.constant 0 : i32
    %c0_i32_0 = arith.constant 0 : i32
    %c0_i32_1 = arith.constant 0 : i32
    return %c0_i32, %c0_i32_0 : i32, i32
  }
  func.func @transform_20(%arg0: i32) -> (i32, i32) {
    %c0_i32 = arith.constant 0 : i32
    %c0_i32_0 = arith.constant 0 : i32
    %c0_i32_1 = arith.constant 0 : i32
    return %c0_i32, %c0_i32_0 : i32, i32
  }
  func.func @transform_21(%arg0: i32) -> (i32, i32) {
    %c0_i32 = arith.constant 0 : i32
    %c0_i32_0 = arith.constant 0 : i32
    %c0_i32_1 = arith.constant 0 : i32
    return %c0_i32, %c0_i32_0 : i32, i32
  }
  func.func @transform_22(%arg0: i32) -> (i32, i32) {
    %c0_i32 = arith.constant 0 : i32
    %c0_i32_0 = arith.constant 0 : i32
    %c0_i32_1 = arith.constant 0 : i32
    return %c0_i32, %c0_i32_0 : i32, i32
  }
  func.func @transform_23(%arg0: i32) -> (i32, i32) {
    %c0_i32 = arith.constant 0 : i32
    %c0_i32_0 = arith.constant 0 : i32
    %c0_i32_1 = arith.constant 0 : i32
    return %c0_i32, %c0_i32_0 : i32, i32
  }
  func.func @transform_24(%arg0: i32) -> (i32, i32) {
    %c0_i32 = arith.constant 0 : i32
    %c0_i32_0 = arith.constant 0 : i32
    %c0_i32_1 = arith.constant 0 : i32
    return %c0_i32, %c0_i32_0 : i32, i32
  }
  func.func @transform_25(%arg0: i32) -> (i32, i32) {
    %c0_i32 = arith.constant 0 : i32
    %c0_i32_0 = arith.constant 0 : i32
    %c0_i32_1 = arith.constant 0 : i32
    return %c0_i32, %c0_i32_0 : i32, i32
  }
  func.func @transform_26(%arg0: i32) -> (i32, i32) {
    %c0_i32 = arith.constant 0 : i32
    %c0_i32_0 = arith.constant 0 : i32
    %c0_i32_1 = arith.constant 0 : i32
    return %c0_i32, %c0_i32_0 : i32, i32
  }
  func.func @transform_27(%arg0: i32) -> (i32, i32) {
    %c0_i32 = arith.constant 0 : i32
    %c0_i32_0 = arith.constant 0 : i32
    %c0_i32_1 = arith.constant 0 : i32
    return %c0_i32, %c0_i32_0 : i32, i32
  }
  func.func @transform_28(%arg0: i32) -> (i32, i32) {
    %c0_i32 = arith.constant 0 : i32
    %c0_i32_0 = arith.constant 0 : i32
    return %arg0, %c0_i32 : i32, i32
  }
  func.func @transform_29(%arg0: i32) -> (i32, i32) {
    %c0_i32 = arith.constant 0 : i32
    %c0_i32_0 = arith.constant 0 : i32
    %c0_i32_1 = arith.constant 0 : i32
    return %c0_i32, %c0_i32_0 : i32, i32
  }
  func.func @transform_30(%arg0: i32) -> (i32, i32) {
    %c0_i32 = arith.constant 0 : i32
    %c0_i32_0 = arith.constant 0 : i32
    %c0_i32_1 = arith.constant 0 : i32
    return %c0_i32, %c0_i32_0 : i32, i32
  }
  func.func @transform_31(%arg0: i32) -> (i32, i32) {
    %c0_i32 = arith.constant 0 : i32
    %c0_i32_0 = arith.constant 0 : i32
    %c0_i32_1 = arith.constant 0 : i32
    return %c0_i32, %c0_i32_0 : i32, i32
  }
  func.func @transform_32(%arg0: i32) -> (i32, i32) {
    %c0_i32 = arith.constant 0 : i32
    %c0_i32_0 = arith.constant 0 : i32
    %c0_i32_1 = arith.constant 0 : i32
    return %c0_i32, %c0_i32_0 : i32, i32
  }
  func.func @transform_33(%arg0: i32) -> (i32, i32) {
    %c0_i32 = arith.constant 0 : i32
    %c0_i32_0 = arith.constant 0 : i32
    %c0_i32_1 = arith.constant 0 : i32
    return %c0_i32, %c0_i32_0 : i32, i32
  }
  func.func @transform_34(%arg0: i32) -> (i32, i32) {
    %c0_i32 = arith.constant 0 : i32
    %c0_i32_0 = arith.constant 0 : i32
    %c0_i32_1 = arith.constant 0 : i32
    return %c0_i32, %c0_i32_0 : i32, i32
  }
  func.func @transform_35(%arg0: i32) -> (i32, i32) {
    %c0_i32 = arith.constant 0 : i32
    %c0_i32_0 = arith.constant 0 : i32
    return %arg0, %c0_i32 : i32, i32
  }
}

</mosaic_0001>

<bundles_post_ra>
// kernel: quan4_forward.2
= control target key start
LH: loop header
LB: loop body
LE: loop exit
PB: predicated region body
PF: predicated region fallthrough
CT: control target
= control target key end

     0   :  { %v289_v0 = vmov 0.0   ;;  %vm290_vm0 = vmmov 0   ;;  %vm37_vm1 = vcmask 130048   ;;  %v291_v9 = vmov 0.0|0.0   ;;  %s369_s2 = inlined_call_operand.vmem [shape: bf16[16,16], index: 2, kind: input, shape index: {}]   ;;  %s370_s0 = inlined_call_operand.vmem [shape: f32[16,16], index: 0, kind: input, shape index: {}]   ;;  %s371_s1 = inlined_call_operand.vmem [shape: bf16[16,16], index: 1, kind: input, shape index: {}]   ;;  %s372_s3 = inlined_call_operand.vmem [shape: f32[16,16], index: 3, kind: input, shape index: {}]   ;;  %s373_s4 = inlined_call_operand.vmem [shape: f32[1,16], index: 4, kind: input, shape index: {}]   ;;  %s374_s5 = inlined_call_operand.vmem [shape: f32[1,16], index: 5, kind: input, shape index: {}]   ;;  %s375_s6 = inlined_call_operand.vmem [shape: f32[1,16], index: 6, kind: output, shape index: {0}]   ;;  %s376_s7 = inlined_call_operand.vmem [shape: f32[1,16], index: 7, kind: output, shape index: {1}]  }
   0x1   :  { %266 = vmatprep.subr.bf16.mxu1 %v289_v0  ;;  %v285_v1 = vld [vmem:[%s369_s2] sm:$0xff]   ;;  %268 = vmatprep.mubr.msk.bf16.mxu1 %vm290_vm0, %v289_v0  ;;  %v27_v3 = vld [vmem:[%s370_s0 + $0x8] sm:$0xff]  ;;  %vm234_vm2 = vcmask 122880  }
   0x2   :  { %v26_v2 = vld [vmem:[%s370_s0] sm:$0xff]  ;;  %260 = vmatprep.subr.bf16.mxu0 %v289_v0  ;;  %262 = vmatprep.mubr.msk.bf16.mxu0 %vm290_vm0, %v289_v0  ;;  %v157_v7 = vld [vmem:[%s372_s3 + $0x8] sm:$0xff] }
   0x3   :  { %267 = vmatpush3.bf16.msra.mxu1 %v285_v1  ;;  %v28_v4 = vpack.c.bf16 %v27_v3, %v26_v2  ;;  %v286_v5 = vld [vmem:[%s371_s1] sm:$0xff]  }
   0x4   :  { %261 = vmatpush3.bf16.msra.mxu0 %v286_v5  ;;  %v156_v6 = vld [vmem:[%s372_s3] sm:$0xff] }
   0x5   :  { %v280_v8 = vpack.c.bf16 %v157_v7, %v156_v6  ;;  %279 = vmatprep.subr.bf16.mxu0 %v291_v9  ;;  %v158_v45 = vld [vmem:[%s373_s4] sm:$0x1] }
   0x6   :  { %269 = vmatmul.mubr.msk.bf16.vlgmr.msra.gmra.mrb[0].mxu1 %vm37_vm1, %v28_v4  ;;  %v236_v48 = vld [vmem:[%s374_s5] sm:$0x1] }
   0x7   :  { %263 = vmatmul.mubr.msk.bf16.vlgmr.msra.gmra.mrb[0].mxu0 %vm37_vm1, %v28_v4 }
   0x8   :  { %276 = vmatprep.mubr.msk.f32.mxu0 %vm290_vm0, %v289_v0  ;;  %281 = vmatpush3.bf16.msra.mxu0 %v280_v8 }
  0xd9   :  { %v124_v10 = vpop.f32.mrb[0].mxu1 }
  0xda   :  { %v270_v11 = vpop.f32.mrb[1].mxu1  ;;  %v75_v13 = vpop.f32.mrb[0].mxu0  ;;  %v131_v14 = vsel %vm37_vm1, %v124_v10, 0.0 }
  0xdb   :  { %v127_v12 = vpop.f32.mrb[2].mxu1  ;;  %v264_v17 = vpop.f32.mrb[1].mxu0 }
  0xdc   :  { %v132_v15 = vsel %vm37_vm1, %v127_v12, 0.0  ;;  %v271_v16 = vpop.f32.mrb[3].mxu1  ;;  %v78_v19 = vpop.f32.mrb[2].mxu0 }
  0xdd   :  { %v133_v18 = vadd.f32 %v132_v15, %v131_v14  ;;  %v265_v20 = vpop.f32.mrb[3].mxu0 }
  0xdf   :  { %v134_v21 = vrot.slane %v133_v18, 4 }
  0xe1   :  { %v135_v22 = vadd.f32 %v134_v21, %v133_v18 }
  0xe3   :  { %v136_v23 = vrot.slane %v135_v22, 2 }
  0xe5   :  { %v137_v24 = vadd.f32 %v136_v23, %v135_v22 }
  0xe7   :  { %v138_v25 = vrot.slane %v137_v24, 1 }
  0xe9   :  { %v139_v26 = vadd.f32 %v138_v25, %v137_v24 }
  0xeb   :  { %v141_v27 = vmul.f32 0.0625, %v139_v26 }
  0xed   :  { %v142_v28 = vsub.f32 %v75_v13, %v141_v27  ;;  %v143_v29 = vsub.f32 %v78_v19, %v141_v27 }
  0xef   :  { %v144_v30 = vmul.f32 %v142_v28, %v142_v28  ;;  %v145_v31 = vmul.f32 %v143_v29, %v143_v29 }
  0xf1   :  { %v146_v32 = vsel %vm37_vm1, %v144_v30, 0.0  ;;  %v147_v33 = vsel %vm37_vm1, %v145_v31, 0.0 }
  0xf2   :  { %v148_v34 = vadd.f32 %v147_v33, %v146_v32 }
  0xf4   :  { %v149_v35 = vrot.slane %v148_v34, 4 }
  0xf6   :  { %v150_v36 = vadd.f32 %v149_v35, %v148_v34 }
  0xf8   :  { %v151_v37 = vrot.slane %v150_v36, 2 }
  0xfa   :  { %v152_v38 = vadd.f32 %v151_v37, %v150_v36 }
  0xfc   :  { %v153_v39 = vrot.slane %v152_v38, 1 }
  0xfe   :  { %v154_v40 = vadd.f32 %v153_v39, %v152_v38 }
 0x100   :  { %v155_v41 = vmul.f32 0.0625, %v154_v40 }
 0x102   :  { %277 = vmatmul.mubr.msk.f32.vlgmr.msra.gmra.mrb[4].mxu0 %vm37_vm1, %v155_v41 }
 0x1d5   :  { %v228_v42 = vpop.f32.mrb[4].mxu0 }
 0x1d6   :  { %v229_v43 = vadd.f32 1e-05, %v228_v42  ;;  %v278_v44 = vpop.f32.mrb[5].mxu0 }
 0x1d8   :  { %287 = vrsqrt.f32 %v229_v43 }
 0x1e2   :  { %v288_v46 = vpop.eup %287 }
 0x1e3   :  { %v233_v47 = vmul.f32 %v288_v46, %v158_v45 }
 0x1e5   :  { %235 = vst.msk [vmem:[%s375_s6] sm:$0x1] %vm234_vm2, %v233_v47  ;;  %v237_v49 = vmul.f32 %v233_v47, %v141_v27 }
 0x1e7   :  { %v238_v50 = vsub.f32 %v236_v48, %v237_v49 }
 0x1e9   :  { %239 = vst.msk [vmem:[%s376_s7] sm:$0x1] %vm234_vm2, %v238_v50 }

// kernel: quan4_forward.3
= control target key start
LH: loop header
LB: loop body
LE: loop exit
PB: predicated region body
PF: predicated region fallthrough
CT: control target
= control target key end

     0   :  { %s3182_s6 = smov 1   ;;  %s3183_s10 = smov 2   ;;  %s3818_s0 = inlined_call_operand.smem [shape: u32[36], index: -1, kind: input, shape index: {}] }
   0x1   :  { %s3247_s5 = sld [smem:[%s3818_s0]]   ;;  %s3184_s14 = smov 3  }
   0x2   :  { %s3252_s9 = sld [smem:[%s3818_s0 + %s3182_s6]]   ;;  %s3185_s18 = smov 4  }
   0x3   :  { %s3257_s13 = sld [smem:[%s3818_s0 + %s3183_s10]]   ;;  %s3186_s22 = smov 5  }
   0x4   :  { %s3262_s17 = sld [smem:[%s3818_s0 + %s3184_s14]]   ;;  %s3187_s26 = smov 6  }
   0x5   :  { %s3267_s21 = sld [smem:[%s3818_s0 + %s3185_s18]]   ;;  %s3188_s30 = smov 7  }
   0x6   :  { %s3272_s25 = sld [smem:[%s3818_s0 + %s3186_s22]]   ;;  %s3189_s4 = smov 8  }
   0x7   :  { %3832 = sst [smem:[#allocation40_spill]] %s3247_s5  ;;  %s3190_s10 = smov 9  }
   0x8   :  { %3833 = sst [smem:[#allocation41_spill]] %s3252_s9  ;;  %s3191_s15 = smov 10  }
   0x9   :  { %3834 = sst [smem:[#allocation42_spill]] %s3257_s13  ;;  %s3192_s20 = smov 11  }
   0xa   :  { %3835 = sst [smem:[#allocation43_spill]] %s3262_s17  ;;  %s3194_s1 = smov 13  }
   0xb   :  { %s3277_s29 = sld [smem:[%s3818_s0 + %s3187_s26]]   ;;  %s3193_s26 = smov 12  }
   0xc   :  { %s3282_s3 = sld [smem:[%s3818_s0 + %s3188_s30]]   ;;  %s3195_s7 = smov 14  }
   0xd   :  { %s3287_s8 = sld [smem:[%s3818_s0 + %s3189_s4]]   ;;  %s3197_s22 = smov 16  }
   0xe   :  { %s3292_s14 = sld [smem:[%s3818_s0 + %s3190_s10]]   ;;  %s3198_s28 = smov 17  }
   0xf   :  { %s3297_s19 = sld [smem:[%s3818_s0 + %s3191_s15]]   ;;  %s3196_s15 = smov 15  }
  0x10   :  { %s3302_s24 = sld [smem:[%s3818_s0 + %s3192_s20]]  }
  0x11   :  { %s3307_s30 = sld [smem:[%s3818_s0 + %s3193_s26]]  }
  0x12   :  { %s3312_s6 = sld [smem:[%s3818_s0 + %s3194_s1]]  }
  0x13   :  { %s3317_s12 = sld [smem:[%s3818_s0 + %s3195_s7]]   ;;  %s3199_s7 = smov 18  }
  0x14   :  { %s3322_s20 = sld [smem:[%s3818_s0 + %s3196_s15]]   ;;  %s3200_s15 = smov 19  }
  0x15   :  { %3836 = sst [smem:[#allocation44_spill]] %s3297_s19 }
  0x16   :  { %s3327_s27 = sld [smem:[%s3818_s0 + %s3197_s22]]   ;;  %s3201_s22 = smov 20  }
  0x17   :  { %3837 = sst [smem:[#allocation45_spill]] %s3307_s30 }
  0x18   :  { %s3332_s4 = sld [smem:[%s3818_s0 + %s3198_s28]]   ;;  %s3202_s28 = smov 21  }
  0x19   :  { %3838 = sst [smem:[#allocation46_spill]] %s3317_s12 }
  0x1a   :  { %s3337_s12 = sld [smem:[%s3818_s0 + %s3199_s7]]   ;;  %s3203_s7 = smov 22  }
  0x1b   :  { %s3342_s30 = sld [smem:[%s3818_s0 + %s3200_s15]]   ;;  %s3204_s15 = smov 23  }
  0x1c   :  { %3839 = sst [smem:[#allocation47_spill]] %s3327_s27 }
  0x1d   :  { %s3347_s27 = sld [smem:[%s3818_s0 + %s3201_s22]]   ;;  %s3205_s22 = smov 24  }
  0x1e   :  { %s3352_s19 = sld [smem:[%s3818_s0 + %s3202_s28]]   ;;  %s3206_s28 = smov 25  }
  0x1f   :  { %s3357_s17 = sld [smem:[%s3818_s0 + %s3203_s7]]   ;;  %s3207_s7 = smov 26  }
  0x20   :  { %s3362_s13 = sld [smem:[%s3818_s0 + %s3204_s15]]   ;;  %s3208_s15 = smov 27  }
  0x21   :  { %s3372_s5 = sld [smem:[%s3818_s0 + %s3206_s28]]   ;;  %s3210_s28 = smov 29  }
  0x22   :  { %s3382_s9 = sld [smem:[%s3818_s0 + %s3208_s15]]   ;;  %s3212_s15 = smov 31  }
  0x23   :  { %3840 = sst [smem:[#allocation48_spill]] %s3347_s27 }
  0x24   :  { %3841 = sst [smem:[#allocation49_spill]] %s3352_s19 }
  0x25   :  { %3842 = sst [smem:[#allocation50_spill]] %s3357_s17 }
  0x26   :  { %s3367_s27 = sld [smem:[%s3818_s0 + %s3205_s22]]   ;;  %s3209_s22 = smov 28  }
  0x27   :  { %s3377_s17 = sld [smem:[%s3818_s0 + %s3207_s7]]   ;;  %s3211_s7 = smov 30  }
  0x28   :  { %3845 = sst [smem:[#allocation53_spill]] %s3382_s9 }
  0x29   :  { %s3392_s19 = sld [smem:[%s3818_s0 + %s3210_s28]]   ;;  %s3214_s28 = smov 33  }
  0x2a   :  { %s3402_s9 = sld [smem:[%s3818_s0 + %s3212_s15]]   ;;  %s3216_s15 = smov 35  }
  0x2c   :  { %3843 = sst [smem:[#allocation51_spill]] %s3367_s27 }
  0x2d   :  { %3844 = sst [smem:[#allocation52_spill]] %s3377_s17 }
  0x2e   :  { %s3387_s27 = sld [smem:[%s3818_s0 + %s3209_s22]]   ;;  %s3213_s22 = smov 32  }
  0x2f   :  { %3847 = sst [smem:[#allocation55_spill]] %s3392_s19 }
  0x30   :  { %s3397_s17 = sld [smem:[%s3818_s0 + %s3211_s7]]   ;;  %s3215_s7 = smov 34  }
  0x31   :  { %3849 = sst [smem:[#allocation57_spill]] %s3402_s9 }
  0x32   :  { %s3412_s19 = sld [smem:[%s3818_s0 + %s3214_s28]]  }
  0x33   :  { %s3422_s9 = sld [smem:[%s3818_s0 + %s3216_s15]]  }
  0x34   :  { %3846 = sst [smem:[#allocation54_spill]] %s3387_s27 }
  0x35   :  { %s3407_s27 = sld [smem:[%s3818_s0 + %s3213_s22]]  }
  0x36   :  { %3848 = sst [smem:[#allocation56_spill]] %s3397_s17 }
  0x37   :  { %s3417_s17 = sld [smem:[%s3818_s0 + %s3215_s7]]  }
  0x38   :  { %76 = vsyncpa [#allocation3], 0 }
  0x39   :  { %77 = vsyncpa [#allocation5], 0 }
  0x3a   :  { %78 = vsyncpa [#allocation8], 0 }
  0x3b   :  { %79 = vsyncpa [#allocation11], 0 }
  0x3c   :  { %80 = vsyncpa [#allocation14], 0 }
  0x3d   :  { %81 = vsyncpa [#allocation17], 0 }
  0x3e   :  { %82 = vsyncpa [#allocation20], 0 }
  0x3f   :  { %83 = vsyncpa [#allocation23], 0 }
  0x40   :  { %84 = vsyncpa [#allocation26], 0 }
  0x41   :  { %85 = vsyncpa [#allocation29], 0  ;;  %s3217_s22 = smov [#allocation4]   ;;  %s3218_s26 = smov [#allocation7]  }
  0x42   :  { %s112_s23 = sshll.u32 %s3217_s22, 4  ;;  %s134_s28 = sshll.u32 %s3218_s26, 4  ;;  %s113_s23 = int_to_ptr.vmem [resolvable:$true] %s112_s23  ;;  %s135_s28 = int_to_ptr.vmem [resolvable:$true] %s134_s28 }
  0x43   :  { %s2766_s0 = scalar_lea.hbm %s3272_s25, 16 }
  0x44   :  { %p2767_p0 = scmp.ne.s32.totalorder %s3272_s25, %s2766_s0  ;;  %p2770_p1 = scmp.lt.u32.totalorder %s2766_s0, %s3272_s25 }
  0x46   :  { %p2772_p2 = pnand %p2770_p1, %p2767_p0 }
  0x48   :  { %2775 = shalt.err (!%p2772_p2)
}
  0x49   :  { %s2776_s1 = scalar_lea.vmem %s113_s23, 16  ;;  %s2780_s2 = scalar_lea.vmem %s113_s23, 32 }
  0x4a   :  { %p2777_p3 = scmp.ne.s32.totalorder %s113_s23, %s2776_s1  ;;  %p2781_p4 = scmp.lt.s32.totalorder %s113_s23, %s113_s23 }
  0x4b   :  { %p2782_p5 = scmp.lt.s32.totalorder %s2780_s2, %s2776_s1 }
  0x4d   :  { %p2783_p6 = por %p2782_p5, %p2781_p4 }
  0x4f   :  { %p2784_p7 = pnand %p2783_p6, %p2777_p3 }
  0x51   :  { %2787 = shalt.err (!%p2784_p7)
}
  0x52   :  { %115 = dma.hbm_to_vmem [thread:$0]  %s3272_s25, 16, %s113_s23, [#allocation5]  }
  0x53   :  { %s2788_s7 = scalar_lea.hbm %s3282_s3, 16 }
  0x54   :  { %p2789_p8 = scmp.ne.s32.totalorder %s3282_s3, %s2788_s7  ;;  %p2792_p9 = scmp.lt.u32.totalorder %s2788_s7, %s3282_s3 }
  0x56   :  { %p2794_p10 = pnand %p2792_p9, %p2789_p8 }
  0x58   :  { %2797 = shalt.err (!%p2794_p10)
}
  0x59   :  { %s2798_s10 = scalar_lea.vmem %s135_s28, 16  ;;  %s2802_s11 = scalar_lea.vmem %s135_s28, 32 }
  0x5a   :  { %p2799_p11 = scmp.ne.s32.totalorder %s135_s28, %s2798_s10  ;;  %p2803_p12 = scmp.lt.s32.totalorder %s135_s28, %s135_s28 }
  0x5b   :  { %p2804_p13 = scmp.lt.s32.totalorder %s2802_s11, %s2798_s10 }
  0x5d   :  { %p2805_p0 = por %p2804_p13, %p2803_p12 }
  0x5f   :  { %p2806_p1 = pnand %p2805_p0, %p2799_p11 }
  0x61   :  { %2809 = shalt.err (!%p2806_p1)
}
  0x62   :  { %137 = dma.hbm_to_vmem [thread:$0]  %s3282_s3, 16, %s135_s28, [#allocation8]  }
  0x63   :  { %s3219_s15 = smov [#allocation10]   ;;  %s3220_s16 = smov [#allocation13]  }
  0x64   :  { %s156_s25 = sshll.u32 %s3219_s15, 4  ;;  %s180_s18 = sshll.u32 %s3220_s16, 4  ;;  %s157_s25 = int_to_ptr.vmem [resolvable:$true] %s156_s25  ;;  %s181_s18 = int_to_ptr.vmem [resolvable:$true] %s180_s18 }
  0x65   :  { %s2810_s22 = scalar_lea.hbm %s3292_s14, 16 }
  0x66   :  { %p2811_p2 = scmp.ne.s32.totalorder %s3292_s14, %s2810_s22  ;;  %p2814_p3 = scmp.lt.u32.totalorder %s2810_s22, %s3292_s14 }
  0x68   :  { %p2816_p4 = pnand %p2814_p3, %p2811_p2 }
  0x6a   :  { %2819 = shalt.err (!%p2816_p4)
}
  0x6b   :  { %s2820_s23 = scalar_lea.vmem %s157_s25, 16  ;;  %s2824_s26 = scalar_lea.vmem %s157_s25, 32 }
  0x6c   :  { %p2821_p5 = scmp.ne.s32.totalorder %s157_s25, %s2820_s23  ;;  %p2825_p6 = scmp.lt.s32.totalorder %s157_s25, %s157_s25 }
  0x6d   :  { %p2826_p7 = scmp.lt.s32.totalorder %s2824_s26, %s2820_s23 }
  0x6f   :  { %p2827_p8 = por %p2826_p7, %p2825_p6 }
  0x71   :  { %p2828_p9 = pnand %p2827_p8, %p2821_p5 }
  0x73   :  { %2831 = shalt.err (!%p2828_p9)
}
  0x74   :  { %159 = dma.hbm_to_vmem [thread:$0]  %s3292_s14, 16, %s157_s25, [#allocation11]  }
  0x75   :  { %s2832_s3 = scalar_lea.hbm %s3312_s6, 16 }
  0x76   :  { %p2833_p10 = scmp.ne.s32.totalorder %s3312_s6, %s2832_s3  ;;  %p2836_p11 = scmp.lt.u32.totalorder %s2832_s3, %s3312_s6 }
  0x78   :  { %p2838_p12 = pnand %p2836_p11, %p2833_p10 }
  0x7a   :  { %2841 = shalt.err (!%p2838_p12)
}
  0x7b   :  { %s2842_s28 = scalar_lea.vmem %s181_s18, 16  ;;  %s2846_s0 = scalar_lea.vmem %s181_s18, 32 }
  0x7c   :  { %p2843_p13 = scmp.ne.s32.totalorder %s181_s18, %s2842_s28  ;;  %p2847_p0 = scmp.lt.s32.totalorder %s181_s18, %s181_s18 }
  0x7d   :  { %p2848_p1 = scmp.lt.s32.totalorder %s2846_s0, %s2842_s28 }
  0x7f   :  { %p2849_p2 = por %p2848_p1, %p2847_p0 }
  0x81   :  { %p2850_p3 = pnand %p2849_p2, %p2843_p13 }
  0x83   :  { %2853 = shalt.err (!%p2850_p3)
}
  0x84   :  { %183 = dma.hbm_to_vmem [thread:$0]  %s3312_s6, 16, %s181_s18, [#allocation14]  }
  0x85   :  { %s3221_s1 = smov [#allocation16]   ;;  %s3222_s2 = smov [#allocation19]  }
  0x86   :  { %s204_s14 = sshll.u32 %s3221_s1, 4  ;;  %s226_s7 = sshll.u32 %s3222_s2, 4  ;;  %s205_s14 = int_to_ptr.vmem [resolvable:$true] %s204_s14  ;;  %s227_s7 = int_to_ptr.vmem [resolvable:$true] %s226_s7 }
  0x87   :  { %s2854_s10 = scalar_lea.hbm %s3332_s4, 16 }
  0x88   :  { %p2855_p4 = scmp.ne.s32.totalorder %s3332_s4, %s2854_s10  ;;  %p2858_p5 = scmp.lt.u32.totalorder %s2854_s10, %s3332_s4 }
  0x8a   :  { %p2860_p6 = pnand %p2858_p5, %p2855_p4 }
  0x8c   :  { %2863 = shalt.err (!%p2860_p6)
}
  0x8d   :  { %s2864_s11 = scalar_lea.vmem %s205_s14, 16  ;;  %s2868_s15 = scalar_lea.vmem %s205_s14, 32 }
  0x8e   :  { %p2865_p7 = scmp.ne.s32.totalorder %s205_s14, %s2864_s11  ;;  %p2869_p8 = scmp.lt.s32.totalorder %s205_s14, %s205_s14 }
  0x8f   :  { %p2870_p9 = scmp.lt.s32.totalorder %s2868_s15, %s2864_s11 }
  0x91   :  { %p2871_p10 = por %p2870_p9, %p2869_p8 }
  0x93   :  { %p2872_p11 = pnand %p2871_p10, %p2865_p7 }
  0x95   :  { %2875 = shalt.err (!%p2872_p11)
}
  0x96   :  { %207 = dma.hbm_to_vmem [thread:$0]  %s3332_s4, 16, %s205_s14, [#allocation17]  }
  0x97   :  { %s2876_s6 = scalar_lea.hbm %s3342_s30, 16 }
  0x98   :  { %p2877_p12 = scmp.ne.s32.totalorder %s3342_s30, %s2876_s6  ;;  %p2880_p13 = scmp.lt.u32.totalorder %s2876_s6, %s3342_s30 }
  0x9a   :  { %p2882_p0 = pnand %p2880_p13, %p2877_p12 }
  0x9c   :  { %2885 = shalt.err (!%p2882_p0)
}
  0x9d   :  { %s2886_s25 = scalar_lea.vmem %s227_s7, 16  ;;  %s2890_s16 = scalar_lea.vmem %s227_s7, 32 }
  0x9e   :  { %p2887_p1 = scmp.ne.s32.totalorder %s227_s7, %s2886_s25  ;;  %p2891_p2 = scmp.lt.s32.totalorder %s227_s7, %s227_s7 }
  0x9f   :  { %p2892_p3 = scmp.lt.s32.totalorder %s2890_s16, %s2886_s25 }
  0xa1   :  { %p2893_p4 = por %p2892_p3, %p2891_p2 }
  0xa3   :  { %p2894_p5 = pnand %p2893_p4, %p2887_p1 }
  0xa5   :  { %2897 = shalt.err (!%p2894_p5)
}
  0xa6   :  { %229 = dma.hbm_to_vmem [thread:$0]  %s3342_s30, 16, %s227_s7, [#allocation20]  }
  0xa7   :  { %s3223_s18 = smov [#allocation22]   ;;  %s3224_s22 = smov [#allocation25]  }
  0xa8   :  { %s250_s4 = sshll.u32 %s3223_s18, 4  ;;  %s272_s23 = sshll.u32 %s3224_s22, 4  ;;  %s251_s4 = int_to_ptr.vmem [resolvable:$true] %s250_s4  ;;  %s273_s23 = int_to_ptr.vmem [resolvable:$true] %s272_s23 }
  0xa9   :  { %s2898_s26 = scalar_lea.hbm %s3362_s13, 16 }
  0xaa   :  { %p2899_p6 = scmp.ne.s32.totalorder %s3362_s13, %s2898_s26  ;;  %p2902_p7 = scmp.lt.u32.totalorder %s2898_s26, %s3362_s13 }
  0xac   :  { %p2904_p8 = pnand %p2902_p7, %p2899_p6 }
  0xae   :  { %2907 = shalt.err (!%p2904_p8)
}
  0xaf   :  { %s2908_s3 = scalar_lea.vmem %s251_s4, 16  ;;  %s2912_s28 = scalar_lea.vmem %s251_s4, 32 }
  0xb0   :  { %p2909_p9 = scmp.ne.s32.totalorder %s251_s4, %s2908_s3  ;;  %p2913_p10 = scmp.lt.s32.totalorder %s251_s4, %s251_s4 }
  0xb1   :  { %p2914_p11 = scmp.lt.s32.totalorder %s2912_s28, %s2908_s3 }
  0xb3   :  { %p2915_p12 = por %p2914_p11, %p2913_p10 }
  0xb5   :  { %p2916_p13 = pnand %p2915_p12, %p2909_p9 }
  0xb7   :  { %2919 = shalt.err (!%p2916_p13)
}
  0xb8   :  { %253 = dma.hbm_to_vmem [thread:$0]  %s3362_s13, 16, %s251_s4, [#allocation23]  }
  0xb9   :  { %s2920_s30 = scalar_lea.hbm %s3372_s5, 16 }
  0xba   :  { %p2921_p0 = scmp.ne.s32.totalorder %s3372_s5, %s2920_s30  ;;  %p2924_p1 = scmp.lt.u32.totalorder %s2920_s30, %s3372_s5 }
  0xbc   :  { %p2926_p2 = pnand %p2924_p1, %p2921_p0 }
  0xbe   :  { %2929 = shalt.err (!%p2926_p2)
}
  0xbf   :  { %s2930_s0 = scalar_lea.vmem %s273_s23, 16  ;;  %s2934_s1 = scalar_lea.vmem %s273_s23, 32 }
  0xc0   :  { %p2931_p3 = scmp.ne.s32.totalorder %s273_s23, %s2930_s0  ;;  %p2935_p4 = scmp.lt.s32.totalorder %s273_s23, %s273_s23 }
  0xc1   :  { %p2936_p5 = scmp.lt.s32.totalorder %s2934_s1, %s2930_s0 }
  0xc3   :  { %p2937_p6 = por %p2936_p5, %p2935_p4 }
  0xc5   :  { %p2938_p7 = pnand %p2937_p6, %p2931_p3 }
  0xc7   :  { %2941 = shalt.err (!%p2938_p7)
}
  0xc8   :  { %275 = dma.hbm_to_vmem [thread:$0]  %s3372_s5, 16, %s273_s23, [#allocation26]  }
  0xc9   :  { %s3225_s14 = smov [#allocation2]   ;;  %s2942_s2 = scalar_lea.hbm %s3267_s21, 128 }
  0xca   :  { %s99_s13 = sshll.u32 %s3225_s14, 4  ;;  %p2943_p8 = scmp.ne.s32.totalorder %s3267_s21, %s2942_s2  ;;  %s100_s13 = int_to_ptr.vmem [resolvable:$true] %s99_s13 }
  0xcb   :  { %p2946_p9 = scmp.lt.u32.totalorder %s2942_s2, %s3267_s21 }
  0xcd   :  { %p2948_p10 = pnand %p2946_p9, %p2943_p8 }
  0xcf   :  { %2951 = shalt.err (!%p2948_p10)
}
  0xd0   :  { %s2952_s7 = scalar_lea.vmem %s100_s13, 128  ;;  %p2957_p12 = scmp.lt.s32.totalorder %s100_s13, %s100_s13 }
  0xd1   :  { %p2953_p11 = scmp.ne.s32.totalorder %s100_s13, %s2952_s7  ;;  %p2958_p13 = scmp.lt.s32.totalorder %s2952_s7, %s2952_s7 }
  0xd3   :  { %p2959_p0 = por %p2958_p13, %p2957_p12 }
  0xd5   :  { %p2960_p1 = pnand %p2959_p0, %p2953_p11 }
  0xd7   :  { %2963 = shalt.err (!%p2960_p1)
}
  0xd8   :  { %s3226_s10 = smov 64   ;;  %s3227_s5 = smov 4  }
  0xd9   :  { %105 = dma.hbm_to_vmem [thread:$0]  %s3267_s21, 128, %s100_s13, [#allocation3], %s3226_s10, %s3226_s10, %s3227_s5  }
  0xda   :  { %s3228_s11 = smov [#allocation6]   ;;  %s3229_s6 = smov [#allocation9]  }
  0xdb   :  { %s121_s15 = sshll.u32 %s3228_s11, 4  ;;  %s143_s25 = sshll.u32 %s3229_s6, 4  ;;  %s122_s15 = int_to_ptr.vmem [resolvable:$true] %s121_s15  ;;  %s144_s25 = int_to_ptr.vmem [resolvable:$true] %s143_s25 }
  0xdc   :  { %s2964_s16 = scalar_lea.hbm %s3277_s29, 128 }
  0xdd   :  { %p2965_p2 = scmp.ne.s32.totalorder %s3277_s29, %s2964_s16  ;;  %p2968_p3 = scmp.lt.u32.totalorder %s2964_s16, %s3277_s29 }
  0xdf   :  { %p2970_p4 = pnand %p2968_p3, %p2965_p2 }
  0xe1   :  { %2973 = shalt.err (!%p2970_p4)
}
  0xe2   :  { %s2974_s18 = scalar_lea.vmem %s122_s15, 128  ;;  %p2979_p6 = scmp.lt.s32.totalorder %s122_s15, %s122_s15 }
  0xe3   :  { %p2975_p5 = scmp.ne.s32.totalorder %s122_s15, %s2974_s18  ;;  %p2980_p7 = scmp.lt.s32.totalorder %s2974_s18, %s2974_s18 }
  0xe5   :  { %p2981_p8 = por %p2980_p7, %p2979_p6 }
  0xe7   :  { %p2982_p9 = pnand %p2981_p8, %p2975_p5 }
  0xe9   :  { %2985 = shalt.err (!%p2982_p9)
}
  0xea   :  { %127 = dma.hbm_to_vmem [thread:$0]  %s3277_s29, 128, %s122_s15, [#allocation5], %s3226_s10, %s3226_s10, %s3227_s5  }
  0xeb   :  { %s2986_s21 = scalar_lea.hbm %s3287_s8, 128 }
  0xec   :  { %p2987_p10 = scmp.ne.s32.totalorder %s3287_s8, %s2986_s21  ;;  %p2990_p11 = scmp.lt.u32.totalorder %s2986_s21, %s3287_s8 }
  0xee   :  { %p2992_p12 = pnand %p2990_p11, %p2987_p10 }
  0xf0   :  { %2995 = shalt.err (!%p2992_p12)
}
  0xf1   :  { %s2996_s4 = scalar_lea.vmem %s144_s25, 128  ;;  %p3001_p0 = scmp.lt.s32.totalorder %s144_s25, %s144_s25 }
  0xf2   :  { %p2997_p13 = scmp.ne.s32.totalorder %s144_s25, %s2996_s4  ;;  %p3002_p1 = scmp.lt.s32.totalorder %s2996_s4, %s2996_s4 }
  0xf4   :  { %p3003_p2 = por %p3002_p1, %p3001_p0 }
  0xf6   :  { %p3004_p3 = pnand %p3003_p2, %p2997_p13 }
  0xf8   :  { %3007 = shalt.err (!%p3004_p3)
}
  0xf9   :  { %149 = dma.hbm_to_vmem [thread:$0]  %s3287_s8, 128, %s144_s25, [#allocation8], %s3226_s10, %s3226_s10, %s3227_s5  }
  0xfa   :  { %s3230_s29 = smov [#allocation12]   ;;  %s3231_s23 = smov [#allocation15]  }
  0xfb   :  { %s168_s22 = sshll.u32 %s3230_s29, 4  ;;  %s192_s26 = sshll.u32 %s3231_s23, 4  ;;  %s169_s22 = int_to_ptr.vmem [resolvable:$true] %s168_s22  ;;  %s193_s26 = int_to_ptr.vmem [resolvable:$true] %s192_s26 }
  0xfc   :  { %s3008_s3 = scalar_lea.hbm %s3302_s24, 16 }
  0xfd   :  { %p3009_p4 = scmp.ne.s32.totalorder %s3302_s24, %s3008_s3  ;;  %p3012_p5 = scmp.lt.u32.totalorder %s3008_s3, %s3302_s24 }
  0xff   :  { %p3014_p6 = pnand %p3012_p5, %p3009_p4 }
 0x101   :  { %3017 = shalt.err (!%p3014_p6)
}
 0x102   :  { %s3018_s28 = scalar_lea.vmem %s169_s22, 16  ;;  %s3022_s30 = scalar_lea.vmem %s169_s22, 32 }
 0x103   :  { %p3019_p7 = scmp.ne.s32.totalorder %s169_s22, %s3018_s28  ;;  %p3023_p8 = scmp.lt.s32.totalorder %s169_s22, %s169_s22 }
 0x104   :  { %p3024_p9 = scmp.lt.s32.totalorder %s3022_s30, %s3018_s28 }
 0x106   :  { %p3025_p10 = por %p3024_p9, %p3023_p8 }
 0x108   :  { %p3026_p11 = pnand %p3025_p10, %p3019_p7 }
 0x10a   :  { %3029 = shalt.err (!%p3026_p11)
}
 0x10b   :  { %171 = dma.hbm_to_vmem [thread:$0]  %s3302_s24, 16, %s169_s22, [#allocation11]  }
 0x10c   :  { %s3030_s8 = scalar_lea.hbm %s3322_s20, 16 }
 0x10d   :  { %p3031_p12 = scmp.ne.s32.totalorder %s3322_s20, %s3030_s8  ;;  %p3034_p13 = scmp.lt.u32.totalorder %s3030_s8, %s3322_s20 }
 0x10f   :  { %p3036_p0 = pnand %p3034_p13, %p3031_p12 }
 0x111   :  { %3039 = shalt.err (!%p3036_p0)
}
 0x112   :  { %s3040_s0 = scalar_lea.vmem %s193_s26, 16  ;;  %s3044_s1 = scalar_lea.vmem %s193_s26, 32 }
 0x113   :  { %p3041_p1 = scmp.ne.s32.totalorder %s193_s26, %s3040_s0  ;;  %p3045_p2 = scmp.lt.s32.totalorder %s193_s26, %s193_s26 }
 0x114   :  { %p3046_p3 = scmp.lt.s32.totalorder %s3044_s1, %s3040_s0 }
 0x116   :  { %p3047_p4 = por %p3046_p3, %p3045_p2 }
 0x118   :  { %p3048_p5 = pnand %p3047_p4, %p3041_p1 }
 0x11a   :  { %3051 = shalt.err (!%p3048_p5)
}
 0x11b   :  { %195 = dma.hbm_to_vmem [thread:$0]  %s3322_s20, 16, %s193_s26, [#allocation14]  }
 0x11c   :  { %s3232_s24 = smov [#allocation18]   ;;  %s3233_s13 = smov [#allocation21]  }
 0x11d   :  { %s213_s14 = sshll.u32 %s3232_s24, 4  ;;  %s238_s2 = sshll.u32 %s3233_s13, 4  ;;  %s214_s14 = int_to_ptr.vmem [resolvable:$true] %s213_s14  ;;  %s239_s2 = int_to_ptr.vmem [resolvable:$true] %s238_s2 }
 0x11e   :  { %s3052_s7 = scalar_lea.hbm %s3337_s12, 256 }
 0x11f   :  { %p3053_p6 = scmp.ne.s32.totalorder %s3337_s12, %s3052_s7  ;;  %p3056_p7 = scmp.lt.u32.totalorder %s3052_s7, %s3337_s12 }
 0x121   :  { %p3058_p8 = pnand %p3056_p7, %p3053_p6 }
 0x123   :  { %3061 = shalt.err (!%p3058_p8)
}
 0x124   :  { %s3062_s11 = scalar_lea.vmem %s214_s14, 256  ;;  %p3067_p10 = scmp.lt.s32.totalorder %s214_s14, %s214_s14 }
 0x125   :  { %p3063_p9 = scmp.ne.s32.totalorder %s214_s14, %s3062_s11  ;;  %p3068_p11 = scmp.lt.s32.totalorder %s3062_s11, %s3062_s11 }
 0x127   :  { %p3069_p12 = por %p3068_p11, %p3067_p10 }
 0x129   :  { %p3070_p13 = pnand %p3069_p12, %p3063_p9 }
 0x12b   :  { %3073 = shalt.err (!%p3070_p13)
}
 0x12c   :  { %s3850_s20 = sld [smem:[#allocation49_spill]] }
 0x12d   :  { %219 = dma.hbm_to_vmem [thread:$0]  %s3337_s12, 256, %s214_s14, [#allocation17], %s3226_s10, %s3226_s10, %s3227_s5  }
 0x132   :  { %s3074_s15 = scalar_lea.hbm %s3850_s20, 16 }
 0x133   :  { %p3075_p0 = scmp.ne.s32.totalorder %s3850_s20, %s3074_s15  ;;  %p3078_p1 = scmp.lt.u32.totalorder %s3074_s15, %s3850_s20 }
 0x135   :  { %p3080_p2 = pnand %p3078_p1, %p3075_p0 }
 0x137   :  { %3083 = shalt.err (!%p3080_p2)
}
 0x138   :  { %s3084_s6 = scalar_lea.vmem %s239_s2, 16  ;;  %s3088_s25 = scalar_lea.vmem %s239_s2, 32 }
 0x139   :  { %p3085_p3 = scmp.ne.s32.totalorder %s239_s2, %s3084_s6  ;;  %p3089_p4 = scmp.lt.s32.totalorder %s239_s2, %s239_s2 }
 0x13a   :  { %p3090_p5 = scmp.lt.s32.totalorder %s3088_s25, %s3084_s6 }
 0x13c   :  { %p3091_p6 = por %p3090_p5, %p3089_p4 }
 0x13e   :  { %p3092_p7 = pnand %p3091_p6, %p3085_p3 }
 0x140   :  { %3095 = shalt.err (!%p3092_p7)
}
 0x141   :  { %s3851_s16 = sld [smem:[#allocation51_spill]]  ;;  %s3234_s12 = smov [#allocation24]  }
 0x142   :  { %241 = dma.hbm_to_vmem [thread:$0]  %s3850_s20, 16, %s239_s2, [#allocation20]  }
 0x143   :  { %s259_s18 = sshll.u32 %s3234_s12, 4  ;;  %s3235_s21 = smov [#allocation27]   ;;  %s260_s18 = int_to_ptr.vmem [resolvable:$true] %s259_s18 }
 0x144   :  { %s281_s4 = sshll.u32 %s3235_s21, 4  ;;  %s282_s4 = int_to_ptr.vmem [resolvable:$true] %s281_s4 }
 0x147   :  { %s3096_s29 = scalar_lea.hbm %s3851_s16, 256 }
 0x148   :  { %p3097_p8 = scmp.ne.s32.totalorder %s3851_s16, %s3096_s29  ;;  %p3100_p9 = scmp.lt.u32.totalorder %s3096_s29, %s3851_s16 }
 0x14a   :  { %p3102_p10 = pnand %p3100_p9, %p3097_p8 }
 0x14c   :  { %3105 = shalt.err (!%p3102_p10)
}
 0x14d   :  { %s3106_s22 = scalar_lea.vmem %s260_s18, 256  ;;  %p3111_p12 = scmp.lt.s32.totalorder %s260_s18, %s260_s18 }
 0x14e   :  { %p3107_p11 = scmp.ne.s32.totalorder %s260_s18, %s3106_s22  ;;  %p3112_p13 = scmp.lt.s32.totalorder %s3106_s22, %s3106_s22 }
 0x150   :  { %p3113_p0 = por %p3112_p13, %p3111_p12 }
 0x152   :  { %p3114_p1 = pnand %p3113_p0, %p3107_p11 }
 0x154   :  { %3117 = shalt.err (!%p3114_p1)
}
 0x155   :  { %s3852_s23 = sld [smem:[#allocation52_spill]] }
 0x156   :  { %265 = dma.hbm_to_vmem [thread:$0]  %s3851_s16, 256, %s260_s18, [#allocation23], %s3226_s10, %s3226_s10, %s3227_s5  }
 0x15b   :  { %s3118_s26 = scalar_lea.hbm %s3852_s23, 256 }
 0x15c   :  { %p3119_p2 = scmp.ne.s32.totalorder %s3852_s23, %s3118_s26  ;;  %p3122_p3 = scmp.lt.u32.totalorder %s3118_s26, %s3852_s23 }
 0x15e   :  { %p3124_p4 = pnand %p3122_p3, %p3119_p2 }
 0x160   :  { %3127 = shalt.err (!%p3124_p4)
}
 0x161   :  { %s3128_s3 = scalar_lea.vmem %s282_s4, 256  ;;  %p3133_p6 = scmp.lt.s32.totalorder %s282_s4, %s282_s4 }
 0x162   :  { %p3129_p5 = scmp.ne.s32.totalorder %s282_s4, %s3128_s3  ;;  %p3134_p7 = scmp.lt.s32.totalorder %s3128_s3, %s3128_s3 }
 0x164   :  { %p3135_p8 = por %p3134_p7, %p3133_p6 }
 0x166   :  { %p3136_p9 = pnand %p3135_p8, %p3129_p5 }
 0x168   :  { %3139 = shalt.err (!%p3136_p9)
}
 0x169   :  { %s3853_s28 = sld [smem:[#allocation53_spill]]  ;;  %s3236_s30 = smov [#allocation28]  }
 0x16a   :  { %287 = dma.hbm_to_vmem [thread:$0]  %s3852_s23, 256, %s282_s4, [#allocation26], %s3226_s10, %s3226_s10, %s3227_s5  }
 0x16b   :  { %s294_s8 = sshll.u32 %s3236_s30, 4  ;;  %s295_s8 = int_to_ptr.vmem [resolvable:$true] %s294_s8 }
 0x16f   :  { %s3140_s0 = scalar_lea.hbm %s3853_s28, 16 }
 0x170   :  { %p3141_p10 = scmp.ne.s32.totalorder %s3853_s28, %s3140_s0  ;;  %p3144_p11 = scmp.lt.u32.totalorder %s3140_s0, %s3853_s28 }
 0x172   :  { %p3146_p12 = pnand %p3144_p11, %p3141_p10 }
 0x174   :  { %3149 = shalt.err (!%p3146_p12)
}
 0x175   :  { %s3150_s1 = scalar_lea.vmem %s295_s8, 16  ;;  %s3154_s24 = scalar_lea.vmem %s295_s8, 32 }
 0x176   :  { %p3151_p13 = scmp.ne.s32.totalorder %s295_s8, %s3150_s1  ;;  %p3155_p0 = scmp.lt.s32.totalorder %s295_s8, %s295_s8 }
 0x177   :  { %p3156_p1 = scmp.lt.s32.totalorder %s3154_s24, %s3150_s1 }
 0x179   :  { %p3157_p2 = por %p3156_p1, %p3155_p0 }
 0x17b   :  { %p3158_p3 = pnand %p3157_p2, %p3151_p13 }
 0x17d   :  { %3161 = shalt.err (!%p3158_p3)
}
 0x17e   :  { %297 = dma.hbm_to_vmem [thread:$0]  %s3853_s28, 16, %s295_s8, [#allocation29]  }
 0x17f   :  { %3162 = dma.done.wait [#allocation3], 128  }
 0x180   :  { %3163 = vsyncadd [#allocation3], 4294967168 }
 0x181   :  { %3164 = dma.done.wait [#allocation5], 144  }
 0x182   :  { %3165 = vsyncadd [#allocation5], 4294967152 }
 0x183   :  { %3166 = dma.done.wait [#allocation8], 144  }
 0x184   :  { %3167 = vsyncadd [#allocation8], 4294967152 }
 0x185   :  { %3168 = dma.done.wait [#allocation11], 32  }
 0x186   :  { %3169 = vsyncadd [#allocation11], 4294967264 }
 0x187   :  { %3170 = dma.done.wait [#allocation14], 32  }
 0x188   :  { %3171 = vsyncadd [#allocation14], 4294967264 }
 0x189   :  { %3172 = dma.done.wait [#allocation17], 272  }
 0x18a   :  { %3173 = vsyncadd [#allocation17], 4294967024 }
 0x18b   :  { %3174 = dma.done.wait [#allocation20], 32  }
 0x18c   :  { %3175 = vsyncadd [#allocation20], 4294967264 }
 0x18d   :  { %3176 = dma.done.wait [#allocation23], 272  }
 0x18e   :  { %3177 = vsyncadd [#allocation23], 4294967024 }
 0x18f   :  { %3178 = dma.done.wait [#allocation26], 272  }
 0x190   :  { %3179 = vsyncadd [#allocation26], 4294967024 }
 0x191   :  { %3180 = dma.done.wait [#allocation29], 16  }
 0x192   :  { %3181 = vsyncadd [#allocation29], 4294967280  ;;  %s3854_s10 = sld [smem:[#allocation41_spill]]  ;;  %s3855_s5 = sld [smem:[#allocation40_spill]]  ;;  %v3237_v0 = vmov 0.0   ;;  %vm3238_vm0 = vmmov 0  }
 0x193   :  { %2405 = vmatprep.subr.bf16.mxu0 %v3237_v0  ;;  %2407 = vmatprep.mubr.msk.bf16.mxu0 %vm3238_vm0, %v3237_v0  ;;  %s3856_s14 = sld [smem:[#allocation42_spill]]  ;;  %s3857_s13 = sld [smem:[#allocation43_spill]]  ;;  %vm378_vm1 = vcmask 130048   ;;  %v2621_v5 = vld [vmem:[#allocation6] sm:$0xff]   ;;  %v2622_v6 = vld [vmem:[#allocation2] sm:$0xff]   ;;  %v2623_v17 = vld [vmem:[#allocation9] sm:$0xff]  }
 0x194   :  { %2411 = vmatprep.subr.bf16.mxu1 %v3237_v0  ;;  %2413 = vmatprep.mubr.msk.bf16.mxu1 %vm3238_vm0, %v3237_v0  ;;  %s3858_s2 = sld [smem:[#allocation55_spill]]  ;;  %v2276_v19 = vld [vmem:[#allocation4] ss:$0 sm:$0xff]  ;;  %v2279_v21 = vld [vmem:[#allocation7] ss:$0 sm:$0xff]  ;;  %vm644_vm2 = vcmask 261120  }
 0x195   :  { %2412 = vmatpush3.bf16.msra.mxu1 %v2622_v6  ;;  %v2282_v43 = vld [vmem:[#allocation10] ss:$0 sm:$0xff]  ;;  %s3859_s7 = sld [smem:[#allocation57_spill]]  ;;  %s3860_s11 = sld [smem:[#allocation44_spill]]  ;;  %vm1922_vm3 = vcmask 1041408   ;;  %vm1924_vm4 = vcmask 1043456  }
 0x196   :  { %2423 = vmatprep.subr.bf16.mxu1 %v3237_v0  ;;  %s3861_s20 = sld [smem:[#allocation45_spill]]  ;;  %s3862_s15 = sld [smem:[#allocation46_spill]]  ;;  %vm1926_vm5 = vcmask 1045504   ;;  %vm2048_vm6 = vcmask 254976  }
 0x197   :  { %s3863_s6 = sld [smem:[#allocation47_spill]]  ;;  %s3864_s25 = sld [smem:[#allocation48_spill]] }
 0x198   :  { %v2620_v1 = vld [vmem:[%s3854_s10] sm:$0xff]   ;;  %v368_v3 = vld [vmem:[%s3855_s5 + $0x8] sm:$0xff]  ;;  %s3865_s16 = sld [smem:[#allocation54_spill]]  ;;  %s3866_s12 = sld [smem:[#allocation50_spill]] }
 0x199   :  { %v367_v2 = vld [vmem:[%s3855_s5] sm:$0xff]  ;;  %2406 = vmatpush3.bf16.msra.mxu0 %v2620_v1  ;;  %s3867_s18 = sld [smem:[#allocation56_spill]] }
 0x19a   :  { %v369_v4 = vpack.c.bf16 %v368_v3, %v367_v2  ;;  %2417 = vmatprep.subr.bf16.mxu0 %v3237_v0  ;;  %v2274_v7 = vld [vmem:[%s3856_s14] ss:$0 sm:$0xff]  ;;  %v3541_v29 = vld [vmem:[%s3858_s2 + $0x8] sm:$0xff]  ;;  %v3550_v38 = vld [vmem:[%s3858_s2 + $0x18] sm:$0xff] }
 0x19b   :  { %v2275_v11 = vld [vmem:[%s3857_s13] ss:$0 sm:$0xff]  ;;  %v3555_v41 = vld [vmem:[%s3858_s2 + $0x28] sm:$0xff]  ;;  %v3558_v42 = vld [vmem:[%s3858_s2 + $0x10] sm:$0xff] }
 0x19c   :  { %2408 = vmatmul.mubr.msk.bf16.vlgmr.msra.gmra.mrb[0].mxu0 %vm378_vm1, %v369_v4  ;;  %v3538_v28 = vld [vmem:[%s3858_s2] sm:$0xff]  ;;  %v3574_v58 = vld [vmem:[%s3858_s2 + $0x38] sm:$0xff]  ;;  %v3579_v59 = vld [vmem:[%s3858_s2 + $0x30] sm:$0xff] }
 0x19d   :  { %2419 = vmatprep.mubr.msk.bf16.mxu0 %vm3238_vm0, %v3237_v0  ;;  %2418 = vmatpush3.bf16.msra.mxu0 %v2621_v5  ;;  %v3564_v47 = vld [vmem:[%s3858_s2 + $0x20] sm:$0xff]  ;;  %v3590_v1 = vld [vmem:[%s3859_s7 + $0x10] sm:$0xff] }
 0x19e   :  { %v3593_v4 = vld [vmem:[%s3859_s7] sm:$0xff] }
 0x26f   :  { %v416_v8 = vpop.f32.mrb[0].mxu0 }
 0x270   :  { %v430_v9 = vmul.f32 %v2274_v7, %v416_v8  ;;  %v2409_v10 = vpop.f32.mrb[1].mxu0 }
 0x271   :  { %v419_v12 = vpop.f32.mrb[2].mxu0 }
 0x272   :  { %v431_v13 = vmul.f32 %v2274_v7, %v419_v12  ;;  %v2410_v14 = vpop.f32.mrb[3].mxu0  ;;  %v439_v15 = vadd.f32 %v2275_v11, %v430_v9  ;;  %v3596_v7 = vld [vmem:[%s3859_s7 + $0x18] sm:$0xff] }
 0x274   :  { %v440_v16 = vadd.f32 %v2275_v11, %v431_v13  ;;  %v3600_v11 = vld [vmem:[%s3859_s7 + $0x8] sm:$0xff] }
 0x276   :  { %v459_v18 = vpack.c.bf16 %v440_v16, %v439_v15 }
 0x278   :  { %2414 = vmatmul.mubr.msk.bf16.vlgmr.msra.gmra.mrb[0].mxu1 %vm378_vm1, %v459_v18  ;;  %2420 = vmatmul.mubr.msk.bf16.vlgmr.msra.gmra.mrb[4].mxu0 %vm378_vm1, %v459_v18 }
 0x279   :  { %2424 = vmatpush3.bf16.msra.mxu1 %v2623_v17  ;;  %2425 = vmatprep.mubr.msk.bf16.mxu1 %vm3238_vm0, %v3237_v0 }
 0x280   :  { %2426 = vmatmul.mubr.msk.bf16.vlgmr.msra.gmra.mrb[4].mxu1 %vm378_vm1, %v459_v18 }
 0x34b   :  { %v512_v20 = vpop.f32.mrb[0].mxu1  ;;  %v568_v22 = vpop.f32.mrb[4].mxu0 }
 0x34c   :  { %v3535_v23 = vadd.f32 %v2276_v19, %v512_v20  ;;  %v2415_v24 = vpop.f32.mrb[1].mxu1  ;;  %v2421_v25 = vpop.f32.mrb[5].mxu0  ;;  %v569_v30 = vadd.f32 %v2279_v21, %v568_v22 }
 0x34d   :  { %v515_v26 = vpop.f32.mrb[2].mxu1  ;;  %v571_v27 = vpop.f32.mrb[6].mxu0 }
 0x34e   :  { %v3543_v31 = vadd.f32 %v2276_v19, %v515_v26  ;;  %v572_v32 = vadd.f32 %v2279_v21, %v571_v27  ;;  %v2416_v33 = vpop.f32.mrb[3].mxu1  ;;  %v2422_v34 = vpop.f32.mrb[7].mxu0  ;;  %v631_v36 = vmul.f32 %v3535_v23, %v3538_v28  ;;  %v633_v50 = vmul.f32 %v3535_v23, %v3558_v42  ;;  %v3609_v21 = vld [vmem:[%s3859_s7 + $0x20] sm:$0xff] }
 0x34f   :  { %v635_v54 = vmul.f32 %v3535_v23, %v3564_v47  ;;  %v637_v61 = vmul.f32 %v3535_v23, %v3579_v59 }
 0x350   :  { %v643_v35 = vpack.c.bf16 %v572_v32, %v569_v30  ;;  %v632_v37 = vmul.f32 %v3543_v31, %v3541_v29  ;;  %v634_v45 = vmul.f32 %v3543_v31, %v3550_v38  ;;  %v636_v49 = vmul.f32 %v3543_v31, %v3555_v41  ;;  %v3613_v30 = vld [vmem:[%s3859_s7 + $0x28] sm:$0xff]  ;;  %v3616_v32 = vld [vmem:[%s3859_s7 + $0x30] sm:$0xff] }
 0x351   :  { %v638_v60 = vmul.f32 %v3543_v31, %v3574_v58 }
 0x352   :  { %2561 = vmatprep.subr.msk.bf16.mxu0 %vm644_vm2, %v643_v35  ;;  %v658_v39 = vsel %vm644_vm2, %v643_v35, 0  ;;  %v639_v40 = vpack.c.bf16 %v632_v37, %v631_v36  ;;  %v640_v56 = vpack.c.bf16 %v634_v45, %v633_v50  ;;  %v641_v57 = vpack.c.bf16 %v636_v49, %v635_v54  ;;  %v3620_v36 = vld [vmem:[%s3859_s7 + $0x38] sm:$0xff] }
 0x353   :  { %v624_v44 = vpop.f32.mrb[4].mxu1  ;;  %2430 = vmatpush3.bf16.xpose.msra.mxu0 %v658_v39  ;;  %v642_v62 = vpack.c.bf16 %v638_v60, %v637_v61 }
 0x354   :  { %v2427_v46 = vpop.f32.mrb[5].mxu1  ;;  %2431 = vmatprep.mubr.msk.bf16.mxu0 %vm644_vm2, %v639_v40  ;;  %2449 = vmatprep.subr.bf16.mxu0 %v3237_v0  ;;  %v625_v51 = vadd.f32 %v2282_v43, %v624_v44 }
 0x355   :  { %v627_v48 = vpop.f32.mrb[6].mxu1 }
 0x356   :  { %v628_v52 = vadd.f32 %v2282_v43, %v627_v48  ;;  %v2428_v53 = vpop.f32.mrb[7].mxu1 }
 0x358   :  { %v841_v55 = vpack.c.bf16 %v628_v52, %v625_v51 }
 0x35a   :  { %2432 = vmatmul.mubr.msk.bf16.vlgmr.msra.gmra.mrb[8].mxu0 %vm644_vm2, %v640_v56  ;;  %2439 = vmatprep.subr.bf16.mxu1 %v841_v55 }
 0x35b   :  { %2435 = vmatprep.mubr.msk.bf16.mxu0 %vm644_vm2, %v641_v57  ;;  %2440 = vmatpush3.bf16.msra.mxu1 %v841_v55 }
 0x35c   :  { %2457 = vmatprep.subr.bf16.mxu1 %v3237_v0 }
 0x362   :  { %2436 = vmatmul.mubr.msk.bf16.gmra.mrb[12].mxu0 %vm644_vm2, %v642_v62 }
 0x363   :  { %2453 = vmatprep.mubr.msk.bf16.mxu0 %vm3238_vm0, %v3237_v0 }
 0x42d   :  { %v2433_v63 = vpop.f32.mrb[8].mxu0 }
 0x42e   :  { %v727_v2 = vmul.f32 0.17677669, %v2433_v63  ;;  %v694_v3 = vpop.f32.mrb[9].mxu0 }
 0x42f   :  { %v725_v5 = vmul.f32 0.17677669, %v694_v3  ;;  %v2434_v6 = vpop.f32.mrb[10].mxu0 }
 0x430   :  { %v728_v8 = vmul.f32 0.17677669, %v2434_v6  ;;  %v697_v9 = vpop.f32.mrb[11].mxu0  ;;  %v735_v10 = vadd.f32 %v727_v2, %v3590_v1 }
 0x431   :  { %v726_v12 = vmul.f32 0.17677669, %v697_v9  ;;  %v733_v13 = vadd.f32 %v725_v5, %v3593_v4 }
 0x432   :  { %v747_v14 = vsel %vm378_vm1, %v735_v10, -inf  ;;  %v736_v15 = vadd.f32 %v728_v8, %v3596_v7 }
 0x433   :  { %748 = vmax.xlane.f32.xlu1 %v747_v14  ;;  %v741_v16 = vsel %vm378_vm1, %v733_v13, -inf  ;;  %v734_v17 = vadd.f32 %v726_v12, %v3600_v11 }
 0x434   :  { %742 = vmax.xlane.f32.xlu0 %v741_v16  ;;  %v750_v20 = vsel %vm378_vm1, %v736_v15, -inf }
 0x435   :  { %v2437_v18 = vpop.f32.mrb[12].mxu0  ;;  %v744_v26 = vsel %vm378_vm1, %v734_v17, -inf }
 0x436   :  { %v710_v19 = vpop.f32.mrb[13].mxu0  ;;  %v731_v22 = vmul.f32 0.17677669, %v2437_v18 }
 0x437   :  { %v729_v24 = vmul.f32 0.17677669, %v710_v19  ;;  %751 = vmax.xlane.f32.xlu1 %v750_v20  ;;  %v2438_v25 = vpop.f32.mrb[14].mxu0 }
 0x438   :  { %745 = vmax.xlane.f32.xlu0 %v744_v26  ;;  %v713_v27 = vpop.f32.mrb[15].mxu0  ;;  %v732_v33 = vmul.f32 0.17677669, %v2438_v25  ;;  %v739_v40 = vadd.f32 %v731_v22, %v3616_v32 }
 0x439   :  { %v730_v34 = vmul.f32 0.17677669, %v713_v27  ;;  %v737_v35 = vadd.f32 %v729_v24, %v3609_v21 }
 0x43a   :  { %v740_v44 = vadd.f32 %v732_v33, %v3620_v36  ;;  %v759_v45 = vsel %vm378_vm1, %v739_v40, -inf }
 0x43b   :  { %v753_v37 = vsel %vm378_vm1, %v737_v35, -inf  ;;  %v738_v39 = vadd.f32 %v730_v34, %v3613_v30 }
 0x43c   :  { %754 = vmax.xlane.f32.xlu0 %v753_v37  ;;  %v762_v46 = vsel %vm378_vm1, %v740_v44, -inf }
 0x43d   :  { %v756_v43 = vsel %vm378_vm1, %v738_v39, -inf }
 0x43e   :  { %757 = vmax.xlane.f32.xlu1 %v756_v43 }
 0x440   :  { %760 = vmax.xlane.f32.xlu0 %v759_v45 }
 0x442   :  { %763 = vmax.xlane.f32.xlu1 %v762_v46 }
 0x4c0   :  { %v749_v48 = vpop.xlane.xlu1 %748 }
 0x4c1   :  { %v767_v49 = vsub.f32 %v735_v10, %v749_v48  ;;  %v743_v50 = vpop.xlane.xlu0 %742 }
 0x4c2   :  { %v765_v51 = vsub.f32 %v733_v13, %v743_v50 }
 0x4c3   :  { %v777_v52 = vmul.f32 1.442695, %v767_v49 }
 0x4c4   :  { %v773_v53 = vmul.f32 1.442695, %v765_v51  ;;  %v752_v54 = vpop.xlane.xlu1 %751 }
 0x4c5   :  { %v768_v55 = vsub.f32 %v736_v15, %v752_v54  ;;  %v746_v56 = vpop.xlane.xlu0 %745 }
 0x4c6   :  { %2644 = vpow2.f32 %v773_v53  ;;  %v766_v57 = vsub.f32 %v734_v17, %v746_v56 }
 0x4c7   :  { %2646 = vpow2.f32 %v777_v52  ;;  %v779_v60 = vmul.f32 1.442695, %v768_v55 }
 0x4c8   :  { %v775_v61 = vmul.f32 1.442695, %v766_v57 }
 0x4c9   :  { %v755_v62 = vpop.xlane.xlu0 %754 }
 0x4ca   :  { %2648 = vpow2.f32 %v775_v61  ;;  %v769_v63 = vsub.f32 %v737_v35, %v755_v62 }
 0x4cb   :  { %v758_v2 = vpop.xlane.xlu1 %757  ;;  %2650 = vpow2.f32 %v779_v60 }
 0x4cc   :  { %v781_v3 = vmul.f32 1.442695, %v769_v63  ;;  %v770_v5 = vsub.f32 %v738_v39, %v758_v2 }
 0x4cd   :  { %v761_v6 = vpop.xlane.xlu0 %760 }
 0x4ce   :  { %2652 = vpow2.f32 %v781_v3  ;;  %v783_v8 = vmul.f32 1.442695, %v770_v5  ;;  %v771_v9 = vsub.f32 %v739_v40, %v761_v6 }
 0x4cf   :  { %v764_v10 = vpop.xlane.xlu1 %763 }
 0x4d0   :  { %v2645_v12 = vpop.eup %2644  ;;  %2654 = vpow2.f32 %v783_v8  ;;  %v785_v13 = vmul.f32 1.442695, %v771_v9  ;;  %v772_v14 = vsub.f32 %v740_v44, %v764_v10 }
 0x4d1   :  { %v789_v15 = vsel %vm378_vm1, %v2645_v12, 0.0  ;;  %v2647_v16 = vpop.eup %2646 }
 0x4d2   :  { %2656 = vpow2.f32 %v785_v13  ;;  %v787_v17 = vmul.f32 1.442695, %v772_v14  ;;  %790 = vadd.xlane.f32.xlu0 %v789_v15  ;;  %v795_v19 = vsel %vm378_vm1, %v2647_v16, 0.0 }
 0x4d4   :  { %v2649_v18 = vpop.eup %2648  ;;  %2658 = vpow2.f32 %v787_v17 }
 0x4d5   :  { %v792_v20 = vsel %vm378_vm1, %v2649_v18, 0.0  ;;  %v2651_v22 = vpop.eup %2650 }
 0x4d6   :  { %796 = vadd.xlane.f32.xlu0 %v795_v19  ;;  %793 = vadd.xlane.f32.xlu1 %v792_v20  ;;  %v798_v26 = vsel %vm378_vm1, %v2651_v22, 0.0 }
 0x4d8   :  { %v2653_v24 = vpop.eup %2652 }
 0x4d9   :  { %v801_v25 = vsel %vm378_vm1, %v2653_v24, 0.0 }
 0x4da   :  { %v2655_v27 = vpop.eup %2654  ;;  %802 = vadd.xlane.f32.xlu0 %v801_v25  ;;  %799 = vadd.xlane.f32.xlu1 %v798_v26 }
 0x4db   :  { %v804_v35 = vsel %vm378_vm1, %v2655_v27, 0.0 }
 0x4dc   :  { %v2657_v33 = vpop.eup %2656 }
 0x4dd   :  { %v807_v34 = vsel %vm378_vm1, %v2657_v33, 0.0 }
 0x4de   :  { %v2659_v37 = vpop.eup %2658  ;;  %808 = vadd.xlane.f32.xlu0 %v807_v34  ;;  %805 = vadd.xlane.f32.xlu1 %v804_v35 }
 0x4df   :  { %v810_v39 = vsel %vm378_vm1, %v2659_v37, 0.0 }
 0x4e2   :  { %811 = vadd.xlane.f32.xlu1 %v810_v39 }
 0x55f   :  { %v791_v40 = vpop.xlane.xlu0 %790 }
 0x560   :  { %2660 = vrcp.f32 %v791_v40 }
 0x563   :  { %v797_v43 = vpop.xlane.xlu0 %796  ;;  %v794_v44 = vpop.xlane.xlu1 %793 }
 0x564   :  { %2662 = vrcp.f32 %v794_v44 }
 0x565   :  { %2664 = vrcp.f32 %v797_v43 }
 0x567   :  { %v803_v45 = vpop.xlane.xlu0 %802  ;;  %v800_v46 = vpop.xlane.xlu1 %799 }
 0x568   :  { %2666 = vrcp.f32 %v800_v46 }
 0x569   :  { %2668 = vrcp.f32 %v803_v45 }
 0x56a   :  { %v2661_v50 = vpop.eup %2660 }
 0x56b   :  { %v809_v48 = vpop.xlane.xlu0 %808  ;;  %v806_v49 = vpop.xlane.xlu1 %805  ;;  %v829_v53 = vmul.f32 %v2661_v50, %v2645_v12 }
 0x56c   :  { %2670 = vrcp.f32 %v806_v49 }
 0x56d   :  { %2672 = vrcp.f32 %v809_v48 }
 0x56e   :  { %v2663_v51 = vpop.eup %2662 }
 0x56f   :  { %v812_v52 = vpop.xlane.xlu1 %811  ;;  %v830_v54 = vmul.f32 %v2663_v51, %v2649_v18  ;;  %v2665_v55 = vpop.eup %2664 }
 0x570   :  { %2674 = vrcp.f32 %v812_v52  ;;  %v831_v60 = vmul.f32 %v2665_v55, %v2647_v16 }
 0x571   :  { %v837_v56 = vpack.c.bf16 %v830_v54, %v829_v53 }
 0x572   :  { %v2667_v57 = vpop.eup %2666 }
 0x573   :  { %v832_v61 = vmul.f32 %v2667_v57, %v2651_v22  ;;  %2441 = vmatprep.mubr.msk.bf16.mxu1 %vm378_vm1, %v837_v56  ;;  %v2669_v62 = vpop.eup %2668 }
 0x574   :  { %v833_v5 = vmul.f32 %v2669_v62, %v2653_v24 }
 0x575   :  { %v838_v63 = vpack.c.bf16 %v832_v61, %v831_v60 }
 0x576   :  { %v2671_v2 = vpop.eup %2670 }
 0x577   :  { %v2673_v3 = vpop.eup %2672  ;;  %2442 = vmatmul.mubr.msk.bf16.vlgmr.msra.gmra.mrb[8].mxu1 %vm378_vm1, %v838_v63  ;;  %v834_v6 = vmul.f32 %v2671_v2, %v2655_v27  ;;  %v2625_v63 = vld [vmem:[%s3860_s11 + $0x8] sm:$0xff]  }
 0x578   :  { %v835_v10 = vmul.f32 %v2673_v3, %v2657_v33 }
 0x579   :  { %v839_v9 = vpack.c.bf16 %v834_v6, %v833_v5 }
 0x57a   :  { %v2675_v8 = vpop.eup %2674 }
 0x57b   :  { %v836_v12 = vmul.f32 %v2675_v8, %v2659_v37  ;;  %2445 = vmatprep.mubr.msk.bf16.mxu1 %vm378_vm1, %v839_v9 }
 0x57d   :  { %v840_v13 = vpack.c.bf16 %v836_v12, %v835_v10 }
 0x57f   :  { %2446 = vmatmul.mubr.msk.bf16.gmra.mrb[12].mxu1 %vm378_vm1, %v840_v13 }
 0x580   :  { %2461 = vmatprep.mubr.msk.bf16.mxu1 %vm3238_vm0, %v3237_v0 }
 0x64a   :  { %v2443_v14 = vpop.f32.mrb[8].mxu1 }
 0x64b   :  { %v921_v15 = vmul.f32 %v2443_v14, %v3558_v42  ;;  %v888_v16 = vpop.f32.mrb[9].mxu1 }
 0x64c   :  { %v919_v17 = vmul.f32 %v888_v16, %v3538_v28  ;;  %v2444_v18 = vpop.f32.mrb[10].mxu1  ;;  %v2293_v16 = vld [vmem:[#allocation12] ss:$0 sm:$0xff] }
 0x64d   :  { %v922_v19 = vmul.f32 %v2444_v18, %v3550_v38  ;;  %v891_v20 = vpop.f32.mrb[11].mxu1 }
 0x64e   :  { %v927_v22 = vadd.f32 %v921_v15, %v919_v17  ;;  %v920_v24 = vmul.f32 %v891_v20, %v3541_v29 }
 0x650   :  { %v928_v25 = vadd.f32 %v922_v19, %v920_v24 }
 0x652   :  { %v2447_v26 = vpop.f32.mrb[12].mxu1 }
 0x653   :  { %v904_v27 = vpop.f32.mrb[13].mxu1  ;;  %v925_v37 = vmul.f32 %v2447_v26, %v3579_v59 }
 0x654   :  { %v923_v33 = vmul.f32 %v904_v27, %v3564_v47  ;;  %v2448_v34 = vpop.f32.mrb[14].mxu1 }
 0x655   :  { %v907_v35 = vpop.f32.mrb[15].mxu1  ;;  %v926_v43 = vmul.f32 %v2448_v34, %v3574_v58 }
 0x656   :  { %v929_v39 = vadd.f32 %v927_v22, %v923_v33  ;;  %v924_v40 = vmul.f32 %v907_v35, %v3555_v41 }
 0x658   :  { %v930_v44 = vadd.f32 %v928_v25, %v924_v40  ;;  %v931_v45 = vadd.f32 %v929_v39, %v925_v37 }
 0x65a   :  { %v933_v46 = vadd.f32 %v931_v45, %v3535_v23  ;;  %v932_v48 = vadd.f32 %v930_v44, %v926_v43 }
 0x65c   :  { %v935_v49 = vsel %vm644_vm2, %v933_v46, 0.0  ;;  %v934_v50 = vadd.f32 %v932_v48, %v3543_v31  ;;  %v2624_v31 = vld [vmem:[%s3860_s11] sm:$0xff]  }
 0x65d   :  { %936 = vadd.xlane.f32.xlu0 %v935_v49  ;;  %2450 = vmatpush3.bf16.msra.mxu0 %v2624_v31  ;;  %v2629_v31 = vld [vmem:[%s3862_s15 + $0x8] sm:$0xff]  }
 0x65e   :  { %v938_v51 = vsel %vm644_vm2, %v934_v50, 0.0  ;;  %2451 = vmatprep.subr.bf16.mxu0 %v3237_v0 }
 0x65f   :  { %939 = vadd.xlane.f32.xlu1 %v938_v51 }
 0x661   :  { %2452 = vmatpush3.bf16.msra.mxu0 %v2625_v63 }
 0x662   :  { %2465 = vmatprep.subr.bf16.mxu0 %v3237_v0 }
 0x6ea   :  { %v937_v52 = vpop.xlane.xlu0 %936 }
 0x6eb   :  { %v942_v53 = vmul.f32 0.03125, %v937_v52 }
 0x6ec   :  { %v940_v54 = vpop.xlane.xlu1 %939 }
 0x6ed   :  { %v944_v55 = vsub.f32 %v933_v46, %v942_v53  ;;  %v943_v56 = vmul.f32 0.03125, %v940_v54 }
 0x6ef   :  { %v945_v57 = vsub.f32 %v934_v50, %v943_v56  ;;  %v946_v60 = vmul.f32 %v944_v55, %v944_v55 }
 0x6f1   :  { %v948_v23 = vsel %vm644_vm2, %v946_v60, 0.0  ;;  %v947_v61 = vmul.f32 %v945_v57, %v945_v57 }
 0x6f2   :  { %949 = vadd.xlane.f32.xlu0 %v948_v23  ;;  %v2626_v23 = vld [vmem:[%s3861_s20] sm:$0xff]  }
 0x6f3   :  { %v951_v62 = vsel %vm644_vm2, %v947_v61, 0.0  ;;  %v2627_v61 = vld [vmem:[%s3862_s15] sm:$0xff]   ;;  %2458 = vmatpush3.bf16.msra.mxu1 %v2626_v23 }
 0x6f4   :  { %952 = vadd.xlane.f32.xlu1 %v951_v62  ;;  %2459 = vmatprep.subr.bf16.mxu1 %v3237_v0  ;;  %v2628_v62 = vld [vmem:[%s3861_s20 + $0x8] sm:$0xff]  }
 0x6f7   :  { %2460 = vmatpush3.bf16.msra.mxu1 %v2628_v62 }
 0x6f8   :  { %2473 = vmatprep.subr.bf16.mxu1 %v3237_v0 }
 0x77f   :  { %v950_v2 = vpop.xlane.xlu0 %949 }
 0x780   :  { %v954_v3 = vmul.f32 0.03125, %v950_v2 }
 0x781   :  { %v953_v5 = vpop.xlane.xlu1 %952 }
 0x782   :  { %v956_v6 = vadd.f32 1e-05, %v954_v3  ;;  %v955_v8 = vmul.f32 0.03125, %v953_v5 }
 0x784   :  { %2676 = vrsqrt.f32 %v956_v6  ;;  %v957_v9 = vadd.f32 1e-05, %v955_v8 }
 0x786   :  { %2678 = vrsqrt.f32 %v957_v9 }
 0x78e   :  { %v2677_v10 = vpop.eup %2676 }
 0x78f   :  { %v960_v13 = vmul.f32 %v2677_v10, %v944_v55 }
 0x790   :  { %v2679_v12 = vpop.eup %2678 }
 0x791   :  { %v961_v14 = vmul.f32 %v2679_v12, %v945_v57 }
 0x793   :  { %v962_v15 = vpack.c.bf16 %v961_v14, %v960_v13 }
 0x795   :  { %2454 = vmatmul.mubr.msk.bf16.vlgmr.msra.gmra.mrb[16].mxu0 %vm644_vm2, %v962_v15 }
 0x796   :  { %2469 = vmatprep.mubr.msk.bf16.mxu0 %vm3238_vm0, %v3237_v0  ;;  %2466 = vmatpush3.bf16.msra.mxu0 %v2627_v61 }
 0x797   :  { %2467 = vmatprep.subr.bf16.mxu0 %v3237_v0 }
 0x79a   :  { %2468 = vmatpush3.bf16.msra.mxu0 %v2629_v31 }
 0x868   :  { %v1023_v17 = vpop.f32.mrb[16].mxu0 }
 0x869   :  { %v1024_v18 = vadd.f32 %v2293_v16, %v1023_v17  ;;  %v2455_v19 = vpop.f32.mrb[17].mxu0  ;;  %v2297_v17 = vld [vmem:[#allocation13] ss:$0 sm:$0xff] }
 0x86a   :  { %v1026_v20 = vpop.f32.mrb[18].mxu0  ;;  %v2301_v19 = vld [vmem:[#allocation15] ss:$0 sm:$0xff] }
 0x86b   :  { %v1030_v22 = vsub.f32 0.0, %v1024_v18  ;;  %v1027_v24 = vadd.f32 %v2293_v16, %v1026_v20  ;;  %v2456_v25 = vpop.f32.mrb[19].mxu0  ;;  %v2631_v16 = vld [vmem:[%s3863_s6 + $0x8] sm:$0xff]  }
 0x86d   :  { %v1032_v26 = vmul.f32 1.442695, %v1030_v22  ;;  %v1031_v27 = vsub.f32 0.0, %v1027_v24 }
 0x86f   :  { %2680 = vpow2.f32 %v1032_v26  ;;  %v1034_v33 = vmul.f32 1.442695, %v1031_v27 }
 0x871   :  { %2682 = vpow2.f32 %v1034_v33 }
 0x879   :  { %v2681_v34 = vpop.eup %2680 }
 0x87a   :  { %v1036_v35 = vadd.f32 1.0, %v2681_v34 }
 0x87b   :  { %v2683_v37 = vpop.eup %2682 }
 0x87c   :  { %2684 = vrcp.f32 %v1036_v35  ;;  %v1037_v39 = vadd.f32 1.0, %v2683_v37 }
 0x87e   :  { %2686 = vrcp.f32 %v1037_v39 }
 0x886   :  { %v2685_v40 = vpop.eup %2684 }
 0x887   :  { %v1042_v43 = vadd.f32 %v2685_v40, %v960_v13 }
 0x888   :  { %v2687_v44 = vpop.eup %2686 }
 0x889   :  { %v1044_v45 = vsel %vm644_vm2, %v1042_v43, 0.0  ;;  %v1043_v46 = vadd.f32 %v2687_v44, %v961_v14  ;;  %v2630_v14 = vld [vmem:[%s3863_s6] sm:$0xff]  }
 0x88a   :  { %1045 = vadd.xlane.f32.xlu0 %v1044_v45 }
 0x88b   :  { %v1047_v48 = vsel %vm644_vm2, %v1043_v46, 0.0 }
 0x88c   :  { %1048 = vadd.xlane.f32.xlu1 %v1047_v48  ;;  %v2305_v48 = vld [vmem:[#allocation16] ss:$0 sm:$0xff] }
 0x917   :  { %v1046_v49 = vpop.xlane.xlu0 %1045 }
 0x918   :  { %v1050_v50 = vmul.f32 0.03125, %v1046_v49 }
 0x919   :  { %v1049_v51 = vpop.xlane.xlu1 %1048 }
 0x91a   :  { %v1052_v52 = vsub.f32 %v1042_v43, %v1050_v50  ;;  %v1051_v53 = vmul.f32 0.03125, %v1049_v51 }
 0x91c   :  { %v1053_v54 = vsub.f32 %v1043_v46, %v1051_v53  ;;  %v1054_v55 = vmul.f32 %v1052_v52, %v1052_v52 }
 0x91e   :  { %v1056_v56 = vsel %vm644_vm2, %v1054_v55, 0.0  ;;  %v1055_v57 = vmul.f32 %v1053_v54, %v1053_v54 }
 0x91f   :  { %1057 = vadd.xlane.f32.xlu0 %v1056_v56 }
 0x920   :  { %v1059_v60 = vsel %vm644_vm2, %v1055_v57, 0.0 }
 0x921   :  { %1060 = vadd.xlane.f32.xlu1 %v1059_v60 }
 0x9ac   :  { %v1058_v63 = vpop.xlane.xlu0 %1057 }
 0x9ad   :  { %v1062_v2 = vmul.f32 0.03125, %v1058_v63 }
 0x9ae   :  { %v1061_v3 = vpop.xlane.xlu1 %1060 }
 0x9af   :  { %v1064_v5 = vadd.f32 1e-05, %v1062_v2  ;;  %v1063_v6 = vmul.f32 0.03125, %v1061_v3 }
 0x9b1   :  { %2688 = vrsqrt.f32 %v1064_v5  ;;  %v1065_v8 = vadd.f32 1e-05, %v1063_v6 }
 0x9b3   :  { %2690 = vrsqrt.f32 %v1065_v8 }
 0x9bb   :  { %v2689_v9 = vpop.eup %2688 }
 0x9bc   :  { %v1068_v12 = vmul.f32 %v2689_v9, %v1052_v52 }
 0x9bd   :  { %v2691_v10 = vpop.eup %2690 }
 0x9be   :  { %v1069_v13 = vmul.f32 %v2691_v10, %v1053_v54 }
 0x9c0   :  { %v1070_v15 = vpack.c.bf16 %v1069_v13, %v1068_v12 }
 0x9c2   :  { %2462 = vmatmul.mubr.msk.bf16.vlgmr.msra.gmra.mrb[16].mxu1 %vm644_vm2, %v1070_v15  ;;  %2470 = vmatmul.mubr.msk.bf16.vlgmr.msra.gmra.mrb[20].mxu0 %vm644_vm2, %v1070_v15 }
 0x9c3   :  { %2474 = vmatpush3.bf16.msra.mxu1 %v2630_v14  ;;  %2477 = vmatprep.mubr.msk.bf16.mxu1 %vm3238_vm0, %v3237_v0 }
 0x9c4   :  { %2475 = vmatprep.subr.bf16.mxu1 %v3237_v0 }
 0x9c7   :  { %2476 = vmatpush3.bf16.msra.mxu1 %v2631_v16 }
 0x9ca   :  { %2478 = vmatmul.mubr.msk.bf16.vlgmr.msra.gmra.mrb[20].mxu1 %vm644_vm2, %v1070_v15 }
 0xa95   :  { %v1131_v18 = vpop.f32.mrb[16].mxu1  ;;  %v1195_v20 = vpop.f32.mrb[20].mxu0 }
 0xa96   :  { %v3683_v22 = vadd.f32 %v2297_v17, %v1131_v18  ;;  %v2463_v24 = vpop.f32.mrb[17].mxu1  ;;  %v2471_v25 = vpop.f32.mrb[21].mxu0  ;;  %v1196_v33 = vadd.f32 %v2301_v19, %v1195_v20 }
 0xa97   :  { %v1134_v26 = vpop.f32.mrb[18].mxu1  ;;  %v1198_v27 = vpop.f32.mrb[22].mxu0 }
 0xa98   :  { %v3685_v34 = vadd.f32 %v2297_v17, %v1134_v26  ;;  %v1199_v35 = vadd.f32 %v2301_v19, %v1198_v27  ;;  %v2464_v37 = vpop.f32.mrb[19].mxu1  ;;  %v2472_v39 = vpop.f32.mrb[23].mxu0  ;;  %v1266_v43 = vmul.f32 %v3683_v22, %v3538_v28  ;;  %v1268_v52 = vmul.f32 %v3683_v22, %v3558_v42 }
 0xa99   :  { %v1270_v56 = vmul.f32 %v3683_v22, %v3564_v47  ;;  %v1272_v62 = vmul.f32 %v3683_v22, %v3579_v59 }
 0xa9a   :  { %v1278_v40 = vpack.c.bf16 %v1199_v35, %v1196_v33  ;;  %v1267_v44 = vmul.f32 %v3685_v34, %v3541_v29  ;;  %v1269_v50 = vmul.f32 %v3685_v34, %v3550_v38  ;;  %v1271_v29 = vmul.f32 %v3685_v34, %v3555_v41 }
 0xa9b   :  { %v1273_v61 = vmul.f32 %v3685_v34, %v3574_v58 }
 0xa9c   :  { %2562 = vmatprep.subr.msk.bf16.mxu0 %vm644_vm2, %v1278_v40  ;;  %v1292_v45 = vsel %vm644_vm2, %v1278_v40, 0  ;;  %v1274_v46 = vpack.c.bf16 %v1267_v44, %v1266_v43  ;;  %v1275_v60 = vpack.c.bf16 %v1269_v50, %v1268_v52  ;;  %v1276_v23 = vpack.c.bf16 %v1271_v29, %v1270_v56 }
 0xa9d   :  { %v1259_v49 = vpop.f32.mrb[20].mxu1  ;;  %2482 = vmatpush3.bf16.xpose.msra.mxu0 %v1292_v45  ;;  %v1277_v31 = vpack.c.bf16 %v1273_v61, %v1272_v62 }
 0xa9e   :  { %v2479_v51 = vpop.f32.mrb[21].mxu1  ;;  %2483 = vmatprep.mubr.msk.bf16.mxu0 %vm644_vm2, %v1274_v46  ;;  %2501 = vmatprep.subr.bf16.mxu0 %v3237_v0  ;;  %v1260_v53 = vadd.f32 %v2305_v48, %v1259_v49 }
 0xa9f   :  { %v1262_v28 = vpop.f32.mrb[22].mxu1 }
 0xaa0   :  { %v1263_v54 = vadd.f32 %v2305_v48, %v1262_v28  ;;  %v2480_v55 = vpop.f32.mrb[23].mxu1 }
 0xaa2   :  { %v1475_v57 = vpack.c.bf16 %v1263_v54, %v1260_v53 }
 0xaa4   :  { %2484 = vmatmul.mubr.msk.bf16.vlgmr.msra.gmra.mrb[24].mxu0 %vm644_vm2, %v1275_v60  ;;  %2491 = vmatprep.subr.bf16.mxu1 %v1475_v57 }
 0xaa5   :  { %2487 = vmatprep.mubr.msk.bf16.mxu0 %vm644_vm2, %v1276_v23  ;;  %2492 = vmatpush3.bf16.msra.mxu1 %v1475_v57 }
 0xaa6   :  { %2509 = vmatprep.subr.bf16.mxu1 %v3237_v0 }
 0xaac   :  { %2488 = vmatmul.mubr.msk.bf16.gmra.mrb[28].mxu0 %vm644_vm2, %v1277_v31 }
 0xaad   :  { %2505 = vmatprep.mubr.msk.bf16.mxu0 %vm3238_vm0, %v3237_v0 }
 0xb77   :  { %v2485_v63 = vpop.f32.mrb[24].mxu0 }
 0xb78   :  { %v1328_v2 = vpop.f32.mrb[25].mxu0  ;;  %v1361_v3 = vmul.f32 0.17677669, %v2485_v63 }
 0xb79   :  { %v1359_v5 = vmul.f32 0.17677669, %v1328_v2  ;;  %v2486_v6 = vpop.f32.mrb[26].mxu0 }
 0xb7a   :  { %v1331_v8 = vpop.f32.mrb[27].mxu0  ;;  %v1362_v9 = vmul.f32 0.17677669, %v2486_v6  ;;  %v1369_v15 = vadd.f32 %v1361_v3, %v3590_v1 }
 0xb7b   :  { %v1360_v10 = vmul.f32 0.17677669, %v1331_v8  ;;  %v1367_v12 = vadd.f32 %v1359_v5, %v3593_v4 }
 0xb7c   :  { %v1370_v18 = vadd.f32 %v1362_v9, %v3596_v7  ;;  %v1381_v26 = vsel %vm378_vm1, %v1369_v15, -inf }
 0xb7d   :  { %v1375_v13 = vsel %vm378_vm1, %v1367_v12, -inf  ;;  %v1368_v14 = vadd.f32 %v1360_v10, %v3600_v11 }
 0xb7e   :  { %1376 = vmax.xlane.f32.xlu0 %v1375_v13  ;;  %v1384_v11 = vsel %vm378_vm1, %v1370_v18, -inf }
 0xb7f   :  { %v2489_v16 = vpop.f32.mrb[28].mxu0  ;;  %v1378_v17 = vsel %vm378_vm1, %v1368_v14, -inf }
 0xb80   :  { %1379 = vmax.xlane.f32.xlu1 %v1378_v17  ;;  %v1344_v19 = vpop.f32.mrb[29].mxu0  ;;  %v1365_v20 = vmul.f32 0.17677669, %v2489_v16 }
 0xb81   :  { %v1363_v24 = vmul.f32 0.17677669, %v1344_v19  ;;  %v2490_v25 = vpop.f32.mrb[30].mxu0 }
 0xb82   :  { %1382 = vmax.xlane.f32.xlu0 %v1381_v26  ;;  %v1347_v4 = vpop.f32.mrb[31].mxu0  ;;  %v1366_v27 = vmul.f32 0.17677669, %v2490_v25  ;;  %v1373_v37 = vadd.f32 %v1365_v20, %v3616_v32 }
 0xb83   :  { %v1364_v33 = vmul.f32 0.17677669, %v1347_v4  ;;  %v1371_v1 = vadd.f32 %v1363_v24, %v3609_v21 }
 0xb84   :  { %1385 = vmax.xlane.f32.xlu1 %v1384_v11  ;;  %v1374_v40 = vadd.f32 %v1366_v27, %v3620_v36  ;;  %v1393_v43 = vsel %vm378_vm1, %v1373_v37, -inf }
 0xb85   :  { %v1387_v35 = vsel %vm378_vm1, %v1371_v1, -inf  ;;  %v1372_v7 = vadd.f32 %v1364_v33, %v3613_v30 }
 0xb86   :  { %1388 = vmax.xlane.f32.xlu0 %v1387_v35  ;;  %v1396_v44 = vsel %vm378_vm1, %v1374_v40, -inf }
 0xb87   :  { %v1390_v39 = vsel %vm378_vm1, %v1372_v7, -inf }
 0xb88   :  { %1391 = vmax.xlane.f32.xlu1 %v1390_v39 }
 0xb8a   :  { %1394 = vmax.xlane.f32.xlu0 %v1393_v43 }
 0xb8c   :  { %1397 = vmax.xlane.f32.xlu1 %v1396_v44 }
 0xc0b   :  { %v1377_v21 = vpop.xlane.xlu0 %1376 }
 0xc0c   :  { %v1399_v45 = vsub.f32 %v1367_v12, %v1377_v21 }
 0xc0d   :  { %v1380_v46 = vpop.xlane.xlu1 %1379 }
 0xc0e   :  { %v1407_v48 = vmul.f32 1.442695, %v1399_v45  ;;  %v1400_v49 = vsub.f32 %v1368_v14, %v1380_v46 }
 0xc0f   :  { %v1383_v30 = vpop.xlane.xlu0 %1382 }
 0xc10   :  { %2692 = vpow2.f32 %v1407_v48  ;;  %v1409_v32 = vmul.f32 1.442695, %v1400_v49  ;;  %v1401_v50 = vsub.f32 %v1369_v15, %v1383_v30 }
 0xc11   :  { %v1386_v51 = vpop.xlane.xlu1 %1385 }
 0xc12   :  { %2694 = vpow2.f32 %v1409_v32  ;;  %v1411_v28 = vmul.f32 1.442695, %v1401_v50  ;;  %v1402_v36 = vsub.f32 %v1370_v18, %v1386_v51 }
 0xc13   :  { %v1389_v29 = vpop.xlane.xlu0 %1388 }
 0xc14   :  { %2696 = vpow2.f32 %v1411_v28  ;;  %v1413_v52 = vmul.f32 1.442695, %v1402_v36  ;;  %v1403_v53 = vsub.f32 %v1371_v1, %v1389_v29 }
 0xc15   :  { %v1392_v54 = vpop.xlane.xlu1 %1391 }
 0xc16   :  { %2698 = vpow2.f32 %v1413_v52  ;;  %v1415_v55 = vmul.f32 1.442695, %v1403_v53  ;;  %v1404_v56 = vsub.f32 %v1372_v7, %v1392_v54 }
 0xc17   :  { %v1395_v57 = vpop.xlane.xlu0 %1394 }
 0xc18   :  { %2700 = vpow2.f32 %v1415_v55  ;;  %v1417_v60 = vmul.f32 1.442695, %v1404_v56  ;;  %v1405_v23 = vsub.f32 %v1373_v37, %v1395_v57  ;;  %v2764_v56 = vld [vmem:[%s3858_s2] sm:$0xff] }
 0xc19   :  { %v1398_v61 = vpop.xlane.xlu1 %1397 }
 0xc1a   :  { %v2693_v62 = vpop.eup %2692  ;;  %2702 = vpow2.f32 %v1417_v60  ;;  %v1419_v31 = vmul.f32 1.442695, %v1405_v23  ;;  %v1406_v63 = vsub.f32 %v1374_v40, %v1398_v61 }
 0xc1b   :  { %v1423_v2 = vsel %vm378_vm1, %v2693_v62, 0.0 }
 0xc1c   :  { %v2695_v3 = vpop.eup %2694  ;;  %2704 = vpow2.f32 %v1419_v31  ;;  %v1421_v5 = vmul.f32 1.442695, %v1406_v63  ;;  %1424 = vadd.xlane.f32.xlu0 %v1423_v2  ;;  %v2765_v31 = vld [vmem:[%s3858_s2 + $0x8] sm:$0xff] }
 0xc1d   :  { %v1426_v6 = vsel %vm378_vm1, %v2695_v3, 0.0 }
 0xc1e   :  { %v2697_v8 = vpop.eup %2696  ;;  %2706 = vpow2.f32 %v1421_v5  ;;  %1427 = vadd.xlane.f32.xlu1 %v1426_v6 }
 0xc1f   :  { %v1429_v9 = vsel %vm378_vm1, %v2697_v8, 0.0 }
 0xc20   :  { %v2699_v10 = vpop.eup %2698  ;;  %1430 = vadd.xlane.f32.xlu0 %v1429_v9 }
 0xc21   :  { %v1432_v12 = vsel %vm378_vm1, %v2699_v10, 0.0 }
 0xc22   :  { %v2701_v13 = vpop.eup %2700  ;;  %1433 = vadd.xlane.f32.xlu1 %v1432_v12 }
 0xc23   :  { %v1435_v14 = vsel %vm378_vm1, %v2701_v13, 0.0 }
 0xc24   :  { %v2703_v15 = vpop.eup %2702  ;;  %1436 = vadd.xlane.f32.xlu0 %v1435_v14 }
 0xc25   :  { %v1438_v16 = vsel %vm378_vm1, %v2703_v15, 0.0 }
 0xc26   :  { %v2705_v17 = vpop.eup %2704  ;;  %1439 = vadd.xlane.f32.xlu1 %v1438_v16 }
 0xc27   :  { %v1441_v18 = vsel %vm378_vm1, %v2705_v17, 0.0 }
 0xc28   :  { %v2707_v19 = vpop.eup %2706  ;;  %1442 = vadd.xlane.f32.xlu0 %v1441_v18 }
 0xc29   :  { %v1444_v20 = vsel %vm378_vm1, %v2707_v19, 0.0 }
 0xc2a   :  { %1445 = vadd.xlane.f32.xlu1 %v1444_v20 }
 0xca9   :  { %v1425_v24 = vpop.xlane.xlu0 %1424 }
 0xcaa   :  { %2708 = vrcp.f32 %v1425_v24 }
 0xcab   :  { %v1428_v25 = vpop.xlane.xlu1 %1427 }
 0xcac   :  { %2710 = vrcp.f32 %v1428_v25 }
 0xcad   :  { %v1431_v26 = vpop.xlane.xlu0 %1430 }
 0xcae   :  { %2712 = vrcp.f32 %v1431_v26 }
 0xcaf   :  { %v1434_v4 = vpop.xlane.xlu1 %1433 }
 0xcb0   :  { %2714 = vrcp.f32 %v1434_v4 }
 0xcb1   :  { %v1437_v27 = vpop.xlane.xlu0 %1436 }
 0xcb2   :  { %2716 = vrcp.f32 %v1437_v27  ;;  %v2632_v27 = vld [vmem:[#allocation18] sm:$0xff]  }
 0xcb3   :  { %v1440_v33 = vpop.xlane.xlu1 %1439  ;;  %2502 = vmatpush3.bf16.msra.mxu0 %v2632_v27 }
 0xcb4   :  { %v2709_v11 = vpop.eup %2708  ;;  %2718 = vrcp.f32 %v1440_v33  ;;  %2503 = vmatprep.subr.bf16.mxu0 %v3237_v0 }
 0xcb5   :  { %v1443_v1 = vpop.xlane.xlu0 %1442  ;;  %v1463_v37 = vmul.f32 %v2709_v11, %v2693_v62 }
 0xcb6   :  { %v2711_v35 = vpop.eup %2710  ;;  %2720 = vrcp.f32 %v1443_v1 }
 0xcb7   :  { %v1446_v7 = vpop.xlane.xlu1 %1445  ;;  %v1464_v39 = vmul.f32 %v2711_v35, %v2695_v3 }
 0xcb8   :  { %v2713_v40 = vpop.eup %2712  ;;  %2722 = vrcp.f32 %v1446_v7 }
 0xcb9   :  { %v1471_v43 = vpack.c.bf16 %v1464_v39, %v1463_v37  ;;  %v1465_v21 = vmul.f32 %v2713_v40, %v2697_v8 }
 0xcba   :  { %v2715_v44 = vpop.eup %2714 }
 0xcbb   :  { %v1466_v45 = vmul.f32 %v2715_v44, %v2699_v10  ;;  %2493 = vmatprep.mubr.msk.bf16.mxu1 %vm378_vm1, %v1471_v43 }
 0xcbc   :  { %v2717_v46 = vpop.eup %2716 }
 0xcbd   :  { %v1472_v48 = vpack.c.bf16 %v1466_v45, %v1465_v21  ;;  %v1467_v30 = vmul.f32 %v2717_v46, %v2701_v13  ;;  %v2317_v45 = vld [vmem:[#allocation19] ss:$0 sm:$0xff] }
 0xcbe   :  { %v2719_v49 = vpop.eup %2718 }
 0xcbf   :  { %2494 = vmatmul.mubr.msk.bf16.vlgmr.msra.gmra.mrb[24].mxu1 %vm378_vm1, %v1472_v48  ;;  %v1468_v32 = vmul.f32 %v2719_v49, %v2703_v15 }
 0xcc0   :  { %v2721_v50 = vpop.eup %2720 }
 0xcc1   :  { %v1473_v51 = vpack.c.bf16 %v1468_v32, %v1467_v30  ;;  %v1469_v36 = vmul.f32 %v2721_v50, %v2705_v17 }
 0xcc2   :  { %v2723_v28 = vpop.eup %2722 }
 0xcc3   :  { %2497 = vmatprep.mubr.msk.bf16.mxu1 %vm378_vm1, %v1473_v51  ;;  %v1470_v29 = vmul.f32 %v2723_v28, %v2707_v19 }
 0xcc5   :  { %v1474_v52 = vpack.c.bf16 %v1470_v29, %v1469_v36 }
 0xcc7   :  { %2498 = vmatmul.mubr.msk.bf16.gmra.mrb[28].mxu1 %vm378_vm1, %v1474_v52 }
 0xcc8   :  { %2513 = vmatprep.mubr.msk.bf16.mxu1 %vm3238_vm0, %v3237_v0 }
 0xd92   :  { %v2495_v53 = vpop.f32.mrb[24].mxu1 }
 0xd93   :  { %v1555_v54 = vmul.f32 %v2495_v53, %v3558_v42  ;;  %v1522_v55 = vpop.f32.mrb[25].mxu1 }
 0xd94   :  { %v1553_v57 = vmul.f32 %v2764_v56, %v1522_v55  ;;  %v2496_v60 = vpop.f32.mrb[26].mxu1 }
 0xd95   :  { %v1556_v23 = vmul.f32 %v2496_v60, %v3550_v38  ;;  %v1525_v61 = vpop.f32.mrb[27].mxu1 }
 0xd96   :  { %v1561_v62 = vadd.f32 %v1555_v54, %v1553_v57  ;;  %v1554_v63 = vmul.f32 %v2765_v31, %v1525_v61 }
 0xd98   :  { %v1562_v2 = vadd.f32 %v1556_v23, %v1554_v63 }
 0xd9a   :  { %v2499_v3 = vpop.f32.mrb[28].mxu1 }
 0xd9b   :  { %v1538_v5 = vpop.f32.mrb[29].mxu1  ;;  %v1559_v10 = vmul.f32 %v2499_v3, %v3579_v59 }
 0xd9c   :  { %v1557_v6 = vmul.f32 %v1538_v5, %v3564_v47  ;;  %v2500_v8 = vpop.f32.mrb[30].mxu1 }
 0xd9d   :  { %v1541_v9 = vpop.f32.mrb[31].mxu1  ;;  %v1560_v13 = vmul.f32 %v2500_v8, %v3574_v58 }
 0xd9e   :  { %v1563_v42 = vadd.f32 %v1561_v62, %v1557_v6  ;;  %v1558_v12 = vmul.f32 %v1541_v9, %v3555_v41 }
 0xda0   :  { %v1564_v14 = vadd.f32 %v1562_v2, %v1558_v12  ;;  %v1565_v38 = vadd.f32 %v1563_v42, %v1559_v10  ;;  %v2634_v12 = vld [vmem:[%s3864_s25] sm:$0xff]  }
 0xda1   :  { %2510 = vmatpush3.bf16.msra.mxu1 %v2634_v12 }
 0xda2   :  { %v1567_v15 = vadd.f32 %v1565_v38, %v3683_v22  ;;  %v1566_v16 = vadd.f32 %v1564_v14, %v1560_v13  ;;  %2511 = vmatprep.subr.bf16.mxu1 %v3237_v0  ;;  %v2635_v13 = vld [vmem:[%s3864_s25 + $0x8] sm:$0xff]   ;;  %v1715_v14 = vld [vmem:[%s3865_s16] sm:$0x3] }
 0xda3   :  { %v2636_v38 = vld [vmem:[%s3866_s12] sm:$0xff]  }
 0xda4   :  { %v1569_v17 = vsel %vm644_vm2, %v1567_v15, 0.0  ;;  %v1568_v18 = vadd.f32 %v1566_v16, %v3685_v34  ;;  %v2633_v34 = vld [vmem:[#allocation18 + $0x8] sm:$0xff]  }
 0xda5   :  { %1570 = vadd.xlane.f32.xlu0 %v1569_v17  ;;  %2504 = vmatpush3.bf16.msra.mxu0 %v2633_v34  ;;  %v2638_v16 = vld [vmem:[%s3866_s12 + $0x8] sm:$0xff]   ;;  %v2637_v17 = vld [vmem:[#allocation24] sm:$0xff]  }
 0xda6   :  { %v1572_v47 = vsel %vm644_vm2, %v1568_v18, 0.0  ;;  %2517 = vmatprep.subr.bf16.mxu0 %v3237_v0  ;;  %2512 = vmatpush3.bf16.msra.mxu1 %v2635_v13 }
 0xda7   :  { %1573 = vadd.xlane.f32.xlu1 %v1572_v47  ;;  %2525 = vmatprep.subr.bf16.mxu1 %v3237_v0 }
 0xe32   :  { %v1571_v19 = vpop.xlane.xlu0 %1570 }
 0xe33   :  { %v1575_v59 = vmul.f32 0.03125, %v1571_v19 }
 0xe34   :  { %v1574_v20 = vpop.xlane.xlu1 %1573 }
 0xe35   :  { %v1577_v24 = vsub.f32 %v1567_v15, %v1575_v59  ;;  %v1576_v41 = vmul.f32 0.03125, %v1574_v20  ;;  %v1716_v15 = vpack.c.bf16 %v1715_v14, %v1715_v14 }
 0xe37   :  { %v1578_v25 = vsub.f32 %v1568_v18, %v1576_v41  ;;  %v1579_v58 = vmul.f32 %v1577_v24, %v1577_v24  ;;  %2514 = vmatmul.mubr.msk.bf16.vlgmr.msra.gmra.mrb[32].mxu1 %vm644_vm2, %v1716_v15  ;;  %v2639_v18 = vld [vmem:[#allocation24 + $0x8] sm:$0xff]  }
 0xe38   :  { %2526 = vmatpush3.bf16.msra.mxu1 %v2637_v17  ;;  %2529 = vmatprep.mubr.msk.bf16.mxu1 %vm3238_vm0, %v3237_v0 }
 0xe39   :  { %v1581_v26 = vsel %vm644_vm2, %v1579_v58, 0.0  ;;  %v1580_v4 = vmul.f32 %v1578_v25, %v1578_v25  ;;  %2527 = vmatprep.subr.bf16.mxu1 %v3237_v0 }
 0xe3a   :  { %1582 = vadd.xlane.f32.xlu0 %v1581_v26 }
 0xe3b   :  { %v1584_v22 = vsel %vm644_vm2, %v1580_v4, 0.0 }
 0xe3c   :  { %1585 = vadd.xlane.f32.xlu1 %v1584_v22  ;;  %2528 = vmatpush3.bf16.msra.mxu1 %v2639_v18 }
 0xe3d   :  { %2539 = vmatprep.subr.bf16.mxu1 %v3237_v0 }
 0xec7   :  { %v1583_v33 = vpop.xlane.xlu0 %1582 }
 0xec8   :  { %v1587_v11 = vmul.f32 0.03125, %v1583_v33 }
 0xec9   :  { %v1586_v1 = vpop.xlane.xlu1 %1585 }
 0xeca   :  { %v1589_v35 = vadd.f32 1e-05, %v1587_v11  ;;  %v1588_v7 = vmul.f32 0.03125, %v1586_v1 }
 0xecc   :  { %2724 = vrsqrt.f32 %v1589_v35  ;;  %v1590_v37 = vadd.f32 1e-05, %v1588_v7 }
 0xece   :  { %2726 = vrsqrt.f32 %v1590_v37 }
 0xed6   :  { %v2725_v39 = vpop.eup %2724 }
 0xed7   :  { %v1593_v43 = vmul.f32 %v2725_v39, %v1577_v24 }
 0xed8   :  { %v2727_v40 = vpop.eup %2726 }
 0xed9   :  { %v1594_v44 = vmul.f32 %v2727_v40, %v1578_v25 }
 0xedb   :  { %v1595_v21 = vpack.c.bf16 %v1594_v44, %v1593_v43 }
 0xedd   :  { %2506 = vmatmul.mubr.msk.bf16.vlgmr.msra.gmra.mrb[32].mxu0 %vm644_vm2, %v1595_v21 }
 0xede   :  { %2521 = vmatprep.mubr.msk.bf16.mxu0 %vm3238_vm0, %v3237_v0  ;;  %2518 = vmatpush3.bf16.msra.mxu0 %v2636_v38 }
 0xedf   :  { %2519 = vmatprep.subr.bf16.mxu0 %v3237_v0 }
 0xee2   :  { %2520 = vmatpush3.bf16.msra.mxu0 %v2638_v16 }
 0xee3   :  { %2533 = vmatprep.subr.bf16.mxu0 %v3237_v0 }
 0xfb0   :  { %v1656_v46 = vpop.f32.mrb[32].mxu0 }
 0xfb1   :  { %v1657_v48 = vadd.f32 %v2317_v45, %v1656_v46  ;;  %v2507_v49 = vpop.f32.mrb[33].mxu0  ;;  %v2321_v46 = vld [vmem:[#allocation21] ss:$0 sm:$0xff] }
 0xfb2   :  { %v1659_v30 = vpop.f32.mrb[34].mxu0 }
 0xfb3   :  { %v1663_v32 = vsub.f32 0.0, %v1657_v48  ;;  %v1660_v50 = vadd.f32 %v2317_v45, %v1659_v30  ;;  %v2508_v51 = vpop.f32.mrb[35].mxu0 }
 0xfb5   :  { %v1665_v28 = vmul.f32 1.442695, %v1663_v32  ;;  %v1664_v36 = vsub.f32 0.0, %v1660_v50  ;;  %v2325_v50 = vld [vmem:[#allocation22] ss:$0 sm:$0xff] }
 0xfb7   :  { %2728 = vpow2.f32 %v1665_v28  ;;  %v1667_v29 = vmul.f32 1.442695, %v1664_v36  ;;  %v2329_v28 = vld [vmem:[#allocation25] ss:$0 sm:$0xff] }
 0xfb9   :  { %2730 = vpow2.f32 %v1667_v29 }
 0xfc1   :  { %v2729_v52 = vpop.eup %2728 }
 0xfc2   :  { %v1669_v53 = vadd.f32 1.0, %v2729_v52 }
 0xfc3   :  { %v2731_v54 = vpop.eup %2730 }
 0xfc4   :  { %2732 = vrcp.f32 %v1669_v53  ;;  %v1670_v55 = vadd.f32 1.0, %v2731_v54 }
 0xfc6   :  { %2734 = vrcp.f32 %v1670_v55 }
 0xfce   :  { %v2733_v56 = vpop.eup %2732 }
 0xfcf   :  { %v1675_v57 = vadd.f32 %v2733_v56, %v1593_v43  ;;  %v1777_v43 = vpop.f32.mrb[32].mxu1 }
 0xfd0   :  { %v2735_v60 = vpop.eup %2734  ;;  %v3786_v48 = vadd.f32 %v2321_v46, %v1777_v43  ;;  %v2640_v46 = vld [vmem:[#allocation27] sm:$0xff]  }
 0xfd1   :  { %v1677_v23 = vsel %vm644_vm2, %v1675_v57, 0.0  ;;  %v1676_v61 = vadd.f32 %v2735_v60, %v1594_v44  ;;  %v2515_v44 = vpop.f32.mrb[33].mxu1 }
 0xfd2   :  { %1678 = vadd.xlane.f32.xlu0 %v1677_v23  ;;  %v1780_v21 = vpop.f32.mrb[34].mxu1  ;;  %v1916_v49 = vrot.slane %v3786_v48, 6  ;;  %v1918_v30 = vrot.slane %v3786_v48, 4  ;;  %v1920_v53 = vrot.slane %v3786_v48, 2 }
 0xfd3   :  { %v1680_v62 = vsel %vm644_vm2, %v1676_v61, 0.0  ;;  %v2516_v45 = vpop.f32.mrb[35].mxu1 }
 0xfd4   :  { %1681 = vadd.xlane.f32.xlu1 %v1680_v62  ;;  %v1923_v32 = vsel %vm1922_vm3, %v3786_v48, %v1916_v49  ;;  %v2641_v49 = vld [vmem:[#allocation27 + $0x8] sm:$0xff]  }
 0xfd5   :  { %v1925_v54 = vsel %vm1924_vm4, %v1923_v32, %v1918_v30 }
0x105f   :  { %v1679_v31 = vpop.xlane.xlu0 %1678 }
0x1060   :  { %v1683_v63 = vmul.f32 0.03125, %v1679_v31 }
0x1061   :  { %v1682_v2 = vpop.xlane.xlu1 %1681 }
0x1062   :  { %v1685_v3 = vsub.f32 %v1675_v57, %v1683_v63  ;;  %v1684_v5 = vmul.f32 0.03125, %v1682_v2 }
0x1064   :  { %v1686_v6 = vsub.f32 %v1676_v61, %v1684_v5  ;;  %v1687_v8 = vmul.f32 %v1685_v3, %v1685_v3  ;;  %v1927_v5 = vsel %vm1926_vm5, %v1925_v54, %v1920_v53 }
0x1066   :  { %v1689_v9 = vsel %vm644_vm2, %v1687_v8, 0.0  ;;  %v1688_v10 = vmul.f32 %v1686_v6, %v1686_v6 }
0x1067   :  { %1690 = vadd.xlane.f32.xlu0 %v1689_v9 }
0x1068   :  { %v1692_v42 = vsel %vm644_vm2, %v1688_v10, 0.0 }
0x1069   :  { %1693 = vadd.xlane.f32.xlu1 %v1692_v42  ;;  %v458_v42 = vld [vmem:[%s3407_s27] sm:$0xff] }
0x10f4   :  { %v1691_v47 = vpop.xlane.xlu0 %1690 }
0x10f5   :  { %v1695_v19 = vmul.f32 0.03125, %v1691_v47 }
0x10f6   :  { %v1694_v59 = vpop.xlane.xlu1 %1693 }
0x10f7   :  { %v1697_v20 = vadd.f32 1e-05, %v1695_v19  ;;  %v1696_v24 = vmul.f32 0.03125, %v1694_v59 }
0x10f9   :  { %2736 = vrsqrt.f32 %v1697_v20  ;;  %v1698_v41 = vadd.f32 1e-05, %v1696_v24 }
0x10fb   :  { %2738 = vrsqrt.f32 %v1698_v41 }
0x1103   :  { %v2737_v25 = vpop.eup %2736 }
0x1104   :  { %v1701_v58 = vmul.f32 %v2737_v25, %v1685_v3  ;;  %v457_v3 = vld [vmem:[%s3867_s18] sm:$0xff] }
0x1105   :  { %v2739_v26 = vpop.eup %2738  ;;  %v1928_v8 = vmul.f32 %v1927_v5, %v457_v3 }
0x1106   :  { %v1703_v4 = vsub.f32 0.0, %v1701_v58  ;;  %v1702_v22 = vmul.f32 %v2739_v26, %v1686_v6 }
0x1107   :  { %v1929_v9 = vpack.c.bf16 %v1928_v8, %v1928_v8  ;;  %v2642_v8 = vld [vmem:[%s3412_s19] sm:$0xff]  }
0x1108   :  { %v1705_v27 = vmul.f32 1.442695, %v1703_v4  ;;  %v1704_v34 = vsub.f32 0.0, %v1702_v22 }
0x110a   :  { %2740 = vpow2.f32 %v1705_v27  ;;  %v1707_v33 = vmul.f32 1.442695, %v1704_v34 }
0x110c   :  { %2742 = vpow2.f32 %v1707_v33 }
0x1114   :  { %v2741_v11 = vpop.eup %2740 }
0x1115   :  { %v1709_v1 = vadd.f32 1.0, %v2741_v11 }
0x1116   :  { %v2743_v35 = vpop.eup %2742 }
0x1117   :  { %v1710_v7 = vadd.f32 1.0, %v2743_v35  ;;  %2744 = vrcp.f32 %v1709_v1 }
0x1119   :  { %2746 = vrcp.f32 %v1710_v7 }
0x1121   :  { %v2745_v37 = vpop.eup %2744 }
0x1123   :  { %v2747_v39 = vpop.eup %2746 }
0x1124   :  { %v1783_v40 = vpack.c.bf16 %v2747_v39, %v2745_v37 }
0x1126   :  { %2522 = vmatmul.mubr.msk.bf16.vlgmr.msra.gmra.mrb[36].mxu0 %vm644_vm2, %v1783_v40  ;;  %2530 = vmatmul.mubr.msk.bf16.vlgmr.msra.gmra.mrb[36].mxu1 %vm644_vm2, %v1783_v40 }
0x1127   :  { %2535 = vmatprep.mubr.msk.bf16.mxu0 %vm3238_vm0, %v3237_v0  ;;  %2541 = vmatprep.mubr.msk.bf16.mxu1 %vm3238_vm0, %v3237_v0 }
0x11f9   :  { %v1844_v51 = vpop.f32.mrb[36].mxu0  ;;  %v1908_v36 = vpop.f32.mrb[36].mxu1 }
0x11fa   :  { %v2523_v29 = vpop.f32.mrb[37].mxu0  ;;  %v2531_v52 = vpop.f32.mrb[37].mxu1  ;;  %v1845_v57 = vadd.f32 %v2325_v50, %v1844_v51  ;;  %v1909_v60 = vadd.f32 %v2329_v28, %v1908_v36  ;;  %v2335_v36 = vld [vmem:[#allocation28] ss:$0 sm:$0xff] }
0x11fb   :  { %v1847_v55 = vpop.f32.mrb[38].mxu0  ;;  %v1911_v56 = vpop.f32.mrb[38].mxu1 }
0x11fc   :  { %v1848_v23 = vadd.f32 %v2325_v50, %v1847_v55  ;;  %v1912_v61 = vadd.f32 %v2329_v28, %v1911_v56  ;;  %v2524_v62 = vpop.f32.mrb[39].mxu0  ;;  %v2532_v31 = vpop.f32.mrb[39].mxu1 }
0x11fe   :  { %v1930_v63 = vpack.c.bf16 %v1848_v23, %v1845_v57  ;;  %v1992_v2 = vpack.c.bf16 %v1912_v61, %v1909_v60 }
0x1200   :  { %2540 = vmatpush3.bf16.msra.mxu1 %v1992_v2  ;;  %v1935_v6 = vsel %vm644_vm2, %v1930_v63, 0 }
0x1201   :  { %2534 = vmatpush3.bf16.xpose.msra.mxu0 %v1935_v6  ;;  %2553 = vmatprep.subr.bf16.mxu1 %v3237_v0 }
0x1202   :  { %2545 = vmatprep.subr.bf16.mxu0 %v3237_v0 }
0x1208   :  { %2536 = vmatmul.mubr.msk.bf16.vlgmr.msra.gmra.mrb[40].mxu0 %vm644_vm2, %v1929_v9  ;;  %v2643_v9 = vld [vmem:[%s3412_s19 + $0x8] sm:$0xff]  }
0x1209   :  { %2549 = vmatprep.mubr.msk.bf16.mxu0 %vm3238_vm0, %v3237_v0  ;;  %2546 = vmatpush3.bf16.msra.mxu0 %v2640_v46 }
0x120a   :  { %2547 = vmatprep.subr.bf16.mxu0 %v3237_v0 }
0x120d   :  { %2548 = vmatpush3.bf16.msra.mxu0 %v2641_v49 }
0x12db   :  { %v1971_v10 = vpop.f32.mrb[40].mxu0 }
0x12dc   :  { %v1977_v12 = vmul.f32 0.17677669, %v1971_v10  ;;  %v2537_v13 = vpop.f32.mrb[41].mxu0 }
0x12dd   :  { %v1974_v14 = vpop.f32.mrb[42].mxu0 }
0x12de   :  { %v2538_v38 = vpop.f32.mrb[43].mxu0  ;;  %v1978_v15 = vadd.f32 %v1977_v12, %v458_v42 }
0x12e0   :  { %v1979_v16 = vsel %vm378_vm1, %v1978_v15, -inf }
0x12e1   :  { %1980 = vmax.xlane.f32.xlu0 %v1979_v16 }
0x136e   :  { %v1981_v17 = vpop.xlane.xlu0 %1980 }
0x136f   :  { %v1982_v18 = vsub.f32 %v1978_v15, %v1981_v17  ;;  %v2339_v15 = vld [vmem:[%s3417_s17] ss:$0 sm:$0xff] }
0x1371   :  { %v1983_v47 = vmul.f32 1.442695, %v1982_v18 }
0x1373   :  { %2748 = vpow2.f32 %v1983_v47 }
0x137d   :  { %v2749_v19 = vpop.eup %2748 }
0x137e   :  { %v1985_v59 = vsel %vm378_vm1, %v2749_v19, 0.0 }
0x137f   :  { %1986 = vadd.xlane.f32.xlu1 %v1985_v59 }
0x140c   :  { %v1987_v20 = vpop.xlane.xlu1 %1986 }
0x140d   :  { %2750 = vrcp.f32 %v1987_v20 }
0x1417   :  { %v2751_v24 = vpop.eup %2750 }
0x1418   :  { %v1990_v41 = vmul.f32 %v2751_v24, %v2749_v19 }
0x141a   :  { %v1991_v25 = vpack.c.bf16 %v1990_v41, %v1990_v41 }
0x141c   :  { %2542 = vmatmul.mubr.msk.bf16.vlgmr.msra.gmra.mrb[40].mxu1 %vm378_vm1, %v1991_v25 }
0x141d   :  { %2557 = vmatprep.mubr.msk.bf16.mxu1 %vm3238_vm0, %v3237_v0  ;;  %2554 = vmatpush3.bf16.msra.mxu1 %v2642_v8 }
0x141e   :  { %2555 = vmatprep.subr.bf16.mxu1 %v3237_v0 }
0x1421   :  { %2556 = vmatpush3.bf16.msra.mxu1 %v2643_v9 }
0x14ef   :  { %v2030_v58 = vpop.f32.mrb[40].mxu1 }
0x14f0   :  { %v2036_v26 = vmul.f32 %v2030_v58, %v457_v3  ;;  %v2543_v4 = vpop.f32.mrb[41].mxu1 }
0x14f1   :  { %v2033_v22 = vpop.f32.mrb[42].mxu1 }
0x14f2   :  { %v2038_v27 = vrot.slane %v2036_v26, 2  ;;  %v2544_v34 = vpop.f32.mrb[43].mxu1  ;;  %v2041_v11 = vrot.slane %v2036_v26, 4  ;;  %v2044_v35 = vrot.slane %v2036_v26, 6 }
0x14f4   :  { %v2040_v33 = vadd.f32 %v2038_v27, %v2036_v26 }
0x14f6   :  { %v2043_v1 = vadd.f32 %v2041_v11, %v2040_v33 }
0x14f8   :  { %v2046_v7 = vadd.f32 %v2044_v35, %v2043_v1 }
0x14fa   :  { %v2047_v37 = vadd.f32 %v2046_v7, %v3786_v48 }
0x14fc   :  { %v2049_v39 = vsel %vm2048_vm6, %v2047_v37, 0.0 }
0x14fd   :  { %2050 = vadd.xlane.f32.xlu0 %v2049_v39 }
0x158a   :  { %v2051_v40 = vpop.xlane.xlu0 %2050 }
0x158b   :  { %v2052_v43 = vmul.f32 0.03125, %v2051_v40 }
0x158d   :  { %v2053_v44 = vsub.f32 %v2047_v37, %v2052_v43 }
0x158f   :  { %v2054_v21 = vmul.f32 %v2053_v44, %v2053_v44 }
0x1591   :  { %v2055_v45 = vsel %vm2048_vm6, %v2054_v21, 0.0 }
0x1592   :  { %2056 = vadd.xlane.f32.xlu1 %v2055_v45 }
0x161f   :  { %v2057_v30 = vpop.xlane.xlu1 %2056 }
0x1620   :  { %v2058_v32 = vmul.f32 0.03125, %v2057_v30 }
0x1622   :  { %v2059_v50 = vadd.f32 1e-05, %v2058_v32 }
0x1624   :  { %2752 = vrsqrt.f32 %v2059_v50 }
0x162e   :  { %v2753_v48 = vpop.eup %2752 }
0x162f   :  { %v2061_v51 = vmul.f32 %v2753_v48, %v2053_v44 }
0x1631   :  { %v2062_v28 = vpack.c.bf16 %v2061_v51, %v2061_v51 }
0x1633   :  { %2550 = vmatmul.mubr.msk.bf16.vlgmr.msra.gmra.mrb[44].mxu0 %vm644_vm2, %v2062_v28 }
0x1706   :  { %v2123_v29 = vpop.f32.mrb[44].mxu0 }
0x1707   :  { %v2124_v52 = vadd.f32 %v2335_v36, %v2123_v29  ;;  %v2551_v53 = vpop.f32.mrb[45].mxu0 }
0x1708   :  { %v2126_v54 = vpop.f32.mrb[46].mxu0 }
0x1709   :  { %v2129_v55 = vsub.f32 0.0, %v2124_v52  ;;  %v2552_v56 = vpop.f32.mrb[47].mxu0 }
0x170b   :  { %v2130_v57 = vmul.f32 1.442695, %v2129_v55 }
0x170d   :  { %2754 = vpow2.f32 %v2130_v57 }
0x1717   :  { %v2755_v60 = vpop.eup %2754 }
0x1718   :  { %v2132_v23 = vadd.f32 1.0, %v2755_v60 }
0x171a   :  { %2756 = vrcp.f32 %v2132_v23 }
0x1724   :  { %v2757_v61 = vpop.eup %2756 }
0x1725   :  { %v2135_v62 = vadd.f32 %v2757_v61, %v2061_v51 }
0x1727   :  { %v2136_v31 = vsel %vm2048_vm6, %v2135_v62, 0.0 }
0x1728   :  { %2137 = vadd.xlane.f32.xlu0 %v2136_v31 }
0x17b5   :  { %v2138_v63 = vpop.xlane.xlu0 %2137 }
0x17b6   :  { %v2139_v2 = vmul.f32 0.03125, %v2138_v63 }
0x17b8   :  { %v2140_v3 = vsub.f32 %v2135_v62, %v2139_v2 }
0x17ba   :  { %v2141_v5 = vmul.f32 %v2140_v3, %v2140_v3 }
0x17bc   :  { %v2142_v6 = vsel %vm2048_vm6, %v2141_v5, 0.0 }
0x17bd   :  { %2143 = vadd.xlane.f32.xlu1 %v2142_v6 }
0x184a   :  { %v2144_v10 = vpop.xlane.xlu1 %2143 }
0x184b   :  { %v2145_v42 = vmul.f32 0.03125, %v2144_v10 }
0x184d   :  { %v2146_v12 = vadd.f32 1e-05, %v2145_v42 }
0x184f   :  { %2758 = vrsqrt.f32 %v2146_v12 }
0x1859   :  { %v2759_v13 = vpop.eup %2758 }
0x185a   :  { %v2148_v14 = vmul.f32 %v2759_v13, %v2140_v3 }
0x185c   :  { %v2149_v38 = vpack.c.bf16 %v2148_v14, %v2148_v14 }
0x185e   :  { %2558 = vmatmul.mubr.msk.bf16.vlgmr.msra.gmra.mrb[44].mxu1 %vm644_vm2, %v2149_v38 }
0x1931   :  { %v2210_v16 = vpop.f32.mrb[44].mxu1 }
0x1932   :  { %v2211_v17 = vadd.f32 %v2339_v15, %v2210_v16  ;;  %v2559_v18 = vpop.f32.mrb[45].mxu1 }
0x1933   :  { %v2213_v47 = vpop.f32.mrb[46].mxu1 }
0x1934   :  { %v2216_v19 = vsub.f32 0.0, %v2211_v17  ;;  %v2560_v59 = vpop.f32.mrb[47].mxu1 }
0x1936   :  { %v2217_v0 = vmul.f32 1.442695, %v2216_v19 }
0x1938   :  { %2760 = vpow2.f32 %v2217_v0 }
0x1942   :  { %v2761_v20 = vpop.eup %2760 }
0x1943   :  { %v2219_v24 = vadd.f32 1.0, %v2761_v20 }
0x1945   :  { %2762 = vrcp.f32 %v2219_v24 }
0x194f   :  { %v2763_v41 = vpop.eup %2762 }
0x1950   :  { %2222 = vst [vmem:[%s3422_s9] sm:$0x3] %v2763_v41 }
0x1951   :  { %2227 = vsyncpa [#allocation3], 1 }
0x1952   :  { %2228 = vsyncpa [#allocation5], 1 }
0x1953   :  { %2229 = vsyncpa [#allocation8], 1 }
0x1954   :  { %2230 = vsyncpa [#allocation11], 1 }
0x1955   :  { %2231 = vsyncpa [#allocation14], 1 }
0x1956   :  { %2232 = vsyncpa [#allocation17], 1 }
0x1957   :  { %2233 = vsyncpa [#allocation20], 1 }
0x1958   :  { %2234 = vsyncpa [#allocation23], 1 }
0x1959   :  { %2235 = vsyncpa [#allocation26], 1 }
0x195a   :  { %2236 = vsyncpa [#allocation29], 1 }

</bundles_post_ra>
